<compile_context>
chip_gen: v7x
topology: tpu7x:2x2x1
jax: 0.10.0
libtpu: 0.0.40
codegen_flags: <defaults>
</compile_context>

<pallas_src>
import functools

import jax
import jax.numpy as jnp
from jax import lax
from jax.experimental import pallas as pl
from jax.experimental.pallas import tpu as pltpu

EPS = 1e-5                      # nn.BatchNorm2d default eps
LANES = 128                     # vreg lane width; channel dims are padded to a multiple
MXU_DTYPE = jnp.bfloat16        # MXU operand dtype (f32 accumulation via preferred_element_type)
LHALO = 8                       # left spatial halo in the conv3x3 scratch (sublane alignment)


def _round_up(x, m):
    return ((x + m - 1) // m) * m


def _vmem_limit():
    # Raise the scoped-VMEM ceiling above the 32 MiB default so large row tiles stay
    # double-buffered; cap at 3/4 of physical VMEM (64 MiB on v7x, 128 MiB on v5e/v6e).
    try:
        cap = int(pltpu.get_tpu_info().vmem_capacity_bytes)
    except Exception:
        cap = 64 * 1024 * 1024
    return min(96 * 1024 * 1024, (cap * 3) // 4)


VMEM_LIMIT = _vmem_limit()


def _pick_tile(m, pref=512):
    """Largest power-of-two divisor of m that is <= pref (falls back to m itself)."""
    t = pref
    while t > 8 and m % t != 0:
        t //= 2
    return t if m % t == 0 else m


def _identity_norm(c):
    """(stats, gamma, beta) that make the on-load normalization a no-op."""
    stats = jnp.concatenate(
        [jnp.zeros((1, c), jnp.float32), jnp.ones((1, c), jnp.float32)], axis=0)
    return stats, jnp.ones((1, c), jnp.float32), jnp.zeros((1, c), jnp.float32)


def _finalize_stats(partials, m_total):
    """(G, 2, C) per-step partial sums -> (2, C) [mean ; rsqrt(var+eps)].  Tiny JAX op."""
    s = jnp.sum(partials, axis=0)
    mu = s[0:1] / m_total
    var = s[1:2] / m_total - mu * mu
    return jnp.concatenate([mu, lax.rsqrt(var + EPS)], axis=0)


# -----------------------------------------------------------------------------
# Kernel 1: [normalize(prev BN stats) -> optional ReLU] -> 1x1-conv matmul (bf16 MXU)
#           -> write z, write this step's (1,2,C) partial BN sums.
# -----------------------------------------------------------------------------
def _mm_stats_kernel(x_ref, w_ref, st_ref, g_ref, b_ref, z_ref, ps_ref, *,
                     pre_relu, m_valid, need_mask):
    # Normalize the incoming activation with the PREVIOUS stage's batch statistics
    # (identity stats for raw inputs), optional ReLU, then the 1x1-conv matmul.
    y = (x_ref[...] - st_ref[0:1, :]) * (st_ref[1:2, :] * g_ref[...]) + b_ref[...]
    if pre_relu:
        y = jnp.maximum(y, 0.0)
    if need_mask:
        # Rows past the true M (grid padding) are zeroed before the matmul so both the
        # stored z rows and the BN partial sums stay exact.
        tm = x_ref.shape[0]
        rows = pl.program_id(0) * tm + lax.broadcasted_iota(jnp.int32, (tm, 1), 0)
        y = jnp.where(rows < m_valid, y, 0.0)
    z = jnp.dot(y.astype(MXU_DTYPE), w_ref[...], preferred_element_type=jnp.float32)
    z_ref[...] = z
    # Per-step partial BN sums (sum, sum of squares); finalized in a tiny JAX op, so this
    # grid axis carries no resident accumulator and can be "parallel" (v7x megacore).
    ps_ref[...] = jnp.concatenate(
        [jnp.sum(z, axis=0, keepdims=True),
         jnp.sum(z * z, axis=0, keepdims=True)], axis=0).reshape(1, 2, z.shape[1])


def matmul_stats(x, w, in_stats, in_gamma, in_beta, *, pre_relu):
    M, K = x.shape
    C = w.shape[1]
    tm = min(512, _round_up(M, 8))        # big row tiles (~85% HBM roofline on v6e)
    grid = pl.cdiv(M, tm)
    Mp = grid * tm
    if Mp != M:
        x = jnp.pad(x, ((0, Mp - M), (0, 0)))
    kernel = functools.partial(_mm_stats_kernel, pre_relu=pre_relu, m_valid=M,
                               need_mask=(Mp != M))
    z, ps = pl.pallas_call(
        kernel,
        grid=(grid,),
        out_shape=(jax.ShapeDtypeStruct((Mp, C), jnp.float32),
                   jax.ShapeDtypeStruct((grid, 2, C), jnp.float32)),
        in_specs=[
            pl.BlockSpec((tm, K), lambda i: (i, 0)),
            pl.BlockSpec((K, C), lambda i: (0, 0)),
            pl.BlockSpec((2, K), lambda i: (0, 0)),
            pl.BlockSpec((1, K), lambda i: (0, 0)),
            pl.BlockSpec((1, K), lambda i: (0, 0)),
        ],
        out_specs=(
            pl.BlockSpec((tm, C), lambda i: (i, 0)),
            pl.BlockSpec((1, 2, C), lambda i: (i, 0, 0)),
        ),
        compiler_params=pltpu.CompilerParams(
            dimension_semantics=("parallel",),
            vmem_limit_bytes=VMEM_LIMIT),
    )(x, w, in_stats, in_gamma, in_beta)
    if Mp != M:
        z = z[:M]
    return z, _finalize_stats(ps, float(M))


# -----------------------------------------------------------------------------
# Kernel 2: 3x3 conv (stride, pad=1) with in-kernel im2col.
#   normalize(prev BN stats)+ReLU -> sublane-aligned VMEM scratch (halo strips only are
#   zeroed) -> 9 tap matmuls accumulated in an f32 VMEM scratch -> write z2 + partial
#   BN2 sums.
# -----------------------------------------------------------------------------
def _conv3x3_stats_kernel(z1_ref, st_ref, g_ref, b_ref, w_ref, z2_ref, ps_ref,
                          ypad_ref, acc_ref, *, stride, Ho, Wo):
    H, W, C = z1_ref.shape[1], z1_ref.shape[2], z1_ref.shape[3]
    Wp = ypad_ref.shape[1]

    # BN1 (previous stage stats) + ReLU.
    y = (z1_ref[0] - st_ref[0:1, :]) * (st_ref[1:2, :] * g_ref[...]) + b_ref[...]
    y = jnp.maximum(y, 0.0)

    # Zero only the halo strips the taps actually read (top/bottom rows + one column on
    # each side); the interior store starts at sublane offset LHALO (=8) so it is a dense
    # unmasked vst.  No cross-step scratch persistence is assumed, so the grid axis stays
    # "parallel" under megacore partitioning.
    zrow = jnp.zeros((1, Wp, C), ypad_ref.dtype)
    zcol = jnp.zeros((H, 1, C), ypad_ref.dtype)
    ypad_ref[0:1, :, :] = zrow
    ypad_ref[H + 1:H + 2, :, :] = zrow
    ypad_ref[1:H + 1, LHALO - 1:LHALO, :] = zcol
    ypad_ref[1:H + 1, LHALO + W:LHALO + W + 1, :] = zcol
    ypad_ref[1:H + 1, LHALO:LHALO + W, :] = y

    # 3x3 conv as 9 shifted tap matmuls accumulated into an f32 VMEM scratch
    # (in-place += chains into the MXU result buffer on v7x).
    # TODO(synk): for stride=2, store phase-decimated copies so tap reads are unstrided.
    first = True
    for dy in range(3):
        for dx in range(3):
            if stride == 1:
                patch = ypad_ref[pl.ds(dy, Ho), pl.ds(LHALO - 1 + dx, Wo), :]
            else:
                patch = ypad_ref[pl.ds(dy, Ho, stride),
                                 pl.ds(LHALO - 1 + dx, Wo, stride), :]
            t = jnp.dot(patch.reshape(Ho * Wo, C).astype(MXU_DTYPE),
                        w_ref[dy * 3 + dx], preferred_element_type=jnp.float32)
            if first:
                acc_ref[...] = t
                first = False
            else:
                acc_ref[...] += t

    acc = acc_ref[...]
    z2_ref[...] = acc.reshape(1, Ho, Wo, C)
    ps_ref[...] = jnp.concatenate(
        [jnp.sum(acc, axis=0, keepdims=True),
         jnp.sum(acc * acc, axis=0, keepdims=True)], axis=0).reshape(1, 2, C)


def conv3x3_stats(y_img, in_stats, in_gamma, in_beta, w9, stride):
    # TODO(synk): for very large images (v7x 64 MiB VMEM) re-tile over output-row blocks
    # with a 1-row halo instead of one whole image per grid step.
    N, H, W, C = y_img.shape
    Ho = (H - 1) // stride + 1
    Wo = (W - 1) // stride + 1
    Wp = _round_up(LHALO + W + 2, 8)
    kernel = functools.partial(_conv3x3_stats_kernel, stride=stride, Ho=Ho, Wo=Wo)
    z2, ps = pl.pallas_call(
        kernel,
        grid=(N,),
        out_shape=(jax.ShapeDtypeStruct((N, Ho, Wo, C), jnp.float32),
                   jax.ShapeDtypeStruct((N, 2, C), jnp.float32)),
        in_specs=[
            pl.BlockSpec((1, H, W, C), lambda n: (n, 0, 0, 0)),
            pl.BlockSpec((2, C), lambda n: (0, 0)),
            pl.BlockSpec((1, C), lambda n: (0, 0)),
            pl.BlockSpec((1, C), lambda n: (0, 0)),
            pl.BlockSpec((9, C, C), lambda n: (0, 0, 0)),
        ],
        out_specs=(
            pl.BlockSpec((1, Ho, Wo, C), lambda n: (n, 0, 0, 0)),
            pl.BlockSpec((1, 2, C), lambda n: (n, 0, 0)),
        ),
        scratch_shapes=[pltpu.VMEM((H + 2, Wp, C), jnp.float32),
                        pltpu.VMEM((Ho * Wo, C), jnp.float32)],
        compiler_params=pltpu.CompilerParams(
            dimension_semantics=("parallel",),
            vmem_limit_bytes=VMEM_LIMIT),
    )(y_img, in_stats, in_gamma, in_beta, w9)
    return z2, _finalize_stats(ps, float(N * Ho * Wo))


# -----------------------------------------------------------------------------
# Kernel 3a: SE squeeze -- per-tile partial channel sums of relu(BN3(z3)).
# -----------------------------------------------------------------------------
def _squeeze_kernel(z3_ref, st_ref, g_ref, b_ref, s_ref):
    res = (z3_ref[0] - st_ref[0:1, :]) * (st_ref[1:2, :] * g_ref[...]) + b_ref[...]
    res = jnp.maximum(res, 0.0)
    c = res.shape[-1]
    s_ref[...] = jnp.sum(res, axis=0, keepdims=True).reshape(1, 1, 1, c)


def squeeze_sums(z3_img, st3, g3, b3):
    N, HW, C = z3_img.shape
    thw = _pick_tile(HW)
    nt = HW // thw
    return pl.pallas_call(
        _squeeze_kernel,
        grid=(N, nt),
        out_shape=jax.ShapeDtypeStruct((N, nt, 1, C), jnp.float32),
        in_specs=[
            pl.BlockSpec((1, thw, C), lambda n, j: (n, j, 0)),
            pl.BlockSpec((2, C), lambda n, j: (0, 0)),
            pl.BlockSpec((1, C), lambda n, j: (0, 0)),
            pl.BlockSpec((1, C), lambda n, j: (0, 0)),
        ],
        out_specs=pl.BlockSpec((1, 1, 1, C), lambda n, j: (n, j, 0, 0)),
        compiler_params=pltpu.CompilerParams(
            dimension_semantics=("parallel", "parallel"),
            vmem_limit_bytes=VMEM_LIMIT),
    )(z3_img, st3, g3, b3)


# -----------------------------------------------------------------------------
# Kernel 3b: row-tiled elementwise epilogue:
#   relu(BN3(z3)) * excitation + BN(shortcut) -> ReLU, output aliased onto z3's buffer.
# -----------------------------------------------------------------------------
def _epilogue_kernel(z3_ref, st3_ref, g3_ref, b3_ref, sc_ref, sts_ref, gs_ref, bs_ref,
                     e_ref, o_ref):
    res = (z3_ref[0] - st3_ref[0:1, :]) * (st3_ref[1:2, :] * g3_ref[...]) + b3_ref[...]
    res = jnp.maximum(res, 0.0)
    sc = (sc_ref[0] - sts_ref[0:1, :]) * (sts_ref[1:2, :] * gs_ref[...]) + bs_ref[...]
    o_ref[...] = jnp.maximum(res * e_ref[0] + sc, 0.0)[None]


def se_epilogue(z3_img, st3, g3, b3, sc_img, sts, gs, bs, e):
    N, HW, C = z3_img.shape
    thw = _pick_tile(HW)
    nt = HW // thw
    return pl.pallas_call(
        _epilogue_kernel,
        grid=(N, nt),
        out_shape=jax.ShapeDtypeStruct((N, HW, C), jnp.float32),
        in_specs=[
            pl.BlockSpec((1, thw, C), lambda n, j: (n, j, 0)),
            pl.BlockSpec((2, C), lambda n, j: (0, 0)),
            pl.BlockSpec((1, C), lambda n, j: (0, 0)),
            pl.BlockSpec((1, C), lambda n, j: (0, 0)),
            pl.BlockSpec((1, thw, C), lambda n, j: (n, j, 0)),
            pl.BlockSpec((2, C), lambda n, j: (0, 0)),
            pl.BlockSpec((1, C), lambda n, j: (0, 0)),
            pl.BlockSpec((1, C), lambda n, j: (0, 0)),
            pl.BlockSpec((1, 1, C), lambda n, j: (n, 0, 0)),
        ],
        out_specs=pl.BlockSpec((1, thw, C), lambda n, j: (n, j, 0)),
        input_output_aliases={0: 0},     # reuse the z3 HBM buffer for the block output
        compiler_params=pltpu.CompilerParams(
            dimension_semantics=("parallel", "parallel"),
            vmem_limit_bytes=VMEM_LIMIT),
    )(z3_img, st3, g3, b3, sc_img, sts, gs, bs, e)


# -----------------------------------------------------------------------------
# Full forward pass (matches BottleneckResidualSEBlock.forward, training-mode BN)
# -----------------------------------------------------------------------------
@functools.partial(jax.jit, static_argnames=("stride", "out_c"))
def bottleneck_se_forward(x_nchw, kp, stride, out_c):
    N, Cin, H, W = x_nchw.shape
    C4 = out_c * 4
    Cin_p, Cm_p = kp['w1'].shape
    C4_p = kp['w3'].shape[1]

    # TODO(synk): fold the NCHW->NHWC transpose, channel pad, and shortcut stride-slice
    # into kernel index_maps / pl.ANY strided DMA to remove these thin XLA passes over x.
    x = jnp.transpose(x_nchw, (0, 2, 3, 1)).astype(jnp.float32)
    if Cin_p > Cin:
        x = jnp.pad(x, ((0, 0), (0, 0), (0, 0), (0, Cin_p - Cin)))
    x_flat = x.reshape(N * H * W, Cin_p)

    id_st, id_g, id_b = _identity_norm(Cin_p)

    # conv1 (1x1) -> z1  (+ BN1 batch stats)
    z1, st1 = matmul_stats(x_flat, kp['w1'], id_st, id_g, id_b, pre_relu=False)

    # conv2 (3x3, stride, pad=1); BN1+ReLU of z1 applied on load, im2col in VMEM
    z2, st2 = conv3x3_stats(z1.reshape(N, H, W, Cm_p), st1, kp['g1'], kp['beta1'],
                            kp['w2'], stride)
    Ho, Wo = z2.shape[1], z2.shape[2]
    M2 = N * Ho * Wo

    # conv3 (1x1 expand); BN2+ReLU applied on load
    z3, st3 = matmul_stats(z2.reshape(M2, Cm_p), kp['w3'], st2, kp['g2'], kp['beta2'],
                           pre_relu=True)

    # shortcut branch
    if stride != 1 or Cin != C4:
        xs = x[:, ::stride, ::stride, :].reshape(M2, Cin_p)
        sc, sc_st = matmul_stats(xs, kp['ws'], id_st, id_g, id_b, pre_relu=False)
        sc_g, sc_b = kp['gs'], kp['betas']
    else:
        sc = x_flat                                   # identity shortcut (Cin_p == C4_p)
        sc_st, sc_g, sc_b = _identity_norm(C4_p)

    # SE squeeze (row-tiled partial sums) + excitation (tiny FCs in plain JAX)
    z3_img = z3.reshape(N, Ho * Wo, C4_p)
    part = squeeze_sums(z3_img, st3, kp['g3'], kp['beta3'])          # (N, nt, 1, C)
    s = jnp.sum(part, axis=(1, 2)) * (1.0 / float(Ho * Wo))          # (N, C)
    h = jax.nn.relu(s @ kp['fc1_w'].astype(jnp.float32) + kp['fc1_b'])
    e = jax.nn.sigmoid(h @ kp['fc2_w'].astype(jnp.float32) + kp['fc2_b'])

    # BN3+ReLU, residual*excitation + BN(shortcut), final ReLU (fully parallel grid)
    out = se_epilogue(z3_img, st3, kp['g3'], kp['beta3'],
                      sc.reshape(N, Ho * Wo, C4_p), sc_st, sc_g, sc_b,
                      e.reshape(N, 1, C4_p))

    out = out.reshape(N, Ho, Wo, C4_p)[..., :C4]
    return jnp.transpose(out, (0, 3, 1, 2))           # NHWC -> NCHW


# -----------------------------------------------------------------------------
# Pure-JAX f32 reference (same math, lax.conv, PyTorch training-mode BN)
# -----------------------------------------------------------------------------
def ref_forward(x_nchw, p, stride):
    x = x_nchw.astype(jnp.float32)
    C4 = p['w3_t'].shape[0]
    in_c = x_nchw.shape[1]

    def bn(z, g, b):
        mu = z.mean(axis=(0, 2, 3), keepdims=True)
        var = ((z - mu) ** 2).mean(axis=(0, 2, 3), keepdims=True)
        return (z - mu) / jnp.sqrt(var + EPS) * g[None, :, None, None] + b[None, :, None, None]

    def conv(z, w, b, s=1, pad=0):
        out = lax.conv_general_dilated(z, w, (s, s), ((pad, pad), (pad, pad)),
                                       dimension_numbers=('NCHW', 'OIHW', 'NCHW'))
        return out + b[None, :, None, None]

    r = jax.nn.relu(bn(conv(x, p['w1_t'], p['b1']), p['g1'], p['beta1']))
    r = jax.nn.relu(bn(conv(r, p['w2_t'], p['b2'], s=stride, pad=1), p['g2'], p['beta2']))
    r = jax.nn.relu(bn(conv(r, p['w3_t'], p['b3']), p['g3'], p['beta3']))
    if stride != 1 or in_c != C4:
        s = bn(conv(x, p['ws_t'], p['bs'], s=stride), p['gs'], p['betas'])
    else:
        s = x
    sq = r.mean(axis=(2, 3))
    e = jax.nn.sigmoid(jax.nn.relu(sq @ p['fc1_w'] + p['fc1_b']) @ p['fc2_w'] + p['fc2_b'])
    return jax.nn.relu(r * e[:, :, None, None] + s)


# -----------------------------------------------------------------------------
# Deterministic parameter construction (shapes follow the PyTorch __init__)
# -----------------------------------------------------------------------------
def make_params(key, in_c, out_c, r=16):
    C4 = out_c * 4
    hid = C4 // r
    ks = iter(jax.random.split(key, 32))

    def nrm(shape, scale=0.2):
        return scale * jax.random.normal(next(ks), shape, jnp.float32)

    p = {}
    p['w1_t'], p['b1'] = nrm((out_c, in_c, 1, 1)), nrm((out_c,))
    p['g1'], p['beta1'] = 1.0 + nrm((out_c,), 0.1), nrm((out_c,), 0.1)
    p['w2_t'], p['b2'] = nrm((out_c, out_c, 3, 3)), nrm((out_c,))
    p['g2'], p['beta2'] = 1.0 + nrm((out_c,), 0.1), nrm((out_c,), 0.1)
    p['w3_t'], p['b3'] = nrm((C4, out_c, 1, 1)), nrm((C4,))
    p['g3'], p['beta3'] = 1.0 + nrm((C4,), 0.1), nrm((C4,), 0.1)
    p['ws_t'], p['bs'] = nrm((C4, in_c, 1, 1)), nrm((C4,))
    p['gs'], p['betas'] = 1.0 + nrm((C4,), 0.1), nrm((C4,), 0.1)
    # nn.Linear weights stored pre-transposed as (in, out) so y = x @ W + b
    p['fc1_w'], p['fc1_b'] = nrm((C4, hid)), nrm((hid,))
    p['fc2_w'], p['fc2_b'] = nrm((hid, C4)), nrm((C4,))
    return p


def _pad_dim(a, axis, size):
    if a.shape[axis] == size:
        return a
    widths = [(0, 0)] * a.ndim
    widths[axis] = (0, size - a.shape[axis])
    return jnp.pad(a, widths)


def _row(v, size):
    return _pad_dim(v.reshape(1, -1), 1, size)


def pack_params(p, in_c, out_c, r=16):
    """Kernel-layout weights: matmul-shaped, zero-padded to 128-lane channel widths,
    matmul weights stored bf16 (f32 accumulation in-kernel).  Conv biases are dropped:
    a per-channel constant added before training-mode BatchNorm cancels exactly."""
    C4, hid = out_c * 4, (out_c * 4) // r
    Cin_p, Cm_p, C4_p, Hd_p = (_round_up(c, LANES) for c in (in_c, out_c, C4, hid))
    w2 = jnp.transpose(p['w2_t'], (2, 3, 1, 0)).reshape(9, out_c, out_c)   # (kh*kw, I, O)

    def mx(a):
        return a.astype(MXU_DTYPE)

    return {
        'w1': mx(_pad_dim(_pad_dim(p['w1_t'][:, :, 0, 0].T, 0, Cin_p), 1, Cm_p)),
        'g1': _row(p['g1'], Cm_p), 'beta1': _row(p['beta1'], Cm_p),
        'w2': mx(_pad_dim(_pad_dim(w2, 1, Cm_p), 2, Cm_p)),
        'g2': _row(p['g2'], Cm_p), 'beta2': _row(p['beta2'], Cm_p),
        'w3': mx(_pad_dim(_pad_dim(p['w3_t'][:, :, 0, 0].T, 0, Cm_p), 1, C4_p)),
        'g3': _row(p['g3'], C4_p), 'beta3': _row(p['beta3'], C4_p),
        'ws': mx(_pad_dim(_pad_dim(p['ws_t'][:, :, 0, 0].T, 0, Cin_p), 1, C4_p)),
        'gs': _row(p['gs'], C4_p), 'betas': _row(p['betas'], C4_p),
        'fc1_w': mx(_pad_dim(_pad_dim(p['fc1_w'], 0, C4_p), 1, Hd_p)),
        'fc1_b': _row(p['fc1_b'], Hd_p),
        'fc2_w': mx(_pad_dim(_pad_dim(p['fc2_w'], 0, Hd_p), 1, C4_p)),
        'fc2_b': _row(p['fc2_b'], C4_p),
    }


if __name__ == "__main__":
    key = jax.random.PRNGKey(0)
    cases = [
        # (in_channels, out_channels, stride):
        #   projection shortcut with a strided 3x3, and identity shortcut (stride 1).
        (8, 8, 2),
        (32, 8, 1),
    ]
    for idx, (in_c, out_c, s) in enumerate(cases):
        kx, kparam = jax.random.split(jax.random.fold_in(key, idx))
        x = jax.random.normal(kx, (2, in_c, 16, 16), jnp.float32)
        p = make_params(kparam, in_c, out_c, r=16)
        kp = pack_params(p, in_c, out_c, r=16)

        out = jax.block_until_ready(bottleneck_se_forward(x, kp, stride=s, out_c=out_c))
        ref = ref_forward(x, p, s)

        assert out.shape == ref.shape, (out.shape, ref.shape)
        # bf16 MXU operands vs f32 reference: allow ~1% scale-relative deviation.
        max_rel = float(jnp.max(jnp.abs(out - ref) / (1.0 + jnp.abs(ref))))
        mean_abs = float(jnp.mean(jnp.abs(out - ref)))
        assert max_rel < 0.08 and mean_abs < 0.03, \
            f"mismatch vs reference for case {(in_c, out_c, s)}: {max_rel}, {mean_abs}"
    print("KERNEL_OK")
</pallas_src>

<mosaic_0001>
module attributes {stable_mosaic.version = 11 : i64} {
  func.func @_mm_stats_kernel(%arg0: i32, %arg1: memref<512x128xf32, #tpu.memory_space<vmem>>, %arg2: memref<128x128xbf16, #tpu.memory_space<vmem>>, %arg3: memref<2x128xf32, #tpu.memory_space<vmem>>, %arg4: memref<1x128xf32, #tpu.memory_space<vmem>>, %arg5: memref<1x128xf32, #tpu.memory_space<vmem>>, %arg6: memref<512x128xf32, #tpu.memory_space<vmem>>, %arg7: memref<1x2x128xf32, #tpu.memory_space<vmem>>) attributes {dimension_semantics = [#tpu.dimension_semantics<parallel>], iteration_bounds = array<i64: 1>, scalar_prefetch = 0 : i64, scratch_operands = 0 : i64, tpu.core_type = #tpu.core_type<tc>, window_params = [{transform_indices = @transform_0, window_bounds = array<i64: 512, 128>}, {pipeline_mode = #tpu.pipeline_mode<synchronous>, transform_indices = @transform_1, window_bounds = array<i64: 128, 128>}, {pipeline_mode = #tpu.pipeline_mode<synchronous>, transform_indices = @transform_2, window_bounds = array<i64: 2, 128>}, {pipeline_mode = #tpu.pipeline_mode<synchronous>, transform_indices = @transform_3, window_bounds = array<i64: 1, 128>}, {pipeline_mode = #tpu.pipeline_mode<synchronous>, transform_indices = @transform_4, window_bounds = array<i64: 1, 128>}, {transform_indices = @transform_5, window_bounds = array<i64: 512, 128>}, {transform_indices = @transform_6, window_bounds = array<i64: 1, 2, 128>}]} {
    %c0 = arith.constant 0 : index
    %c0_0 = arith.constant 0 : index
    %0 = vector.load %arg1[%c0, %c0_0] : memref<512x128xf32, #tpu.memory_space<vmem>>, vector<512x128xf32>
    %c0_1 = arith.constant 0 : index
    %c0_2 = arith.constant 0 : index
    %1 = vector.load %arg3[%c0_1, %c0_2] : memref<2x128xf32, #tpu.memory_space<vmem>>, vector<1x128xf32>
    %2 = vector.broadcast %1 : vector<1x128xf32> to vector<512x128xf32>
    %3 = arith.subf %0, %2 : vector<512x128xf32>
    %c1 = arith.constant 1 : index
    %c0_3 = arith.constant 0 : index
    %4 = vector.load %arg3[%c1, %c0_3] : memref<2x128xf32, #tpu.memory_space<vmem>>, vector<1x128xf32>
    %c0_4 = arith.constant 0 : index
    %c0_5 = arith.constant 0 : index
    %5 = vector.load %arg4[%c0_4, %c0_5] : memref<1x128xf32, #tpu.memory_space<vmem>>, vector<1x128xf32>
    %6 = arith.mulf %4, %5 : vector<1x128xf32>
    %7 = vector.broadcast %6 : vector<1x128xf32> to vector<512x128xf32>
    %8 = arith.mulf %3, %7 : vector<512x128xf32>
    %c0_6 = arith.constant 0 : index
    %c0_7 = arith.constant 0 : index
    %9 = vector.load %arg5[%c0_6, %c0_7] : memref<1x128xf32, #tpu.memory_space<vmem>>, vector<1x128xf32>
    %10 = vector.broadcast %9 : vector<1x128xf32> to vector<512x128xf32>
    %11 = arith.addf %8, %10 : vector<512x128xf32>
    %12 = arith.truncf %11 : vector<512x128xf32> to vector<512x128xbf16>
    %c0_8 = arith.constant 0 : index
    %c0_9 = arith.constant 0 : index
    %13 = vector.load %arg2[%c0_8, %c0_9] : memref<128x128xbf16, #tpu.memory_space<vmem>>, vector<128x128xbf16>
    %cst = arith.constant dense<0.000000e+00> : vector<512x128xf32>
    %14 = tpu.matmul %12, %13, %cst {dimension_numbers = #tpu.dot_dimension_numbers<[1], [0], [0], [1], [0, 0, 1, 1], [], []>} : vector<512x128xbf16>, vector<128x128xbf16>, vector<512x128xf32> -> vector<512x128xf32>
    %c0_10 = arith.constant 0 : index
    %c0_11 = arith.constant 0 : index
    %15 = vector.load %arg6[%c0_10, %c0_11] : memref<512x128xf32, #tpu.memory_space<vmem>>, vector<512x128xf32>
    tpu.vector_store %arg6[%c0_10, %c0_11], %14 {strides = array<i32>} : memref<512x128xf32, #tpu.memory_space<vmem>>, vector<512x128xf32>,
    %cst_12 = arith.constant dense<0.000000e+00> : vector<128xf32>
    %16 = vector.multi_reduction <add>, %14, %cst_12 [0] : vector<512x128xf32> to vector<128xf32>
    %17 = vector.shape_cast %16 : vector<128xf32> to vector<1x128xf32>
    %18 = arith.mulf %14, %14 : vector<512x128xf32>
    %cst_13 = arith.constant dense<0.000000e+00> : vector<128xf32>
    %19 = vector.multi_reduction <add>, %18, %cst_13 [0] : vector<512x128xf32> to vector<128xf32>
    %20 = vector.shape_cast %19 : vector<128xf32> to vector<1x128xf32>
    %21 = tpu.concatenate %17, %20 in 0 : vector<1x128xf32>, vector<1x128xf32> -> vector<2x128xf32>
    %22 = vector.shape_cast %21 : vector<2x128xf32> to vector<1x2x128xf32>
    %c0_14 = arith.constant 0 : index
    %c0_15 = arith.constant 0 : index
    %c0_16 = arith.constant 0 : index
    %23 = vector.load %arg7[%c0_14, %c0_15, %c0_16] : memref<1x2x128xf32, #tpu.memory_space<vmem>>, vector<1x2x128xf32>
    tpu.vector_store %arg7[%c0_14, %c0_15, %c0_16], %22 {strides = array<i32>} : memref<1x2x128xf32, #tpu.memory_space<vmem>>, vector<1x2x128xf32>,
    return
  }
  func.func @transform_0(%arg0: i32) -> (i32, i32) {
    %c0_i32 = arith.constant 0 : i32
    %c0_i32_0 = arith.constant 0 : i32
    return %arg0, %c0_i32 : i32, i32
  }
  func.func @transform_1(%arg0: i32) -> (i32, i32) {
    %c0_i32 = arith.constant 0 : i32
    %c0_i32_0 = arith.constant 0 : i32
    %c0_i32_1 = arith.constant 0 : i32
    return %c0_i32, %c0_i32_0 : i32, i32
  }
  func.func @transform_2(%arg0: i32) -> (i32, i32) {
    %c0_i32 = arith.constant 0 : i32
    %c0_i32_0 = arith.constant 0 : i32
    %c0_i32_1 = arith.constant 0 : i32
    return %c0_i32, %c0_i32_0 : i32, i32
  }
  func.func @transform_3(%arg0: i32) -> (i32, i32) {
    %c0_i32 = arith.constant 0 : i32
    %c0_i32_0 = arith.constant 0 : i32
    %c0_i32_1 = arith.constant 0 : i32
    return %c0_i32, %c0_i32_0 : i32, i32
  }
  func.func @transform_4(%arg0: i32) -> (i32, i32) {
    %c0_i32 = arith.constant 0 : i32
    %c0_i32_0 = arith.constant 0 : i32
    %c0_i32_1 = arith.constant 0 : i32
    return %c0_i32, %c0_i32_0 : i32, i32
  }
  func.func @transform_5(%arg0: i32) -> (i32, i32) {
    %c0_i32 = arith.constant 0 : i32
    %c0_i32_0 = arith.constant 0 : i32
    return %arg0, %c0_i32 : i32, i32
  }
  func.func @transform_6(%arg0: i32) -> (i32, i32, i32) {
    %c0_i32 = arith.constant 0 : i32
    %c0_i32_0 = arith.constant 0 : i32
    %c0_i32_1 = arith.constant 0 : i32
    return %arg0, %c0_i32, %c0_i32_0 : i32, i32, i32
  }
}

module attributes {stable_mosaic.version = 11 : i64} {
  func.func @_mm_stats_kernel(%arg0: i32, %arg1: memref<128x128xf32, #tpu.memory_space<vmem>>, %arg2: memref<128x128xbf16, #tpu.memory_space<vmem>>, %arg3: memref<2x128xf32, #tpu.memory_space<vmem>>, %arg4: memref<1x128xf32, #tpu.memory_space<vmem>>, %arg5: memref<1x128xf32, #tpu.memory_space<vmem>>, %arg6: memref<128x128xf32, #tpu.memory_space<vmem>>, %arg7: memref<1x2x128xf32, #tpu.memory_space<vmem>>) attributes {dimension_semantics = [#tpu.dimension_semantics<parallel>], iteration_bounds = array<i64: 1>, scalar_prefetch = 0 : i64, scratch_operands = 0 : i64, tpu.core_type = #tpu.core_type<tc>, window_params = [{transform_indices = @transform_0, window_bounds = array<i64: 128, 128>}, {pipeline_mode = #tpu.pipeline_mode<synchronous>, transform_indices = @transform_1, window_bounds = array<i64: 128, 128>}, {pipeline_mode = #tpu.pipeline_mode<synchronous>, transform_indices = @transform_2, window_bounds = array<i64: 2, 128>}, {pipeline_mode = #tpu.pipeline_mode<synchronous>, transform_indices = @transform_3, window_bounds = array<i64: 1, 128>}, {pipeline_mode = #tpu.pipeline_mode<synchronous>, transform_indices = @transform_4, window_bounds = array<i64: 1, 128>}, {transform_indices = @transform_5, window_bounds = array<i64: 128, 128>}, {transform_indices = @transform_6, window_bounds = array<i64: 1, 2, 128>}]} {
    %c0 = arith.constant 0 : index
    %c0_0 = arith.constant 0 : index
    %0 = vector.load %arg1[%c0, %c0_0] : memref<128x128xf32, #tpu.memory_space<vmem>>, vector<128x128xf32>
    %c0_1 = arith.constant 0 : index
    %c0_2 = arith.constant 0 : index
    %1 = vector.load %arg3[%c0_1, %c0_2] : memref<2x128xf32, #tpu.memory_space<vmem>>, vector<1x128xf32>
    %2 = vector.broadcast %1 : vector<1x128xf32> to vector<128x128xf32>
    %3 = arith.subf %0, %2 : vector<128x128xf32>
    %c1 = arith.constant 1 : index
    %c0_3 = arith.constant 0 : index
    %4 = vector.load %arg3[%c1, %c0_3] : memref<2x128xf32, #tpu.memory_space<vmem>>, vector<1x128xf32>
    %c0_4 = arith.constant 0 : index
    %c0_5 = arith.constant 0 : index
    %5 = vector.load %arg4[%c0_4, %c0_5] : memref<1x128xf32, #tpu.memory_space<vmem>>, vector<1x128xf32>
    %6 = arith.mulf %4, %5 : vector<1x128xf32>
    %7 = vector.broadcast %6 : vector<1x128xf32> to vector<128x128xf32>
    %8 = arith.mulf %3, %7 : vector<128x128xf32>
    %c0_6 = arith.constant 0 : index
    %c0_7 = arith.constant 0 : index
    %9 = vector.load %arg5[%c0_6, %c0_7] : memref<1x128xf32, #tpu.memory_space<vmem>>, vector<1x128xf32>
    %10 = vector.broadcast %9 : vector<1x128xf32> to vector<128x128xf32>
    %11 = arith.addf %8, %10 : vector<128x128xf32>
    %cst = arith.constant 0.000000e+00 : f32
    %12 = vector.broadcast %cst : f32 to vector<128x128xf32>
    %13 = arith.maximumf %11, %12 : vector<128x128xf32>
    %14 = arith.truncf %13 : vector<128x128xf32> to vector<128x128xbf16>
    %c0_8 = arith.constant 0 : index
    %c0_9 = arith.constant 0 : index
    %15 = vector.load %arg2[%c0_8, %c0_9] : memref<128x128xbf16, #tpu.memory_space<vmem>>, vector<128x128xbf16>
    %cst_10 = arith.constant dense<0.000000e+00> : vector<128x128xf32>
    %16 = tpu.matmul %14, %15, %cst_10 {dimension_numbers = #tpu.dot_dimension_numbers<[1], [0], [0], [1], [0, 0, 1, 1], [], []>} : vector<128x128xbf16>, vector<128x128xbf16>, vector<128x128xf32> -> vector<128x128xf32>
    %c0_11 = arith.constant 0 : index
    %c0_12 = arith.constant 0 : index
    %17 = vector.load %arg6[%c0_11, %c0_12] : memref<128x128xf32, #tpu.memory_space<vmem>>, vector<128x128xf32>
    tpu.vector_store %arg6[%c0_11, %c0_12], %16 {strides = array<i32>} : memref<128x128xf32, #tpu.memory_space<vmem>>, vector<128x128xf32>,
    %cst_13 = arith.constant dense<0.000000e+00> : vector<128xf32>
    %18 = vector.multi_reduction <add>, %16, %cst_13 [0] : vector<128x128xf32> to vector<128xf32>
    %19 = vector.shape_cast %18 : vector<128xf32> to vector<1x128xf32>
    %20 = arith.mulf %16, %16 : vector<128x128xf32>
    %cst_14 = arith.constant dense<0.000000e+00> : vector<128xf32>
    %21 = vector.multi_reduction <add>, %20, %cst_14 [0] : vector<128x128xf32> to vector<128xf32>
    %22 = vector.shape_cast %21 : vector<128xf32> to vector<1x128xf32>
    %23 = tpu.concatenate %19, %22 in 0 : vector<1x128xf32>, vector<1x128xf32> -> vector<2x128xf32>
    %24 = vector.shape_cast %23 : vector<2x128xf32> to vector<1x2x128xf32>
    %c0_15 = arith.constant 0 : index
    %c0_16 = arith.constant 0 : index
    %c0_17 = arith.constant 0 : index
    %25 = vector.load %arg7[%c0_15, %c0_16, %c0_17] : memref<1x2x128xf32, #tpu.memory_space<vmem>>, vector<1x2x128xf32>
    tpu.vector_store %arg7[%c0_15, %c0_16, %c0_17], %24 {strides = array<i32>} : memref<1x2x128xf32, #tpu.memory_space<vmem>>, vector<1x2x128xf32>,
    return
  }
  func.func @transform_0(%arg0: i32) -> (i32, i32) {
    %c0_i32 = arith.constant 0 : i32
    %c0_i32_0 = arith.constant 0 : i32
    return %arg0, %c0_i32 : i32, i32
  }
  func.func @transform_1(%arg0: i32) -> (i32, i32) {
    %c0_i32 = arith.constant 0 : i32
    %c0_i32_0 = arith.constant 0 : i32
    %c0_i32_1 = arith.constant 0 : i32
    return %c0_i32, %c0_i32_0 : i32, i32
  }
  func.func @transform_2(%arg0: i32) -> (i32, i32) {
    %c0_i32 = arith.constant 0 : i32
    %c0_i32_0 = arith.constant 0 : i32
    %c0_i32_1 = arith.constant 0 : i32
    return %c0_i32, %c0_i32_0 : i32, i32
  }
  func.func @transform_3(%arg0: i32) -> (i32, i32) {
    %c0_i32 = arith.constant 0 : i32
    %c0_i32_0 = arith.constant 0 : i32
    %c0_i32_1 = arith.constant 0 : i32
    return %c0_i32, %c0_i32_0 : i32, i32
  }
  func.func @transform_4(%arg0: i32) -> (i32, i32) {
    %c0_i32 = arith.constant 0 : i32
    %c0_i32_0 = arith.constant 0 : i32
    %c0_i32_1 = arith.constant 0 : i32
    return %c0_i32, %c0_i32_0 : i32, i32
  }
  func.func @transform_5(%arg0: i32) -> (i32, i32) {
    %c0_i32 = arith.constant 0 : i32
    %c0_i32_0 = arith.constant 0 : i32
    return %arg0, %c0_i32 : i32, i32
  }
  func.func @transform_6(%arg0: i32) -> (i32, i32, i32) {
    %c0_i32 = arith.constant 0 : i32
    %c0_i32_0 = arith.constant 0 : i32
    %c0_i32_1 = arith.constant 0 : i32
    return %arg0, %c0_i32, %c0_i32_0 : i32, i32, i32
  }
}

module attributes {stable_mosaic.version = 11 : i64} {
  func.func @_conv3x3_stats_kernel(%arg0: i32, %arg1: memref<1x16x16x128xf32, #tpu.memory_space<vmem>>, %arg2: memref<2x128xf32, #tpu.memory_space<vmem>>, %arg3: memref<1x128xf32, #tpu.memory_space<vmem>>, %arg4: memref<1x128xf32, #tpu.memory_space<vmem>>, %arg5: memref<9x128x128xbf16, #tpu.memory_space<vmem>>, %arg6: memref<1x8x8x128xf32, #tpu.memory_space<vmem>>, %arg7: memref<1x2x128xf32, #tpu.memory_space<vmem>>, %arg8: memref<18x32x128xf32, #tpu.memory_space<vmem>>, %arg9: memref<64x128xf32, #tpu.memory_space<vmem>>) attributes {dimension_semantics = [#tpu.dimension_semantics<parallel>], iteration_bounds = array<i64: 2>, scalar_prefetch = 0 : i64, scratch_operands = 2 : i64, tpu.core_type = #tpu.core_type<tc>, window_params = [{transform_indices = @transform_0, window_bounds = array<i64: 1, 16, 16, 128>}, {pipeline_mode = #tpu.pipeline_mode<synchronous>, transform_indices = @transform_1, window_bounds = array<i64: 2, 128>}, {pipeline_mode = #tpu.pipeline_mode<synchronous>, transform_indices = @transform_2, window_bounds = array<i64: 1, 128>}, {pipeline_mode = #tpu.pipeline_mode<synchronous>, transform_indices = @transform_3, window_bounds = array<i64: 1, 128>}, {pipeline_mode = #tpu.pipeline_mode<synchronous>, transform_indices = @transform_4, window_bounds = array<i64: 9, 128, 128>}, {transform_indices = @transform_5, window_bounds = array<i64: 1, 8, 8, 128>}, {transform_indices = @transform_6, window_bounds = array<i64: 1, 2, 128>}]} {
    %c0 = arith.constant 0 : index
    %c0_0 = arith.constant 0 : index
    %c0_1 = arith.constant 0 : index
    %c0_2 = arith.constant 0 : index
    %0 = vector.load %arg1[%c0, %c0_0, %c0_1, %c0_2] : memref<1x16x16x128xf32, #tpu.memory_space<vmem>>, vector<1x16x16x128xf32>
    %1 = vector.shape_cast %0 : vector<1x16x16x128xf32> to vector<16x16x128xf32>
    %c0_3 = arith.constant 0 : index
    %c0_4 = arith.constant 0 : index
    %2 = vector.load %arg2[%c0_3, %c0_4] : memref<2x128xf32, #tpu.memory_space<vmem>>, vector<1x128xf32>
    %3 = vector.shape_cast %2 : vector<1x128xf32> to vector<1x1x128xf32>
    %4 = vector.broadcast %3 : vector<1x1x128xf32> to vector<16x16x128xf32>
    %5 = arith.subf %1, %4 : vector<16x16x128xf32>
    %c1 = arith.constant 1 : index
    %c0_5 = arith.constant 0 : index
    %6 = vector.load %arg2[%c1, %c0_5] : memref<2x128xf32, #tpu.memory_space<vmem>>, vector<1x128xf32>
    %c0_6 = arith.constant 0 : index
    %c0_7 = arith.constant 0 : index
    %7 = vector.load %arg3[%c0_6, %c0_7] : memref<1x128xf32, #tpu.memory_space<vmem>>, vector<1x128xf32>
    %8 = arith.mulf %6, %7 : vector<1x128xf32>
    %9 = vector.shape_cast %8 : vector<1x128xf32> to vector<1x1x128xf32>
    %10 = vector.broadcast %9 : vector<1x1x128xf32> to vector<16x16x128xf32>
    %11 = arith.mulf %5, %10 : vector<16x16x128xf32>
    %c0_8 = arith.constant 0 : index
    %c0_9 = arith.constant 0 : index
    %12 = vector.load %arg4[%c0_8, %c0_9] : memref<1x128xf32, #tpu.memory_space<vmem>>, vector<1x128xf32>
    %13 = vector.shape_cast %12 : vector<1x128xf32> to vector<1x1x128xf32>
    %14 = vector.broadcast %13 : vector<1x1x128xf32> to vector<16x16x128xf32>
    %15 = arith.addf %11, %14 : vector<16x16x128xf32>
    %cst = arith.constant 0.000000e+00 : f32
    %16 = vector.broadcast %cst : f32 to vector<16x16x128xf32>
    %17 = arith.maximumf %15, %16 : vector<16x16x128xf32>
    %cst_10 = arith.constant 0.000000e+00 : f32
    %18 = vector.broadcast %cst_10 : f32 to vector<1x32x128xf32>
    %cst_11 = arith.constant 0.000000e+00 : f32
    %19 = vector.broadcast %cst_11 : f32 to vector<16x1x128xf32>
    %c0_12 = arith.constant 0 : index
    %c0_13 = arith.constant 0 : index
    %c0_14 = arith.constant 0 : index
    %20 = vector.load %arg8[%c0_12, %c0_13, %c0_14] : memref<18x32x128xf32, #tpu.memory_space<vmem>>, vector<1x32x128xf32>
    tpu.vector_store %arg8[%c0_12, %c0_13, %c0_14], %18 {strides = array<i32>} : memref<18x32x128xf32, #tpu.memory_space<vmem>>, vector<1x32x128xf32>,
    %c17 = arith.constant 17 : index
    %c0_15 = arith.constant 0 : index
    %c0_16 = arith.constant 0 : index
    %21 = vector.load %arg8[%c17, %c0_15, %c0_16] : memref<18x32x128xf32, #tpu.memory_space<vmem>>, vector<1x32x128xf32>
    tpu.vector_store %arg8[%c17, %c0_15, %c0_16], %18 {strides = array<i32>} : memref<18x32x128xf32, #tpu.memory_space<vmem>>, vector<1x32x128xf32>,
    %c1_17 = arith.constant 1 : index
    %c7 = arith.constant 7 : index
    %c0_18 = arith.constant 0 : index
    %22 = vector.load %arg8[%c1_17, %c7, %c0_18] : memref<18x32x128xf32, #tpu.memory_space<vmem>>, vector<16x1x128xf32>
    tpu.vector_store %arg8[%c1_17, %c7, %c0_18], %19 {strides = array<i32>} : memref<18x32x128xf32, #tpu.memory_space<vmem>>, vector<16x1x128xf32>,
    %c1_19 = arith.constant 1 : index
    %c24 = arith.constant 24 : index
    %c0_20 = arith.constant 0 : index
    %23 = vector.load %arg8[%c1_19, %c24, %c0_20] : memref<18x32x128xf32, #tpu.memory_space<vmem>>, vector<16x1x128xf32>
    tpu.vector_store %arg8[%c1_19, %c24, %c0_20], %19 {strides = array<i32>} : memref<18x32x128xf32, #tpu.memory_space<vmem>>, vector<16x1x128xf32>,
    %c1_21 = arith.constant 1 : index
    %c8 = arith.constant 8 : index
    %c0_22 = arith.constant 0 : index
    %24 = vector.load %arg8[%c1_21, %c8, %c0_22] : memref<18x32x128xf32, #tpu.memory_space<vmem>>, vector<16x16x128xf32>
    tpu.vector_store %arg8[%c1_21, %c8, %c0_22], %17 {strides = array<i32>} : memref<18x32x128xf32, #tpu.memory_space<vmem>>, vector<16x16x128xf32>,
    %c0_23 = arith.constant 0 : index
    %c7_24 = arith.constant 7 : index
    %c0_25 = arith.constant 0 : index
    %25 = tpu.strided_load %arg8[%c0_23, %c7_24, %c0_25] {strides = array<i32: 2, 2, 1>} : memref<18x32x128xf32, #tpu.memory_space<vmem>>, vector<8x8x128xf32>
    %26 = vector.shape_cast %25 : vector<8x8x128xf32> to vector<64x128xf32>
    %27 = arith.truncf %26 : vector<64x128xf32> to vector<64x128xbf16>
    %c0_26 = arith.constant 0 : index
    %c0_27 = arith.constant 0 : index
    %c0_28 = arith.constant 0 : index
    %28 = vector.load %arg5[%c0_26, %c0_27, %c0_28] : memref<9x128x128xbf16, #tpu.memory_space<vmem>>, vector<1x128x128xbf16>
    %29 = vector.shape_cast %28 : vector<1x128x128xbf16> to vector<128x128xbf16>
    %cst_29 = arith.constant dense<0.000000e+00> : vector<64x128xf32>
    %30 = tpu.matmul %27, %29, %cst_29 {dimension_numbers = #tpu.dot_dimension_numbers<[1], [0], [0], [1], [0, 0, 1, 1], [], []>} : vector<64x128xbf16>, vector<128x128xbf16>, vector<64x128xf32> -> vector<64x128xf32>
    %c0_30 = arith.constant 0 : index
    %c0_31 = arith.constant 0 : index
    %31 = vector.load %arg9[%c0_30, %c0_31] : memref<64x128xf32, #tpu.memory_space<vmem>>, vector<64x128xf32>
    tpu.vector_store %arg9[%c0_30, %c0_31], %30 {strides = array<i32>} : memref<64x128xf32, #tpu.memory_space<vmem>>, vector<64x128xf32>,
    %c0_32 = arith.constant 0 : index
    %c8_33 = arith.constant 8 : index
    %c0_34 = arith.constant 0 : index
    %32 = tpu.strided_load %arg8[%c0_32, %c8_33, %c0_34] {strides = array<i32: 2, 2, 1>} : memref<18x32x128xf32, #tpu.memory_space<vmem>>, vector<8x8x128xf32>
    %33 = vector.shape_cast %32 : vector<8x8x128xf32> to vector<64x128xf32>
    %34 = arith.truncf %33 : vector<64x128xf32> to vector<64x128xbf16>
    %c1_35 = arith.constant 1 : index
    %c0_36 = arith.constant 0 : index
    %c0_37 = arith.constant 0 : index
    %35 = vector.load %arg5[%c1_35, %c0_36, %c0_37] : memref<9x128x128xbf16, #tpu.memory_space<vmem>>, vector<1x128x128xbf16>
    %36 = vector.shape_cast %35 : vector<1x128x128xbf16> to vector<128x128xbf16>
    %cst_38 = arith.constant dense<0.000000e+00> : vector<64x128xf32>
    %37 = tpu.matmul %34, %36, %cst_38 {dimension_numbers = #tpu.dot_dimension_numbers<[1], [0], [0], [1], [0, 0, 1, 1], [], []>} : vector<64x128xbf16>, vector<128x128xbf16>, vector<64x128xf32> -> vector<64x128xf32>
    %c0_39 = arith.constant 0 : index
    %c0_40 = arith.constant 0 : index
    %38 = vector.load %arg9[%c0_39, %c0_40] : memref<64x128xf32, #tpu.memory_space<vmem>>, vector<64x128xf32>
    %39 = arith.addf %38, %37 : vector<64x128xf32>
    %c0_41 = arith.constant 0 : index
    %c0_42 = arith.constant 0 : index
    %40 = vector.load %arg9[%c0_41, %c0_42] : memref<64x128xf32, #tpu.memory_space<vmem>>, vector<64x128xf32>
    tpu.vector_store %arg9[%c0_41, %c0_42], %39 {strides = array<i32>} : memref<64x128xf32, #tpu.memory_space<vmem>>, vector<64x128xf32>,
    %c0_43 = arith.constant 0 : index
    %c9 = arith.constant 9 : index
    %c0_44 = arith.constant 0 : index
    %41 = tpu.strided_load %arg8[%c0_43, %c9, %c0_44] {strides = array<i32: 2, 2, 1>} : memref<18x32x128xf32, #tpu.memory_space<vmem>>, vector<8x8x128xf32>
    %42 = vector.shape_cast %41 : vector<8x8x128xf32> to vector<64x128xf32>
    %43 = arith.truncf %42 : vector<64x128xf32> to vector<64x128xbf16>
    %c2 = arith.constant 2 : index
    %c0_45 = arith.constant 0 : index
    %c0_46 = arith.constant 0 : index
    %44 = vector.load %arg5[%c2, %c0_45, %c0_46] : memref<9x128x128xbf16, #tpu.memory_space<vmem>>, vector<1x128x128xbf16>
    %45 = vector.shape_cast %44 : vector<1x128x128xbf16> to vector<128x128xbf16>
    %cst_47 = arith.constant dense<0.000000e+00> : vector<64x128xf32>
    %46 = tpu.matmul %43, %45, %cst_47 {dimension_numbers = #tpu.dot_dimension_numbers<[1], [0], [0], [1], [0, 0, 1, 1], [], []>} : vector<64x128xbf16>, vector<128x128xbf16>, vector<64x128xf32> -> vector<64x128xf32>
    %c0_48 = arith.constant 0 : index
    %c0_49 = arith.constant 0 : index
    %47 = vector.load %arg9[%c0_48, %c0_49] : memref<64x128xf32, #tpu.memory_space<vmem>>, vector<64x128xf32>
    %48 = arith.addf %47, %46 : vector<64x128xf32>
    %c0_50 = arith.constant 0 : index
    %c0_51 = arith.constant 0 : index
    %49 = vector.load %arg9[%c0_50, %c0_51] : memref<64x128xf32, #tpu.memory_space<vmem>>, vector<64x128xf32>
    tpu.vector_store %arg9[%c0_50, %c0_51], %48 {strides = array<i32>} : memref<64x128xf32, #tpu.memory_space<vmem>>, vector<64x128xf32>,
    %c1_52 = arith.constant 1 : index
    %c7_53 = arith.constant 7 : index
    %c0_54 = arith.constant 0 : index
    %50 = tpu.strided_load %arg8[%c1_52, %c7_53, %c0_54] {strides = array<i32: 2, 2, 1>} : memref<18x32x128xf32, #tpu.memory_space<vmem>>, vector<8x8x128xf32>
    %51 = vector.shape_cast %50 : vector<8x8x128xf32> to vector<64x128xf32>
    %52 = arith.truncf %51 : vector<64x128xf32> to vector<64x128xbf16>
    %c3 = arith.constant 3 : index
    %c0_55 = arith.constant 0 : index
    %c0_56 = arith.constant 0 : index
    %53 = vector.load %arg5[%c3, %c0_55, %c0_56] : memref<9x128x128xbf16, #tpu.memory_space<vmem>>, vector<1x128x128xbf16>
    %54 = vector.shape_cast %53 : vector<1x128x128xbf16> to vector<128x128xbf16>
    %cst_57 = arith.constant dense<0.000000e+00> : vector<64x128xf32>
    %55 = tpu.matmul %52, %54, %cst_57 {dimension_numbers = #tpu.dot_dimension_numbers<[1], [0], [0], [1], [0, 0, 1, 1], [], []>} : vector<64x128xbf16>, vector<128x128xbf16>, vector<64x128xf32> -> vector<64x128xf32>
    %c0_58 = arith.constant 0 : index
    %c0_59 = arith.constant 0 : index
    %56 = vector.load %arg9[%c0_58, %c0_59] : memref<64x128xf32, #tpu.memory_space<vmem>>, vector<64x128xf32>
    %57 = arith.addf %56, %55 : vector<64x128xf32>
    %c0_60 = arith.constant 0 : index
    %c0_61 = arith.constant 0 : index
    %58 = vector.load %arg9[%c0_60, %c0_61] : memref<64x128xf32, #tpu.memory_space<vmem>>, vector<64x128xf32>
    tpu.vector_store %arg9[%c0_60, %c0_61], %57 {strides = array<i32>} : memref<64x128xf32, #tpu.memory_space<vmem>>, vector<64x128xf32>,
    %c1_62 = arith.constant 1 : index
    %c8_63 = arith.constant 8 : index
    %c0_64 = arith.constant 0 : index
    %59 = tpu.strided_load %arg8[%c1_62, %c8_63, %c0_64] {strides = array<i32: 2, 2, 1>} : memref<18x32x128xf32, #tpu.memory_space<vmem>>, vector<8x8x128xf32>
    %60 = vector.shape_cast %59 : vector<8x8x128xf32> to vector<64x128xf32>
    %61 = arith.truncf %60 : vector<64x128xf32> to vector<64x128xbf16>
    %c4 = arith.constant 4 : index
    %c0_65 = arith.constant 0 : index
    %c0_66 = arith.constant 0 : index
    %62 = vector.load %arg5[%c4, %c0_65, %c0_66] : memref<9x128x128xbf16, #tpu.memory_space<vmem>>, vector<1x128x128xbf16>
    %63 = vector.shape_cast %62 : vector<1x128x128xbf16> to vector<128x128xbf16>
    %cst_67 = arith.constant dense<0.000000e+00> : vector<64x128xf32>
    %64 = tpu.matmul %61, %63, %cst_67 {dimension_numbers = #tpu.dot_dimension_numbers<[1], [0], [0], [1], [0, 0, 1, 1], [], []>} : vector<64x128xbf16>, vector<128x128xbf16>, vector<64x128xf32> -> vector<64x128xf32>
    %c0_68 = arith.constant 0 : index
    %c0_69 = arith.constant 0 : index
    %65 = vector.load %arg9[%c0_68, %c0_69] : memref<64x128xf32, #tpu.memory_space<vmem>>, vector<64x128xf32>
    %66 = arith.addf %65, %64 : vector<64x128xf32>
    %c0_70 = arith.constant 0 : index
    %c0_71 = arith.constant 0 : index
    %67 = vector.load %arg9[%c0_70, %c0_71] : memref<64x128xf32, #tpu.memory_space<vmem>>, vector<64x128xf32>
    tpu.vector_store %arg9[%c0_70, %c0_71], %66 {strides = array<i32>} : memref<64x128xf32, #tpu.memory_space<vmem>>, vector<64x128xf32>,
    %c1_72 = arith.constant 1 : index
    %c9_73 = arith.constant 9 : index
    %c0_74 = arith.constant 0 : index
    %68 = tpu.strided_load %arg8[%c1_72, %c9_73, %c0_74] {strides = array<i32: 2, 2, 1>} : memref<18x32x128xf32, #tpu.memory_space<vmem>>, vector<8x8x128xf32>
    %69 = vector.shape_cast %68 : vector<8x8x128xf32> to vector<64x128xf32>
    %70 = arith.truncf %69 : vector<64x128xf32> to vector<64x128xbf16>
    %c5 = arith.constant 5 : index
    %c0_75 = arith.constant 0 : index
    %c0_76 = arith.constant 0 : index
    %71 = vector.load %arg5[%c5, %c0_75, %c0_76] : memref<9x128x128xbf16, #tpu.memory_space<vmem>>, vector<1x128x128xbf16>
    %72 = vector.shape_cast %71 : vector<1x128x128xbf16> to vector<128x128xbf16>
    %cst_77 = arith.constant dense<0.000000e+00> : vector<64x128xf32>
    %73 = tpu.matmul %70, %72, %cst_77 {dimension_numbers = #tpu.dot_dimension_numbers<[1], [0], [0], [1], [0, 0, 1, 1], [], []>} : vector<64x128xbf16>, vector<128x128xbf16>, vector<64x128xf32> -> vector<64x128xf32>
    %c0_78 = arith.constant 0 : index
    %c0_79 = arith.constant 0 : index
    %74 = vector.load %arg9[%c0_78, %c0_79] : memref<64x128xf32, #tpu.memory_space<vmem>>, vector<64x128xf32>
    %75 = arith.addf %74, %73 : vector<64x128xf32>
    %c0_80 = arith.constant 0 : index
    %c0_81 = arith.constant 0 : index
    %76 = vector.load %arg9[%c0_80, %c0_81] : memref<64x128xf32, #tpu.memory_space<vmem>>, vector<64x128xf32>
    tpu.vector_store %arg9[%c0_80, %c0_81], %75 {strides = array<i32>} : memref<64x128xf32, #tpu.memory_space<vmem>>, vector<64x128xf32>,
    %c2_82 = arith.constant 2 : index
    %c7_83 = arith.constant 7 : index
    %c0_84 = arith.constant 0 : index
    %77 = tpu.strided_load %arg8[%c2_82, %c7_83, %c0_84] {strides = array<i32: 2, 2, 1>} : memref<18x32x128xf32, #tpu.memory_space<vmem>>, vector<8x8x128xf32>
    %78 = vector.shape_cast %77 : vector<8x8x128xf32> to vector<64x128xf32>
    %79 = arith.truncf %78 : vector<64x128xf32> to vector<64x128xbf16>
    %c6 = arith.constant 6 : index
    %c0_85 = arith.constant 0 : index
    %c0_86 = arith.constant 0 : index
    %80 = vector.load %arg5[%c6, %c0_85, %c0_86] : memref<9x128x128xbf16, #tpu.memory_space<vmem>>, vector<1x128x128xbf16>
    %81 = vector.shape_cast %80 : vector<1x128x128xbf16> to vector<128x128xbf16>
    %cst_87 = arith.constant dense<0.000000e+00> : vector<64x128xf32>
    %82 = tpu.matmul %79, %81, %cst_87 {dimension_numbers = #tpu.dot_dimension_numbers<[1], [0], [0], [1], [0, 0, 1, 1], [], []>} : vector<64x128xbf16>, vector<128x128xbf16>, vector<64x128xf32> -> vector<64x128xf32>
    %c0_88 = arith.constant 0 : index
    %c0_89 = arith.constant 0 : index
    %83 = vector.load %arg9[%c0_88, %c0_89] : memref<64x128xf32, #tpu.memory_space<vmem>>, vector<64x128xf32>
    %84 = arith.addf %83, %82 : vector<64x128xf32>
    %c0_90 = arith.constant 0 : index
    %c0_91 = arith.constant 0 : index
    %85 = vector.load %arg9[%c0_90, %c0_91] : memref<64x128xf32, #tpu.memory_space<vmem>>, vector<64x128xf32>
    tpu.vector_store %arg9[%c0_90, %c0_91], %84 {strides = array<i32>} : memref<64x128xf32, #tpu.memory_space<vmem>>, vector<64x128xf32>,
    %c2_92 = arith.constant 2 : index
    %c8_93 = arith.constant 8 : index
    %c0_94 = arith.constant 0 : index
    %86 = tpu.strided_load %arg8[%c2_92, %c8_93, %c0_94] {strides = array<i32: 2, 2, 1>} : memref<18x32x128xf32, #tpu.memory_space<vmem>>, vector<8x8x128xf32>
    %87 = vector.shape_cast %86 : vector<8x8x128xf32> to vector<64x128xf32>
    %88 = arith.truncf %87 : vector<64x128xf32> to vector<64x128xbf16>
    %c7_95 = arith.constant 7 : index
    %c0_96 = arith.constant 0 : index
    %c0_97 = arith.constant 0 : index
    %89 = vector.load %arg5[%c7_95, %c0_96, %c0_97] : memref<9x128x128xbf16, #tpu.memory_space<vmem>>, vector<1x128x128xbf16>
    %90 = vector.shape_cast %89 : vector<1x128x128xbf16> to vector<128x128xbf16>
    %cst_98 = arith.constant dense<0.000000e+00> : vector<64x128xf32>
    %91 = tpu.matmul %88, %90, %cst_98 {dimension_numbers = #tpu.dot_dimension_numbers<[1], [0], [0], [1], [0, 0, 1, 1], [], []>} : vector<64x128xbf16>, vector<128x128xbf16>, vector<64x128xf32> -> vector<64x128xf32>
    %c0_99 = arith.constant 0 : index
    %c0_100 = arith.constant 0 : index
    %92 = vector.load %arg9[%c0_99, %c0_100] : memref<64x128xf32, #tpu.memory_space<vmem>>, vector<64x128xf32>
    %93 = arith.addf %92, %91 : vector<64x128xf32>
    %c0_101 = arith.constant 0 : index
    %c0_102 = arith.constant 0 : index
    %94 = vector.load %arg9[%c0_101, %c0_102] : memref<64x128xf32, #tpu.memory_space<vmem>>, vector<64x128xf32>
    tpu.vector_store %arg9[%c0_101, %c0_102], %93 {strides = array<i32>} : memref<64x128xf32, #tpu.memory_space<vmem>>, vector<64x128xf32>,
    %c2_103 = arith.constant 2 : index
    %c9_104 = arith.constant 9 : index
    %c0_105 = arith.constant 0 : index
    %95 = tpu.strided_load %arg8[%c2_103, %c9_104, %c0_105] {strides = array<i32: 2, 2, 1>} : memref<18x32x128xf32, #tpu.memory_space<vmem>>, vector<8x8x128xf32>
    %96 = vector.shape_cast %95 : vector<8x8x128xf32> to vector<64x128xf32>
    %97 = arith.truncf %96 : vector<64x128xf32> to vector<64x128xbf16>
    %c8_106 = arith.constant 8 : index
    %c0_107 = arith.constant 0 : index
    %c0_108 = arith.constant 0 : index
    %98 = vector.load %arg5[%c8_106, %c0_107, %c0_108] : memref<9x128x128xbf16, #tpu.memory_space<vmem>>, vector<1x128x128xbf16>
    %99 = vector.shape_cast %98 : vector<1x128x128xbf16> to vector<128x128xbf16>
    %cst_109 = arith.constant dense<0.000000e+00> : vector<64x128xf32>
    %100 = tpu.matmul %97, %99, %cst_109 {dimension_numbers = #tpu.dot_dimension_numbers<[1], [0], [0], [1], [0, 0, 1, 1], [], []>} : vector<64x128xbf16>, vector<128x128xbf16>, vector<64x128xf32> -> vector<64x128xf32>
    %c0_110 = arith.constant 0 : index
    %c0_111 = arith.constant 0 : index
    %101 = vector.load %arg9[%c0_110, %c0_111] : memref<64x128xf32, #tpu.memory_space<vmem>>, vector<64x128xf32>
    %102 = arith.addf %101, %100 : vector<64x128xf32>
    %c0_112 = arith.constant 0 : index
    %c0_113 = arith.constant 0 : index
    %103 = vector.load %arg9[%c0_112, %c0_113] : memref<64x128xf32, #tpu.memory_space<vmem>>, vector<64x128xf32>
    tpu.vector_store %arg9[%c0_112, %c0_113], %102 {strides = array<i32>} : memref<64x128xf32, #tpu.memory_space<vmem>>, vector<64x128xf32>,
    %c0_114 = arith.constant 0 : index
    %c0_115 = arith.constant 0 : index
    %104 = vector.load %arg9[%c0_114, %c0_115] : memref<64x128xf32, #tpu.memory_space<vmem>>, vector<64x128xf32>
    %105 = vector.shape_cast %104 : vector<64x128xf32> to vector<1x8x8x128xf32>
    %c0_116 = arith.constant 0 : index
    %c0_117 = arith.constant 0 : index
    %c0_118 = arith.constant 0 : index
    %c0_119 = arith.constant 0 : index
    %106 = vector.load %arg6[%c0_116, %c0_117, %c0_118, %c0_119] : memref<1x8x8x128xf32, #tpu.memory_space<vmem>>, vector<1x8x8x128xf32>
    tpu.vector_store %arg6[%c0_116, %c0_117, %c0_118, %c0_119], %105 {strides = array<i32>} : memref<1x8x8x128xf32, #tpu.memory_space<vmem>>, vector<1x8x8x128xf32>,
    %cst_120 = arith.constant dense<0.000000e+00> : vector<128xf32>
    %107 = vector.multi_reduction <add>, %104, %cst_120 [0] : vector<64x128xf32> to vector<128xf32>
    %108 = vector.shape_cast %107 : vector<128xf32> to vector<1x128xf32>
    %109 = arith.mulf %104, %104 : vector<64x128xf32>
    %cst_121 = arith.constant dense<0.000000e+00> : vector<128xf32>
    %110 = vector.multi_reduction <add>, %109, %cst_121 [0] : vector<64x128xf32> to vector<128xf32>
    %111 = vector.shape_cast %110 : vector<128xf32> to vector<1x128xf32>
    %112 = tpu.concatenate %108, %111 in 0 : vector<1x128xf32>, vector<1x128xf32> -> vector<2x128xf32>
    %113 = vector.shape_cast %112 : vector<2x128xf32> to vector<1x2x128xf32>
    %c0_122 = arith.constant 0 : index
    %c0_123 = arith.constant 0 : index
    %c0_124 = arith.constant 0 : index
    %114 = vector.load %arg7[%c0_122, %c0_123, %c0_124] : memref<1x2x128xf32, #tpu.memory_space<vmem>>, vector<1x2x128xf32>
    tpu.vector_store %arg7[%c0_122, %c0_123, %c0_124], %113 {strides = array<i32>} : memref<1x2x128xf32, #tpu.memory_space<vmem>>, vector<1x2x128xf32>,
    return
  }
  func.func @transform_0(%arg0: i32) -> (i32, i32, i32, i32) {
    %c0_i32 = arith.constant 0 : i32
    %c0_i32_0 = arith.constant 0 : i32
    %c0_i32_1 = arith.constant 0 : i32
    %c0_i32_2 = arith.constant 0 : i32
    return %arg0, %c0_i32, %c0_i32_0, %c0_i32_1 : i32, i32, i32, i32
  }
  func.func @transform_1(%arg0: i32) -> (i32, i32) {
    %c0_i32 = arith.constant 0 : i32
    %c0_i32_0 = arith.constant 0 : i32
    %c0_i32_1 = arith.constant 0 : i32
    return %c0_i32, %c0_i32_0 : i32, i32
  }
  func.func @transform_2(%arg0: i32) -> (i32, i32) {
    %c0_i32 = arith.constant 0 : i32
    %c0_i32_0 = arith.constant 0 : i32
    %c0_i32_1 = arith.constant 0 : i32
    return %c0_i32, %c0_i32_0 : i32, i32
  }
  func.func @transform_3(%arg0: i32) -> (i32, i32) {
    %c0_i32 = arith.constant 0 : i32
    %c0_i32_0 = arith.constant 0 : i32
    %c0_i32_1 = arith.constant 0 : i32
    return %c0_i32, %c0_i32_0 : i32, i32
  }
  func.func @transform_4(%arg0: i32) -> (i32, i32, i32) {
    %c0_i32 = arith.constant 0 : i32
    %c0_i32_0 = arith.constant 0 : i32
    %c0_i32_1 = arith.constant 0 : i32
    %c0_i32_2 = arith.constant 0 : i32
    return %c0_i32, %c0_i32_0, %c0_i32_1 : i32, i32, i32
  }
  func.func @transform_5(%arg0: i32) -> (i32, i32, i32, i32) {
    %c0_i32 = arith.constant 0 : i32
    %c0_i32_0 = arith.constant 0 : i32
    %c0_i32_1 = arith.constant 0 : i32
    %c0_i32_2 = arith.constant 0 : i32
    return %arg0, %c0_i32, %c0_i32_0, %c0_i32_1 : i32, i32, i32, i32
  }
  func.func @transform_6(%arg0: i32) -> (i32, i32, i32) {
    %c0_i32 = arith.constant 0 : i32
    %c0_i32_0 = arith.constant 0 : i32
    %c0_i32_1 = arith.constant 0 : i32
    return %arg0, %c0_i32, %c0_i32_0 : i32, i32, i32
  }
}

module attributes {stable_mosaic.version = 11 : i64} {
  func.func @_mm_stats_kernel(%arg0: i32, %arg1: memref<128x128xf32, #tpu.memory_space<vmem>>, %arg2: memref<128x128xbf16, #tpu.memory_space<vmem>>, %arg3: memref<2x128xf32, #tpu.memory_space<vmem>>, %arg4: memref<1x128xf32, #tpu.memory_space<vmem>>, %arg5: memref<1x128xf32, #tpu.memory_space<vmem>>, %arg6: memref<128x128xf32, #tpu.memory_space<vmem>>, %arg7: memref<1x2x128xf32, #tpu.memory_space<vmem>>) attributes {dimension_semantics = [#tpu.dimension_semantics<parallel>], iteration_bounds = array<i64: 1>, scalar_prefetch = 0 : i64, scratch_operands = 0 : i64, tpu.core_type = #tpu.core_type<tc>, window_params = [{transform_indices = @transform_0, window_bounds = array<i64: 128, 128>}, {pipeline_mode = #tpu.pipeline_mode<synchronous>, transform_indices = @transform_1, window_bounds = array<i64: 128, 128>}, {pipeline_mode = #tpu.pipeline_mode<synchronous>, transform_indices = @transform_2, window_bounds = array<i64: 2, 128>}, {pipeline_mode = #tpu.pipeline_mode<synchronous>, transform_indices = @transform_3, window_bounds = array<i64: 1, 128>}, {pipeline_mode = #tpu.pipeline_mode<synchronous>, transform_indices = @transform_4, window_bounds = array<i64: 1, 128>}, {transform_indices = @transform_5, window_bounds = array<i64: 128, 128>}, {transform_indices = @transform_6, window_bounds = array<i64: 1, 2, 128>}]} {
    %c0 = arith.constant 0 : index
    %c0_0 = arith.constant 0 : index
    %0 = vector.load %arg1[%c0, %c0_0] : memref<128x128xf32, #tpu.memory_space<vmem>>, vector<128x128xf32>
    %c0_1 = arith.constant 0 : index
    %c0_2 = arith.constant 0 : index
    %1 = vector.load %arg3[%c0_1, %c0_2] : memref<2x128xf32, #tpu.memory_space<vmem>>, vector<1x128xf32>
    %2 = vector.broadcast %1 : vector<1x128xf32> to vector<128x128xf32>
    %3 = arith.subf %0, %2 : vector<128x128xf32>
    %c1 = arith.constant 1 : index
    %c0_3 = arith.constant 0 : index
    %4 = vector.load %arg3[%c1, %c0_3] : memref<2x128xf32, #tpu.memory_space<vmem>>, vector<1x128xf32>
    %c0_4 = arith.constant 0 : index
    %c0_5 = arith.constant 0 : index
    %5 = vector.load %arg4[%c0_4, %c0_5] : memref<1x128xf32, #tpu.memory_space<vmem>>, vector<1x128xf32>
    %6 = arith.mulf %4, %5 : vector<1x128xf32>
    %7 = vector.broadcast %6 : vector<1x128xf32> to vector<128x128xf32>
    %8 = arith.mulf %3, %7 : vector<128x128xf32>
    %c0_6 = arith.constant 0 : index
    %c0_7 = arith.constant 0 : index
    %9 = vector.load %arg5[%c0_6, %c0_7] : memref<1x128xf32, #tpu.memory_space<vmem>>, vector<1x128xf32>
    %10 = vector.broadcast %9 : vector<1x128xf32> to vector<128x128xf32>
    %11 = arith.addf %8, %10 : vector<128x128xf32>
    %12 = arith.truncf %11 : vector<128x128xf32> to vector<128x128xbf16>
    %c0_8 = arith.constant 0 : index
    %c0_9 = arith.constant 0 : index
    %13 = vector.load %arg2[%c0_8, %c0_9] : memref<128x128xbf16, #tpu.memory_space<vmem>>, vector<128x128xbf16>
    %cst = arith.constant dense<0.000000e+00> : vector<128x128xf32>
    %14 = tpu.matmul %12, %13, %cst {dimension_numbers = #tpu.dot_dimension_numbers<[1], [0], [0], [1], [0, 0, 1, 1], [], []>} : vector<128x128xbf16>, vector<128x128xbf16>, vector<128x128xf32> -> vector<128x128xf32>
    %c0_10 = arith.constant 0 : index
    %c0_11 = arith.constant 0 : index
    %15 = vector.load %arg6[%c0_10, %c0_11] : memref<128x128xf32, #tpu.memory_space<vmem>>, vector<128x128xf32>
    tpu.vector_store %arg6[%c0_10, %c0_11], %14 {strides = array<i32>} : memref<128x128xf32, #tpu.memory_space<vmem>>, vector<128x128xf32>,
    %cst_12 = arith.constant dense<0.000000e+00> : vector<128xf32>
    %16 = vector.multi_reduction <add>, %14, %cst_12 [0] : vector<128x128xf32> to vector<128xf32>
    %17 = vector.shape_cast %16 : vector<128xf32> to vector<1x128xf32>
    %18 = arith.mulf %14, %14 : vector<128x128xf32>
    %cst_13 = arith.constant dense<0.000000e+00> : vector<128xf32>
    %19 = vector.multi_reduction <add>, %18, %cst_13 [0] : vector<128x128xf32> to vector<128xf32>
    %20 = vector.shape_cast %19 : vector<128xf32> to vector<1x128xf32>
    %21 = tpu.concatenate %17, %20 in 0 : vector<1x128xf32>, vector<1x128xf32> -> vector<2x128xf32>
    %22 = vector.shape_cast %21 : vector<2x128xf32> to vector<1x2x128xf32>
    %c0_14 = arith.constant 0 : index
    %c0_15 = arith.constant 0 : index
    %c0_16 = arith.constant 0 : index
    %23 = vector.load %arg7[%c0_14, %c0_15, %c0_16] : memref<1x2x128xf32, #tpu.memory_space<vmem>>, vector<1x2x128xf32>
    tpu.vector_store %arg7[%c0_14, %c0_15, %c0_16], %22 {strides = array<i32>} : memref<1x2x128xf32, #tpu.memory_space<vmem>>, vector<1x2x128xf32>,
    return
  }
  func.func @transform_0(%arg0: i32) -> (i32, i32) {
    %c0_i32 = arith.constant 0 : i32
    %c0_i32_0 = arith.constant 0 : i32
    return %arg0, %c0_i32 : i32, i32
  }
  func.func @transform_1(%arg0: i32) -> (i32, i32) {
    %c0_i32 = arith.constant 0 : i32
    %c0_i32_0 = arith.constant 0 : i32
    %c0_i32_1 = arith.constant 0 : i32
    return %c0_i32, %c0_i32_0 : i32, i32
  }
  func.func @transform_2(%arg0: i32) -> (i32, i32) {
    %c0_i32 = arith.constant 0 : i32
    %c0_i32_0 = arith.constant 0 : i32
    %c0_i32_1 = arith.constant 0 : i32
    return %c0_i32, %c0_i32_0 : i32, i32
  }
  func.func @transform_3(%arg0: i32) -> (i32, i32) {
    %c0_i32 = arith.constant 0 : i32
    %c0_i32_0 = arith.constant 0 : i32
    %c0_i32_1 = arith.constant 0 : i32
    return %c0_i32, %c0_i32_0 : i32, i32
  }
  func.func @transform_4(%arg0: i32) -> (i32, i32) {
    %c0_i32 = arith.constant 0 : i32
    %c0_i32_0 = arith.constant 0 : i32
    %c0_i32_1 = arith.constant 0 : i32
    return %c0_i32, %c0_i32_0 : i32, i32
  }
  func.func @transform_5(%arg0: i32) -> (i32, i32) {
    %c0_i32 = arith.constant 0 : i32
    %c0_i32_0 = arith.constant 0 : i32
    return %arg0, %c0_i32 : i32, i32
  }
  func.func @transform_6(%arg0: i32) -> (i32, i32, i32) {
    %c0_i32 = arith.constant 0 : i32
    %c0_i32_0 = arith.constant 0 : i32
    %c0_i32_1 = arith.constant 0 : i32
    return %arg0, %c0_i32, %c0_i32_0 : i32, i32, i32
  }
}

module attributes {stable_mosaic.version = 11 : i64} {
  func.func @_squeeze_kernel(%arg0: i32, %arg1: i32, %arg2: memref<1x64x128xf32, #tpu.memory_space<vmem>>, %arg3: memref<2x128xf32, #tpu.memory_space<vmem>>, %arg4: memref<1x128xf32, #tpu.memory_space<vmem>>, %arg5: memref<1x128xf32, #tpu.memory_space<vmem>>, %arg6: memref<1x1x1x128xf32, #tpu.memory_space<vmem>>) attributes {dimension_semantics = [#tpu.dimension_semantics<parallel>, #tpu.dimension_semantics<parallel>], iteration_bounds = array<i64: 2, 1>, scalar_prefetch = 0 : i64, scratch_operands = 0 : i64, tpu.core_type = #tpu.core_type<tc>, window_params = [{transform_indices = @transform_0, window_bounds = array<i64: 1, 64, 128>}, {pipeline_mode = #tpu.pipeline_mode<synchronous>, transform_indices = @transform_1, window_bounds = array<i64: 2, 128>}, {pipeline_mode = #tpu.pipeline_mode<synchronous>, transform_indices = @transform_2, window_bounds = array<i64: 1, 128>}, {pipeline_mode = #tpu.pipeline_mode<synchronous>, transform_indices = @transform_3, window_bounds = array<i64: 1, 128>}, {transform_indices = @transform_4, window_bounds = array<i64: 1, 1, 1, 128>}]} {
    %c0 = arith.constant 0 : index
    %c0_0 = arith.constant 0 : index
    %c0_1 = arith.constant 0 : index
    %0 = vector.load %arg2[%c0, %c0_0, %c0_1] : memref<1x64x128xf32, #tpu.memory_space<vmem>>, vector<1x64x128xf32>
    %1 = vector.shape_cast %0 : vector<1x64x128xf32> to vector<64x128xf32>
    %c0_2 = arith.constant 0 : index
    %c0_3 = arith.constant 0 : index
    %2 = vector.load %arg3[%c0_2, %c0_3] : memref<2x128xf32, #tpu.memory_space<vmem>>, vector<1x128xf32>
    %3 = vector.broadcast %2 : vector<1x128xf32> to vector<64x128xf32>
    %4 = arith.subf %1, %3 : vector<64x128xf32>
    %c1 = arith.constant 1 : index
    %c0_4 = arith.constant 0 : index
    %5 = vector.load %arg3[%c1, %c0_4] : memref<2x128xf32, #tpu.memory_space<vmem>>, vector<1x128xf32>
    %c0_5 = arith.constant 0 : index
    %c0_6 = arith.constant 0 : index
    %6 = vector.load %arg4[%c0_5, %c0_6] : memref<1x128xf32, #tpu.memory_space<vmem>>, vector<1x128xf32>
    %7 = arith.mulf %5, %6 : vector<1x128xf32>
    %8 = vector.broadcast %7 : vector<1x128xf32> to vector<64x128xf32>
    %9 = arith.mulf %4, %8 : vector<64x128xf32>
    %c0_7 = arith.constant 0 : index
    %c0_8 = arith.constant 0 : index
    %10 = vector.load %arg5[%c0_7, %c0_8] : memref<1x128xf32, #tpu.memory_space<vmem>>, vector<1x128xf32>
    %11 = vector.broadcast %10 : vector<1x128xf32> to vector<64x128xf32>
    %12 = arith.addf %9, %11 : vector<64x128xf32>
    %cst = arith.constant 0.000000e+00 : f32
    %13 = vector.broadcast %cst : f32 to vector<64x128xf32>
    %14 = arith.maximumf %12, %13 : vector<64x128xf32>
    %cst_9 = arith.constant dense<0.000000e+00> : vector<128xf32>
    %15 = vector.multi_reduction <add>, %14, %cst_9 [0] : vector<64x128xf32> to vector<128xf32>
    %16 = vector.shape_cast %15 : vector<128xf32> to vector<1x128xf32>
    %17 = vector.shape_cast %16 : vector<1x128xf32> to vector<1x1x1x128xf32>
    %c0_10 = arith.constant 0 : index
    %c0_11 = arith.constant 0 : index
    %c0_12 = arith.constant 0 : index
    %c0_13 = arith.constant 0 : index
    %18 = vector.load %arg6[%c0_10, %c0_11, %c0_12, %c0_13] : memref<1x1x1x128xf32, #tpu.memory_space<vmem>>, vector<1x1x1x128xf32>
    tpu.vector_store %arg6[%c0_10, %c0_11, %c0_12, %c0_13], %17 {strides = array<i32>} : memref<1x1x1x128xf32, #tpu.memory_space<vmem>>, vector<1x1x1x128xf32>,
    return
  }
  func.func @transform_0(%arg0: i32, %arg1: i32) -> (i32, i32, i32) {
    %c0_i32 = arith.constant 0 : i32
    %c0_i32_0 = arith.constant 0 : i32
    return %arg0, %arg1, %c0_i32 : i32, i32, i32
  }
  func.func @transform_1(%arg0: i32, %arg1: i32) -> (i32, i32) {
    %c0_i32 = arith.constant 0 : i32
    %c0_i32_0 = arith.constant 0 : i32
    %c0_i32_1 = arith.constant 0 : i32
    return %c0_i32, %c0_i32_0 : i32, i32
  }
  func.func @transform_2(%arg0: i32, %arg1: i32) -> (i32, i32) {
    %c0_i32 = arith.constant 0 : i32
    %c0_i32_0 = arith.constant 0 : i32
    %c0_i32_1 = arith.constant 0 : i32
    return %c0_i32, %c0_i32_0 : i32, i32
  }
  func.func @transform_3(%arg0: i32, %arg1: i32) -> (i32, i32) {
    %c0_i32 = arith.constant 0 : i32
    %c0_i32_0 = arith.constant 0 : i32
    %c0_i32_1 = arith.constant 0 : i32
    return %c0_i32, %c0_i32_0 : i32, i32
  }
  func.func @transform_4(%arg0: i32, %arg1: i32) -> (i32, i32, i32, i32) {
    %c0_i32 = arith.constant 0 : i32
    %c0_i32_0 = arith.constant 0 : i32
    %c0_i32_1 = arith.constant 0 : i32
    return %arg0, %arg1, %c0_i32, %c0_i32_0 : i32, i32, i32, i32
  }
}

module attributes {stable_mosaic.version = 11 : i64} {
  func.func @_epilogue_kernel(%arg0: i32, %arg1: i32, %arg2: memref<1x64x128xf32, #tpu.memory_space<vmem>>, %arg3: memref<2x128xf32, #tpu.memory_space<vmem>>, %arg4: memref<1x128xf32, #tpu.memory_space<vmem>>, %arg5: memref<1x128xf32, #tpu.memory_space<vmem>>, %arg6: memref<1x64x128xf32, #tpu.memory_space<vmem>>, %arg7: memref<2x128xf32, #tpu.memory_space<vmem>>, %arg8: memref<1x128xf32, #tpu.memory_space<vmem>>, %arg9: memref<1x128xf32, #tpu.memory_space<vmem>>, %arg10: memref<1x1x128xf32, #tpu.memory_space<vmem>>, %arg11: memref<1x64x128xf32, #tpu.memory_space<vmem>>) attributes {dimension_semantics = [#tpu.dimension_semantics<parallel>, #tpu.dimension_semantics<parallel>], iteration_bounds = array<i64: 2, 1>, scalar_prefetch = 0 : i64, scratch_operands = 0 : i64, tpu.core_type = #tpu.core_type<tc>, window_params = [{transform_indices = @transform_0, window_bounds = array<i64: 1, 64, 128>}, {pipeline_mode = #tpu.pipeline_mode<synchronous>, transform_indices = @transform_1, window_bounds = array<i64: 2, 128>}, {pipeline_mode = #tpu.pipeline_mode<synchronous>, transform_indices = @transform_2, window_bounds = array<i64: 1, 128>}, {pipeline_mode = #tpu.pipeline_mode<synchronous>, transform_indices = @transform_3, window_bounds = array<i64: 1, 128>}, {transform_indices = @transform_4, window_bounds = array<i64: 1, 64, 128>}, {pipeline_mode = #tpu.pipeline_mode<synchronous>, transform_indices = @transform_5, window_bounds = array<i64: 2, 128>}, {pipeline_mode = #tpu.pipeline_mode<synchronous>, transform_indices = @transform_6, window_bounds = array<i64: 1, 128>}, {pipeline_mode = #tpu.pipeline_mode<synchronous>, transform_indices = @transform_7, window_bounds = array<i64: 1, 128>}, {transform_indices = @transform_8, window_bounds = array<i64: 1, 1, 128>}, {transform_indices = @transform_9, window_bounds = array<i64: 1, 64, 128>}]} {
    %c0 = arith.constant 0 : index
    %c0_0 = arith.constant 0 : index
    %c0_1 = arith.constant 0 : index
    %0 = vector.load %arg2[%c0, %c0_0, %c0_1] : memref<1x64x128xf32, #tpu.memory_space<vmem>>, vector<1x64x128xf32>
    %1 = vector.shape_cast %0 : vector<1x64x128xf32> to vector<64x128xf32>
    %c0_2 = arith.constant 0 : index
    %c0_3 = arith.constant 0 : index
    %2 = vector.load %arg3[%c0_2, %c0_3] : memref<2x128xf32, #tpu.memory_space<vmem>>, vector<1x128xf32>
    %3 = vector.broadcast %2 : vector<1x128xf32> to vector<64x128xf32>
    %4 = arith.subf %1, %3 : vector<64x128xf32>
    %c1 = arith.constant 1 : index
    %c0_4 = arith.constant 0 : index
    %5 = vector.load %arg3[%c1, %c0_4] : memref<2x128xf32, #tpu.memory_space<vmem>>, vector<1x128xf32>
    %c0_5 = arith.constant 0 : index
    %c0_6 = arith.constant 0 : index
    %6 = vector.load %arg4[%c0_5, %c0_6] : memref<1x128xf32, #tpu.memory_space<vmem>>, vector<1x128xf32>
    %7 = arith.mulf %5, %6 : vector<1x128xf32>
    %8 = vector.broadcast %7 : vector<1x128xf32> to vector<64x128xf32>
    %9 = arith.mulf %4, %8 : vector<64x128xf32>
    %c0_7 = arith.constant 0 : index
    %c0_8 = arith.constant 0 : index
    %10 = vector.load %arg5[%c0_7, %c0_8] : memref<1x128xf32, #tpu.memory_space<vmem>>, vector<1x128xf32>
    %11 = vector.broadcast %10 : vector<1x128xf32> to vector<64x128xf32>
    %12 = arith.addf %9, %11 : vector<64x128xf32>
    %cst = arith.constant 0.000000e+00 : f32
    %13 = vector.broadcast %cst : f32 to vector<64x128xf32>
    %14 = arith.maximumf %12, %13 : vector<64x128xf32>
    %c0_9 = arith.constant 0 : index
    %c0_10 = arith.constant 0 : index
    %c0_11 = arith.constant 0 : index
    %15 = vector.load %arg6[%c0_9, %c0_10, %c0_11] : memref<1x64x128xf32, #tpu.memory_space<vmem>>, vector<1x64x128xf32>
    %16 = vector.shape_cast %15 : vector<1x64x128xf32> to vector<64x128xf32>
    %c0_12 = arith.constant 0 : index
    %c0_13 = arith.constant 0 : index
    %17 = vector.load %arg7[%c0_12, %c0_13] : memref<2x128xf32, #tpu.memory_space<vmem>>, vector<1x128xf32>
    %18 = vector.broadcast %17 : vector<1x128xf32> to vector<64x128xf32>
    %19 = arith.subf %16, %18 : vector<64x128xf32>
    %c1_14 = arith.constant 1 : index
    %c0_15 = arith.constant 0 : index
    %20 = vector.load %arg7[%c1_14, %c0_15] : memref<2x128xf32, #tpu.memory_space<vmem>>, vector<1x128xf32>
    %c0_16 = arith.constant 0 : index
    %c0_17 = arith.constant 0 : index
    %21 = vector.load %arg8[%c0_16, %c0_17] : memref<1x128xf32, #tpu.memory_space<vmem>>, vector<1x128xf32>
    %22 = arith.mulf %20, %21 : vector<1x128xf32>
    %23 = vector.broadcast %22 : vector<1x128xf32> to vector<64x128xf32>
    %24 = arith.mulf %19, %23 : vector<64x128xf32>
    %c0_18 = arith.constant 0 : index
    %c0_19 = arith.constant 0 : index
    %25 = vector.load %arg9[%c0_18, %c0_19] : memref<1x128xf32, #tpu.memory_space<vmem>>, vector<1x128xf32>
    %26 = vector.broadcast %25 : vector<1x128xf32> to vector<64x128xf32>
    %27 = arith.addf %24, %26 : vector<64x128xf32>
    %c0_20 = arith.constant 0 : index
    %c0_21 = arith.constant 0 : index
    %c0_22 = arith.constant 0 : index
    %28 = vector.load %arg10[%c0_20, %c0_21, %c0_22] : memref<1x1x128xf32, #tpu.memory_space<vmem>>, vector<1x1x128xf32>
    %29 = vector.shape_cast %28 : vector<1x1x128xf32> to vector<1x128xf32>
    %30 = vector.broadcast %29 : vector<1x128xf32> to vector<64x128xf32>
    %31 = arith.mulf %14, %30 : vector<64x128xf32>
    %32 = arith.addf %31, %27 : vector<64x128xf32>
    %cst_23 = arith.constant 0.000000e+00 : f32
    %33 = vector.broadcast %cst_23 : f32 to vector<64x128xf32>
    %34 = arith.maximumf %32, %33 : vector<64x128xf32>
    %35 = vector.shape_cast %34 : vector<64x128xf32> to vector<1x64x128xf32>
    %c0_24 = arith.constant 0 : index
    %c0_25 = arith.constant 0 : index
    %c0_26 = arith.constant 0 : index
    %36 = vector.load %arg11[%c0_24, %c0_25, %c0_26] : memref<1x64x128xf32, #tpu.memory_space<vmem>>, vector<1x64x128xf32>
    tpu.vector_store %arg11[%c0_24, %c0_25, %c0_26], %35 {strides = array<i32>} : memref<1x64x128xf32, #tpu.memory_space<vmem>>, vector<1x64x128xf32>,
    return
  }
  func.func @transform_0(%arg0: i32, %arg1: i32) -> (i32, i32, i32) {
    %c0_i32 = arith.constant 0 : i32
    %c0_i32_0 = arith.constant 0 : i32
    return %arg0, %arg1, %c0_i32 : i32, i32, i32
  }
  func.func @transform_1(%arg0: i32, %arg1: i32) -> (i32, i32) {
    %c0_i32 = arith.constant 0 : i32
    %c0_i32_0 = arith.constant 0 : i32
    %c0_i32_1 = arith.constant 0 : i32
    return %c0_i32, %c0_i32_0 : i32, i32
  }
  func.func @transform_2(%arg0: i32, %arg1: i32) -> (i32, i32) {
    %c0_i32 = arith.constant 0 : i32
    %c0_i32_0 = arith.constant 0 : i32
    %c0_i32_1 = arith.constant 0 : i32
    return %c0_i32, %c0_i32_0 : i32, i32
  }
  func.func @transform_3(%arg0: i32, %arg1: i32) -> (i32, i32) {
    %c0_i32 = arith.constant 0 : i32
    %c0_i32_0 = arith.constant 0 : i32
    %c0_i32_1 = arith.constant 0 : i32
    return %c0_i32, %c0_i32_0 : i32, i32
  }
  func.func @transform_4(%arg0: i32, %arg1: i32) -> (i32, i32, i32) {
    %c0_i32 = arith.constant 0 : i32
    %c0_i32_0 = arith.constant 0 : i32
    return %arg0, %arg1, %c0_i32 : i32, i32, i32
  }
  func.func @transform_5(%arg0: i32, %arg1: i32) -> (i32, i32) {
    %c0_i32 = arith.constant 0 : i32
    %c0_i32_0 = arith.constant 0 : i32
    %c0_i32_1 = arith.constant 0 : i32
    return %c0_i32, %c0_i32_0 : i32, i32
  }
  func.func @transform_6(%arg0: i32, %arg1: i32) -> (i32, i32) {
    %c0_i32 = arith.constant 0 : i32
    %c0_i32_0 = arith.constant 0 : i32
    %c0_i32_1 = arith.constant 0 : i32
    return %c0_i32, %c0_i32_0 : i32, i32
  }
  func.func @transform_7(%arg0: i32, %arg1: i32) -> (i32, i32) {
    %c0_i32 = arith.constant 0 : i32
    %c0_i32_0 = arith.constant 0 : i32
    %c0_i32_1 = arith.constant 0 : i32
    return %c0_i32, %c0_i32_0 : i32, i32
  }
  func.func @transform_8(%arg0: i32, %arg1: i32) -> (i32, i32, i32) {
    %c0_i32 = arith.constant 0 : i32
    %c0_i32_0 = arith.constant 0 : i32
    %c0_i32_1 = arith.constant 0 : i32
    return %arg0, %c0_i32, %c0_i32_0 : i32, i32, i32
  }
  func.func @transform_9(%arg0: i32, %arg1: i32) -> (i32, i32, i32) {
    %c0_i32 = arith.constant 0 : i32
    %c0_i32_0 = arith.constant 0 : i32
    return %arg0, %arg1, %c0_i32 : i32, i32, i32
  }
}

</mosaic_0001>

<bundles_post_ra>
// kernel: bottleneck_se_forward.6
= control target key start
LH: loop header
LB: loop body
LE: loop exit
PB: predicated region body
PF: predicated region fallthrough
CT: control target
= control target key end

     0   :  { %v159_v1 = vlaneseq  ;;  %vm949_vm0 = vcmask 1040384   ;;  %s2112_s1 = inlined_call_operand.vmem [shape: bf16[128,128], index: 1, kind: input, shape index: {}]   ;;  %s2113_s0 = inlined_call_operand.vmem [shape: f32[512,128], index: 0, kind: input, shape index: {}]   ;;  %s2114_s2 = inlined_call_operand.vmem [shape: f32[2,128], index: 2, kind: input, shape index: {}]   ;;  %s2115_s3 = inlined_call_operand.vmem [shape: f32[1,128], index: 3, kind: input, shape index: {}]   ;;  %s2116_s4 = inlined_call_operand.vmem [shape: f32[1,128], index: 4, kind: input, shape index: {}]   ;;  %s2117_s5 = inlined_call_operand.vmem [shape: f32[512,128], index: 5, kind: output, shape index: {0}]   ;;  %s2118_s6 = inlined_call_operand.vmem [shape: f32[1,2,128], index: 6, kind: output, shape index: {1}]  }
   0x1   :  { %v1106_v0 = vld [vmem:[%s2112_s1] sm:$0xff]   ;;  %v1107_v2 = vld [vmem:[%s2112_s1 + $0x8] sm:$0xff]   ;;  %v1108_v3 = vld [vmem:[%s2112_s1 + $0x10] sm:$0xff]  }
   0x2   :  { %1010 = vmatprep.subr.bf16.mxu0 %v1106_v0  ;;  %1090 = vmatprep.subr.bf16.mxu1 %v1106_v0  ;;  %v160_v4 = vshrl.u32 %v159_v1, 7  ;;  %v1109_v5 = vld [vmem:[%s2112_s1 + $0x18] sm:$0xff]   ;;  %v23_v6 = vld [vmem:[%s2113_s0] sm:$0xff]  ;;  %v24_v7 = vld [vmem:[%s2113_s0 + $0x8] sm:$0xff] }
   0x3   :  { %1011 = vmatpush3.bf16.msra.mxu0 %v1106_v0  ;;  %1098 = vmatpush3.bf16.msra.mxu1 %v1106_v0  ;;  %v1170_v8 = vld [vmem:[%s2114_s2] ss:$0 sm:$0xff]  ;;  %v156_v10 = vld [vmem:[%s2114_s2 + $0x1] sm:$0x1]  ;;  %v25_v18 = vld [vmem:[%s2113_s0 + $0x10] sm:$0xff] }
   0x4   :  { %1012 = vmatprep.subr.bf16.mxu0 %v1107_v2  ;;  %1091 = vmatprep.subr.bf16.mxu1 %v1107_v2  ;;  %v161_v9 = vsub.s32 0, %v160_v4  ;;  %v157_v11 = vld [vmem:[%s2115_s3] sm:$0x1]  ;;  %v92_v12 = vsub.f32 %v23_v6, %v1170_v8  ;;  %v93_v13 = vsub.f32 %v24_v7, %v1170_v8  ;;  %v26_v21 = vld [vmem:[%s2113_s0 + $0x18] sm:$0xff]  ;;  %v28_v23 = vld [vmem:[%s2113_s0 + $0x28] sm:$0xff]  ;;  %v94_v28 = vsub.f32 %v25_v18, %v1170_v8 }
   0x5   :  { %v158_v14 = vmul.f32 %v157_v11, %v156_v10  ;;  %v1110_v15 = vld [vmem:[%s2112_s1 + $0x20] sm:$0xff]   ;;  %v29_v24 = vld [vmem:[%s2113_s0 + $0x30] sm:$0xff]  ;;  %v1111_v25 = vld [vmem:[%s2112_s1 + $0x28] sm:$0xff]   ;;  %v95_v29 = vsub.f32 %v26_v21, %v1170_v8  ;;  %v97_v31 = vsub.f32 %v28_v23, %v1170_v8 }
   0x6   :  { %v1188_v17 = vld [vmem:[%s2116_s4] ss:$0 sm:$0xff]  ;;  %v30_v32 = vld [vmem:[%s2113_s0 + $0x38] sm:$0xff]  ;;  %v1222_v33 = vld [vmem:[%s2112_s1 + $0x30] sm:$0xff]   ;;  %v98_v35 = vsub.f32 %v29_v24, %v1170_v8 }
   0x7   :  { %1013 = vmatpush3.bf16.msra.mxu0 %v1107_v2  ;;  %1099 = vmatpush3.bf16.msra.mxu1 %v1107_v2  ;;  %v1183_v16 = vrot.slane %v158_v14, %v161_v9  ;;  %v27_v22 = vld [vmem:[%s2113_s0 + $0x20] sm:$0xff]  ;;  %v32_v37 = vld [vmem:[%s2113_s0 + $0x48] sm:$0xff]  ;;  %v33_v38 = vld [vmem:[%s2113_s0 + $0x50] sm:$0xff]  ;;  %v99_v42 = vsub.f32 %v30_v32, %v1170_v8 }
   0x8   :  { %1014 = vmatprep.subr.bf16.mxu0 %v1108_v3  ;;  %1092 = vmatprep.subr.bf16.mxu1 %v1108_v3  ;;  %v96_v30 = vsub.f32 %v27_v22, %v1170_v8  ;;  %v31_v36 = vld [vmem:[%s2113_s0 + $0x40] sm:$0xff]  ;;  %v34_v39 = vld [vmem:[%s2113_s0 + $0x58] sm:$0xff]  ;;  %v36_v43 = vld [vmem:[%s2113_s0 + $0x68] sm:$0xff]  ;;  %v101_v53 = vsub.f32 %v32_v37, %v1170_v8  ;;  %v102_v54 = vsub.f32 %v33_v38, %v1170_v8 }
   0x9   :  { %v163_v19 = vmul.f32 %v1183_v16, %v92_v12  ;;  %v164_v20 = vmul.f32 %v1183_v16, %v93_v13  ;;  %v35_v40 = vld [vmem:[%s2113_s0 + $0x60] sm:$0xff]  ;;  %v165_v41 = vmul.f32 %v1183_v16, %v94_v28  ;;  %v37_v44 = vld [vmem:[%s2113_s0 + $0x70] sm:$0xff]  ;;  %v38_v45 = vld [vmem:[%s2113_s0 + $0x78] sm:$0xff]  ;;  %v166_v46 = vmul.f32 %v1183_v16, %v95_v29 }
   0xa   :  { %v167_v47 = vmul.f32 %v1183_v16, %v96_v30  ;;  %v168_v48 = vmul.f32 %v1183_v16, %v97_v31  ;;  %v100_v49 = vsub.f32 %v31_v36, %v1170_v8  ;;  %v39_v50 = vld [vmem:[%s2113_s0 + $0x80] sm:$0xff]  ;;  %v40_v51 = vld [vmem:[%s2113_s0 + $0x88] sm:$0xff]  ;;  %v169_v52 = vmul.f32 %v1183_v16, %v98_v35  ;;  %v1113_v60 = vld [vmem:[%s2112_s1 + $0x38] sm:$0xff]  }
   0xb   :  { %1015 = vmatpush3.bf16.msra.mxu0 %v1108_v3  ;;  %1100 = vmatpush3.bf16.msra.mxu1 %v1108_v3  ;;  %v234_v26 = vadd.f32 %v1188_v17, %v163_v19  ;;  %v235_v27 = vadd.f32 %v1188_v17, %v164_v20  ;;  %v103_v55 = vsub.f32 %v34_v39, %v1170_v8  ;;  %v42_v14 = vld [vmem:[%s2113_s0 + $0x98] sm:$0xff]  ;;  %v44_v30 = vld [vmem:[%s2113_s0 + $0xa8] sm:$0xff]  ;;  %v45_v39 = vld [vmem:[%s2113_s0 + $0xb0] sm:$0xff] }
   0xc   :  { %1016 = vmatprep.subr.bf16.mxu0 %v1109_v5  ;;  %1093 = vmatprep.subr.bf16.mxu1 %v1109_v5  ;;  %v104_v56 = vsub.f32 %v35_v40, %v1170_v8  ;;  %v105_v57 = vsub.f32 %v36_v43, %v1170_v8  ;;  %v106_v58 = vsub.f32 %v37_v44, %v1170_v8  ;;  %v53_v40 = vld [vmem:[%s2113_s0 + $0xf0] sm:$0xff] }
   0xd   :  { %v298_v34 = vpack.c.bf16 %v235_v27, %v234_v26  ;;  %v107_v59 = vsub.f32 %v38_v45, %v1170_v8  ;;  %v236_v61 = vadd.f32 %v1188_v17, %v165_v41  ;;  %v170_v62 = vmul.f32 %v1183_v16, %v99_v42  ;;  %v54_v42 = vld [vmem:[%s2113_s0 + $0xf8] sm:$0xff] }
   0xe   :  { %v108_v63 = vsub.f32 %v39_v50, %v1170_v8  ;;  %v109_v0 = vsub.f32 %v40_v51, %v1170_v8  ;;  %v237_v1 = vadd.f32 %v1188_v17, %v166_v46  ;;  %v238_v2 = vadd.f32 %v1188_v17, %v167_v47  ;;  %v55_v47 = vld [vmem:[%s2113_s0 + $0x100] sm:$0xff]  ;;  %v1375_v51 = vld [vmem:[%s2113_s0 + $0xb8] sm:$0xff] }
   0xf   :  { %1017 = vmatpush3.bf16.msra.mxu0 %v1109_v5  ;;  %1101 = vmatpush3.bf16.msra.mxu1 %v1109_v5  ;;  %v239_v3 = vadd.f32 %v1188_v17, %v168_v48  ;;  %v171_v4 = vmul.f32 %v1183_v16, %v100_v49  ;;  %v41_v5 = vld [vmem:[%s2113_s0 + $0x90] sm:$0xff]  ;;  %v172_v6 = vmul.f32 %v1183_v16, %v101_v53  ;;  %v56_v48 = vld [vmem:[%s2113_s0 + $0x108] sm:$0xff] }
  0x10   :  { %1018 = vmatprep.subr.bf16.mxu0 %v1110_v15  ;;  %1094 = vmatprep.subr.bf16.mxu1 %v1110_v15  ;;  %v173_v7 = vmul.f32 %v1183_v16, %v102_v54  ;;  %v174_v9 = vmul.f32 %v1183_v16, %v103_v55  ;;  %v175_v10 = vmul.f32 %v1183_v16, %v104_v56  ;;  %v57_v54 = vld [vmem:[%s2113_s0 + $0x110] sm:$0xff] }
  0x11   :  { %1026 = vmatprep.mubr.bf16.mxu0 %v298_v34  ;;  %v176_v11 = vmul.f32 %v1183_v16, %v105_v57  ;;  %v177_v12 = vmul.f32 %v1183_v16, %v106_v58  ;;  %v178_v13 = vmul.f32 %v1183_v16, %v107_v59  ;;  %v179_v18 = vmul.f32 %v1183_v16, %v108_v63 }
  0x12   :  { %v180_v19 = vmul.f32 %v1183_v16, %v109_v0  ;;  %v110_v20 = vsub.f32 %v41_v5, %v1170_v8  ;;  %v299_v21 = vpack.c.bf16 %v237_v1, %v236_v61  ;;  %v300_v22 = vpack.c.bf16 %v239_v3, %v238_v2  ;;  %v58_v0 = vld [vmem:[%s2113_s0 + $0x118] sm:$0xff]  ;;  %v59_v5 = vld [vmem:[%s2113_s0 + $0x120] sm:$0xff] }
  0x13   :  { %1019 = vmatpush3.bf16.msra.mxu0 %v1110_v15  ;;  %1102 = vmatpush3.bf16.msra.mxu1 %v1110_v15  ;;  %v1297_v15 = vadd.f32 %v1188_v17, %v169_v52  ;;  %v1303_v23 = vadd.f32 %v1188_v17, %v170_v62  ;;  %v1306_v24 = vadd.f32 %v1188_v17, %v171_v4 }
  0x14   :  { %1020 = vmatprep.subr.bf16.mxu0 %v1111_v25  ;;  %1095 = vmatprep.subr.bf16.mxu1 %v1111_v25  ;;  %v1313_v26 = vadd.f32 %v1188_v17, %v172_v6  ;;  %v1316_v27 = vadd.f32 %v1188_v17, %v173_v7  ;;  %v1319_v28 = vadd.f32 %v1188_v17, %v174_v9  ;;  %v60_v6 = vld [vmem:[%s2113_s0 + $0x128] sm:$0xff] }
  0x15   :  { %v111_v29 = vsub.f32 %v42_v14, %v1170_v8  ;;  %v1326_v31 = vadd.f32 %v1188_v17, %v175_v10  ;;  %v1329_v32 = vadd.f32 %v1188_v17, %v176_v11  ;;  %v1335_v34 = vadd.f32 %v1188_v17, %v178_v13 }
  0x16   :  { %v1338_v35 = vadd.f32 %v1188_v17, %v179_v18  ;;  %v1341_v36 = vadd.f32 %v1188_v17, %v180_v19  ;;  %v181_v37 = vmul.f32 %v1183_v16, %v110_v20  ;;  %v113_v41 = vsub.f32 %v44_v30, %v1170_v8  ;;  %v62_v19 = vld [vmem:[%s2113_s0 + $0x138] sm:$0xff] }
  0x17   :  { %1021 = vmatpush3.bf16.msra.mxu0 %v1111_v25  ;;  %1103 = vmatpush3.bf16.msra.mxu1 %v1111_v25  ;;  %v43_v25 = vld [vmem:[%s2113_s0 + $0xa0] sm:$0xff]  ;;  %v301_v43 = vpack.c.bf16 %v1303_v23, %v1297_v15  ;;  %v302_v44 = vpack.c.bf16 %v1313_v26, %v1306_v24  ;;  %v303_v45 = vpack.c.bf16 %v1319_v28, %v1316_v27 }
  0x18   :  { %1022 = vmatprep.subr.bf16.mxu0 %v1222_v33  ;;  %1096 = vmatprep.subr.bf16.mxu1 %v1222_v33  ;;  %v112_v38 = vsub.f32 %v43_v25, %v1170_v8  ;;  %v182_v46 = vmul.f32 %v1183_v16, %v111_v29  ;;  %v304_v49 = vpack.c.bf16 %v1329_v32, %v1326_v31  ;;  %v63_v24 = vld [vmem:[%s2113_s0 + $0x140] sm:$0xff]  ;;  %v64_v25 = vld [vmem:[%s2113_s0 + $0x148] sm:$0xff]  ;;  %v1540_v31 = vld [vmem:[%s2113_s0 + $0xd8] sm:$0xff] }
  0x19   :  { %v114_v52 = vsub.f32 %v45_v39, %v1170_v8  ;;  %v122_v53 = vsub.f32 %v53_v40, %v1170_v8  ;;  %v306_v55 = vpack.c.bf16 %v1341_v36, %v1338_v35  ;;  %v1385_v56 = vadd.f32 %v1188_v17, %v181_v37  ;;  %v48_v39 = vld [vmem:[%s2113_s0 + $0xc8] sm:$0xff] }
  0x1a   :  { %v183_v57 = vmul.f32 %v1183_v16, %v112_v38  ;;  %v123_v58 = vsub.f32 %v54_v42, %v1170_v8  ;;  %v1390_v59 = vmul.f32 %v1183_v16, %v113_v41  ;;  %v124_v62 = vsub.f32 %v55_v47, %v1170_v8  ;;  %v65_v38 = vld [vmem:[%s2113_s0 + $0x150] sm:$0xff] }
  0x1b   :  { %1023 = vmatpush3.bf16.msra.mxu0 %v1222_v33  ;;  %1104 = vmatpush3.bf16.msra.mxu1 %v1222_v33  ;;  %v1332_v33 = vadd.f32 %v1188_v17, %v177_v12  ;;  %v193_v61 = vmul.f32 %v1183_v16, %v122_v53  ;;  %v125_v63 = vsub.f32 %v56_v48, %v1170_v8  ;;  %v61_v12 = vld [vmem:[%s2113_s0 + $0x130] sm:$0xff] }
  0x1c   :  { %1024 = vmatprep.subr.bf16.mxu0 %v1113_v60  ;;  %1097 = vmatprep.subr.bf16.mxu1 %v1113_v60  ;;  %v1404_v1 = vadd.f32 %v1188_v17, %v182_v46  ;;  %v115_v2 = vsub.f32 %v1375_v51, %v1170_v8  ;;  %v194_v3 = vmul.f32 %v1183_v16, %v123_v58 }
  0x1d   :  { %v305_v50 = vpack.c.bf16 %v1335_v34, %v1332_v33  ;;  %v126_v4 = vsub.f32 %v57_v54, %v1170_v8  ;;  %v1417_v7 = vmul.f32 %v1183_v16, %v114_v52  ;;  %v1420_v9 = vadd.f32 %v1188_v17, %v193_v61 }
  0x1e   :  { %v195_v10 = vmul.f32 %v1183_v16, %v124_v62  ;;  %v196_v11 = vmul.f32 %v1183_v16, %v125_v63  ;;  %v1430_v14 = vadd.f32 %v1188_v17, %v194_v3  ;;  %v127_v15 = vsub.f32 %v58_v0, %v1170_v8  ;;  %v67_v62 = vld [vmem:[%s2113_s0 + $0x160] sm:$0xff]  ;;  %v68_v63 = vld [vmem:[%s2113_s0 + $0x168] sm:$0xff] }
  0x1f   :  { %1025 = vmatpush3.bf16.msra.mxu0 %v1113_v60  ;;  %1105 = vmatpush3.bf16.msra.mxu1 %v1113_v60  ;;  %v1395_v60 = vld [vmem:[%s2113_s0 + $0xc0] sm:$0xff]  ;;  %v197_v18 = vmul.f32 %v1183_v16, %v126_v4  ;;  %v129_v23 = vsub.f32 %v60_v6, %v1170_v8  ;;  %v130_v37 = vsub.f32 %v61_v12, %v1170_v8  ;;  %v69_v6 = vld [vmem:[%s2113_s0 + $0x170] sm:$0xff] }
  0x20   :  { %v116_v13 = vsub.f32 %v1395_v60, %v1170_v8  ;;  %v266_v20 = vadd.f32 %v1188_v17, %v195_v10  ;;  %v313_v26 = vpack.c.bf16 %v1430_v14, %v1420_v9  ;;  %v198_v29 = vmul.f32 %v1183_v16, %v127_v15 }
  0x21   :  { %v268_v30 = vadd.f32 %v1188_v17, %v197_v18  ;;  %v200_v42 = vmul.f32 %v1183_v16, %v129_v23  ;;  %v201_v47 = vmul.f32 %v1183_v16, %v130_v37  ;;  %v132_v48 = vsub.f32 %v63_v24, %v1170_v8  ;;  %v1492_v18 = vld [vmem:[%s2113_s0 + $0xd0] sm:$0xff] }
  0x22   :  { %1027 = vmatmul.mubr.bf16.vlgmr.msra.gmra.mrb[0].mxu0 %v299_v21  ;;  %v267_v21 = vadd.f32 %v1188_v17, %v196_v11  ;;  %v269_v46 = vadd.f32 %v1188_v17, %v198_v29  ;;  %v133_v52 = vsub.f32 %v64_v25, %v1170_v8  ;;  %v134_v61 = vsub.f32 %v65_v38, %v1170_v8 }
  0x23   :  { %1030 = vmatprep.mubr.bf16.mxu0 %v300_v22  ;;  %v128_v22 = vsub.f32 %v59_v5, %v1170_v8  ;;  %v271_v54 = vadd.f32 %v1188_v17, %v200_v42  ;;  %v117_v0 = vsub.f32 %v48_v39, %v1170_v8  ;;  %v203_v4 = vmul.f32 %v1183_v16, %v132_v48 }
  0x24   :  { %v314_v40 = vpack.c.bf16 %v267_v21, %v266_v20  ;;  %v315_v3 = vpack.c.bf16 %v269_v46, %v268_v30  ;;  %v204_v5 = vmul.f32 %v1183_v16, %v133_v52  ;;  %v1485_v10 = vadd.f32 %v1188_v17, %v183_v57  ;;  %v71_v30 = vld [vmem:[%s2113_s0 + $0x180] sm:$0xff]  ;;  %v1554_v46 = vld [vmem:[%s2113_s0 + $0x190] sm:$0xff] }
  0x25   :  { %v199_v41 = vmul.f32 %v1183_v16, %v128_v22  ;;  %v272_v12 = vadd.f32 %v1188_v17, %v201_v47  ;;  %v205_v20 = vmul.f32 %v1183_v16, %v134_v61  ;;  %v136_v21 = vsub.f32 %v67_v62, %v1170_v8  ;;  %v70_v22 = vld [vmem:[%s2113_s0 + $0x178] sm:$0xff]  ;;  %v77_v47 = vld [vmem:[%s2113_s0 + $0x1b0] sm:$0xff] }
  0x26   :  { %1058 = vmatprep.mubr.bf16.mxu1 %v314_v40  ;;  %v137_v57 = vsub.f32 %v68_v63, %v1170_v8  ;;  %v274_v23 = vadd.f32 %v1188_v17, %v203_v4  ;;  %v275_v24 = vadd.f32 %v1188_v17, %v204_v5  ;;  %v138_v29 = vsub.f32 %v69_v6, %v1170_v8  ;;  %v79_v63 = vld [vmem:[%s2113_s0 + $0x1c0] sm:$0xff]  ;;  %v1592_v5 = vld [vmem:[%s2113_s0 + $0x198] sm:$0xff] }
  0x27   :  { %v270_v53 = vadd.f32 %v1188_v17, %v199_v41  ;;  %1059 = vmatmul.mubr.bf16.vlgmr.msra.gmra.mrb[0].mxu1 %v315_v3  ;;  %v1513_v37 = vadd.f32 %v1188_v17, %v1390_v59  ;;  %v186_v38 = vmul.f32 %v1183_v16, %v115_v2  ;;  %v207_v39 = vmul.f32 %v1183_v16, %v136_v21  ;;  %v72_v41 = vld [vmem:[%s2113_s0 + $0x188] sm:$0xff] }
  0x28   :  { %v208_v40 = vmul.f32 %v1183_v16, %v137_v57  ;;  %v307_v27 = vpack.c.bf16 %v1404_v1, %v1385_v56  ;;  %v187_v28 = vmul.f32 %v1183_v16, %v116_v13  ;;  %v139_v51 = vsub.f32 %v70_v22, %v1170_v8 }
  0x29   :  { %v316_v11 = vpack.c.bf16 %v271_v54, %v270_v53  ;;  %v188_v59 = vmul.f32 %v1183_v16, %v117_v0  ;;  %v140_v60 = vsub.f32 %v71_v30, %v1170_v8  ;;  %v318_v2 = vpack.c.bf16 %v275_v24, %v274_v23  ;;  %v78_v54 = vld [vmem:[%s2113_s0 + $0x1b8] sm:$0xff]  ;;  %v80_v0 = vld [vmem:[%s2113_s0 + $0x1c8] sm:$0xff]  ;;  %v83_v30 = vld [vmem:[%s2113_s0 + $0x1e0] sm:$0xff] }
  0x2a   :  { %1031 = vmatmul.mubr.bf16.gmra.mrb[4].mxu0 %v301_v43  ;;  %v131_v43 = vsub.f32 %v62_v19, %v1170_v8  ;;  %v209_v42 = vmul.f32 %v1183_v16, %v138_v29  ;;  %v308_v48 = vpack.c.bf16 %v1513_v37, %v1485_v10  ;;  %v1563_v52 = vadd.f32 %v1188_v17, %v1417_v7 }
  0x2b   :  { %1034 = vmatprep.mubr.bf16.mxu0 %v302_v44  ;;  %v66_v44 = vld [vmem:[%s2113_s0 + $0x158] sm:$0xff]  ;;  %1062 = vmatprep.mubr.bf16.mxu1 %v316_v11  ;;  %v279_v53 = vadd.f32 %v1188_v17, %v208_v40  ;;  %v1574_v61 = vadd.f32 %v1188_v17, %v187_v28  ;;  %v119_v62 = vsub.f32 %v1540_v31, %v1170_v8  ;;  %v85_v40 = vld [vmem:[%s2113_s0 + $0x1f0] sm:$0xff] }
  0x2c   :  { %v202_v58 = vmul.f32 %v1183_v16, %v131_v43  ;;  %v135_v15 = vsub.f32 %v66_v44, %v1170_v8  ;;  %v141_v43 = vsub.f32 %v72_v41, %v1170_v8  ;;  %v278_v44 = vadd.f32 %v1188_v17, %v207_v39 }
  0x2d   :  { %v210_v7 = vmul.f32 %v1183_v16, %v139_v51  ;;  %v1586_v3 = vadd.f32 %v1188_v17, %v188_v59  ;;  %v211_v4 = vmul.f32 %v1183_v16, %v140_v60  ;;  %v142_v6 = vsub.f32 %v1554_v46, %v1170_v8  ;;  %v76_v60 = vld [vmem:[%s2113_s0 + $0x1a8] sm:$0xff]  ;;  %v51_v46 = vld [vmem:[%s2113_s0 + $0xe0] sm:$0xff] }
  0x2e   :  { %v273_v19 = vadd.f32 %v1188_v17, %v202_v58  ;;  %v206_v25 = vmul.f32 %v1183_v16, %v135_v15  ;;  %v1571_v58 = vadd.f32 %v1188_v17, %v186_v38  ;;  %v146_v11 = vsub.f32 %v77_v47, %v1170_v8  ;;  %v84_v38 = vld [vmem:[%s2113_s0 + $0x1e8] sm:$0xff] }
  0x2f   :  { %v147_v21 = vsub.f32 %v78_v54, %v1170_v8  ;;  %v320_v57 = vpack.c.bf16 %v279_v53, %v278_v44  ;;  %v148_v23 = vsub.f32 %v79_v63, %v1170_v8  ;;  %v149_v24 = vsub.f32 %v80_v0, %v1170_v8 }
  0x30   :  { %v317_v32 = vpack.c.bf16 %v273_v19, %v272_v12  ;;  %v1547_v13 = vadd.f32 %v1188_v17, %v206_v25  ;;  %v81_v12 = vld [vmem:[%s2113_s0 + $0x1d0] sm:$0xff]  ;;  %v1603_v19 = vadd.f32 %v1188_v17, %v209_v42  ;;  %v217_v22 = vmul.f32 %v1183_v16, %v146_v11  ;;  %v82_v25 = vld [vmem:[%s2113_s0 + $0x1d8] sm:$0xff] }
  0x31   :  { %v281_v29 = vadd.f32 %v1188_v17, %v210_v7  ;;  %v143_v33 = vsub.f32 %v1592_v5, %v1170_v8  ;;  %v218_v34 = vmul.f32 %v1183_v16, %v147_v21  ;;  %v282_v35 = vadd.f32 %v1188_v17, %v211_v4  ;;  %v52_v7 = vld [vmem:[%s2113_s0 + $0xe8] sm:$0xff] }
  0x32   :  { %1035 = vmatmul.mubr.bf16.gmra.mrb[8].mxu0 %v303_v45  ;;  %v118_v45 = vsub.f32 %v1492_v18, %v1170_v8  ;;  %1063 = vmatmul.mubr.bf16.gmra.mrb[4].mxu1 %v317_v32  ;;  %v1632_v36 = vadd.f32 %v1188_v17, %v217_v22  ;;  %v220_v39 = vmul.f32 %v1183_v16, %v149_v24  ;;  %v86_v32 = vld [vmem:[%s2113_s0 + $0x1f8] sm:$0xff] }
  0x33   :  { %1038 = vmatprep.mubr.bf16.mxu0 %v304_v49  ;;  %v1543_v49 = vadd.f32 %v1188_v17, %v205_v20  ;;  %1066 = vmatprep.mubr.bf16.mxu1 %v318_v2  ;;  %v212_v20 = vmul.f32 %v1183_v16, %v141_v43  ;;  %v1641_v28 = vadd.f32 %v1188_v17, %v218_v34 }
  0x34   :  { %v151_v51 = vsub.f32 %v82_v25, %v1170_v8  ;;  %v152_v42 = vsub.f32 %v83_v30, %v1170_v8  ;;  %v153_v43 = vsub.f32 %v84_v38, %v1170_v8  ;;  %v154_v54 = vsub.f32 %v85_v40, %v1170_v8 }
  0x35   :  { %v319_v15 = vpack.c.bf16 %v1547_v13, %v1543_v49  ;;  %v283_v41 = vadd.f32 %v1188_v17, %v212_v20  ;;  %v75_v49 = vld [vmem:[%s2113_s0 + $0x1a0] sm:$0xff]  ;;  %v1658_v13 = vadd.f32 %v1188_v17, %v220_v39  ;;  %v325_v47 = vpack.c.bf16 %v1641_v28, %v1632_v36 }
  0x36   :  { %v222_v44 = vmul.f32 %v1183_v16, %v151_v51  ;;  %v223_v0 = vmul.f32 %v1183_v16, %v152_v42  ;;  %v224_v4 = vmul.f32 %v1183_v16, %v153_v43  ;;  %v155_v5 = vsub.f32 %v86_v32, %v1170_v8 }
  0x37   :  { %v144_v11 = vsub.f32 %v75_v49, %v1170_v8  ;;  %v225_v21 = vmul.f32 %v1183_v16, %v154_v54  ;;  %v121_v24 = vsub.f32 %v52_v7, %v1170_v8  ;;  %v213_v25 = vmul.f32 %v1183_v16, %v142_v6 }
  0x38   :  { %v293_v20 = vadd.f32 %v1188_v17, %v222_v44  ;;  %v294_v22 = vadd.f32 %v1188_v17, %v223_v0  ;;  %v321_v1 = vpack.c.bf16 %v281_v29, %v1603_v19  ;;  %v322_v38 = vpack.c.bf16 %v283_v41, %v282_v35 }
  0x39   :  { %v296_v56 = vadd.f32 %v1188_v17, %v225_v21  ;;  %v215_v36 = vmul.f32 %v1183_v16, %v144_v11  ;;  %v309_v37 = vpack.c.bf16 %v1571_v58, %v1563_v52  ;;  %v190_v6 = vmul.f32 %v1183_v16, %v119_v62 }
  0x3a   :  { %1039 = vmatmul.mubr.bf16.gmra.mrb[12].mxu0 %v305_v50  ;;  %v150_v50 = vsub.f32 %v81_v12, %v1170_v8  ;;  %1067 = vmatmul.mubr.bf16.gmra.mrb[8].mxu1 %v319_v15  ;;  %v145_v12 = vsub.f32 %v76_v60, %v1170_v8  ;;  %v120_v15 = vsub.f32 %v51_v46, %v1170_v8 }
  0x3b   :  { %1042 = vmatprep.mubr.bf16.mxu0 %v306_v55  ;;  %v219_v55 = vmul.f32 %v1183_v16, %v148_v23  ;;  %1070 = vmatprep.mubr.bf16.mxu1 %v320_v57  ;;  %v295_v23 = vadd.f32 %v1188_v17, %v224_v4  ;;  %v226_v57 = vmul.f32 %v1183_v16, %v155_v5 }
  0x3c   :  { %v221_v59 = vmul.f32 %v1183_v16, %v150_v50  ;;  %v216_v10 = vmul.f32 %v1183_v16, %v145_v12  ;;  %v310_v29 = vpack.c.bf16 %v1586_v3, %v1574_v61  ;;  %v192_v35 = vmul.f32 %v1183_v16, %v121_v24 }
  0x3d   :  { %v1655_v2 = vadd.f32 %v1188_v17, %v219_v55  ;;  %v328_v50 = vpack.c.bf16 %v295_v23, %v294_v22  ;;  %v297_v30 = vadd.f32 %v1188_v17, %v226_v57  ;;  %v284_v52 = vadd.f32 %v1188_v17, %v213_v25 }
  0x3e   :  { %v292_v53 = vadd.f32 %v1188_v17, %v221_v59  ;;  %v287_v8 = vadd.f32 %v1188_v17, %v216_v10  ;;  %v261_v58 = vadd.f32 %v1188_v17, %v190_v6 }
  0x3f   :  { %v326_v63 = vpack.c.bf16 %v1658_v13, %v1655_v2  ;;  %v329_v19 = vpack.c.bf16 %v297_v30, %v296_v56 }
  0x40   :  { %v327_v34 = vpack.c.bf16 %v293_v20, %v292_v53 }
  0x42   :  { %1043 = vmatmul.mubr.bf16.gmra.mrb[16].mxu0 %v307_v27  ;;  %v214_v27 = vmul.f32 %v1183_v16, %v143_v33  ;;  %v191_v33 = vmul.f32 %v1183_v16, %v120_v15  ;;  %1071 = vmatmul.mubr.bf16.gmra.mrb[12].mxu1 %v321_v1 }
  0x43   :  { %1046 = vmatprep.mubr.bf16.mxu0 %v308_v48  ;;  %v189_v48 = vmul.f32 %v1183_v16, %v118_v45  ;;  %1074 = vmatprep.mubr.bf16.mxu1 %v322_v38  ;;  %v286_v45 = vadd.f32 %v1188_v17, %v215_v36  ;;  %v263_v16 = vadd.f32 %v1188_v17, %v192_v35 }
  0x44   :  { %v285_v18 = vadd.f32 %v1188_v17, %v214_v27  ;;  %v262_v61 = vadd.f32 %v1188_v17, %v191_v33 }
  0x45   :  { %v260_v31 = vadd.f32 %v1188_v17, %v189_v48  ;;  %v324_v3 = vpack.c.bf16 %v287_v8, %v286_v45 }
  0x46   :  { %v323_v62 = vpack.c.bf16 %v285_v18, %v284_v52  ;;  %v312_v39 = vpack.c.bf16 %v263_v16, %v262_v61 }
  0x47   :  { %v311_v55 = vpack.c.bf16 %v261_v58, %v260_v31 }
  0x4a   :  { %1047 = vmatmul.mubr.bf16.gmra.mrb[20].mxu0 %v309_v37  ;;  %1075 = vmatmul.mubr.bf16.gmra.mrb[16].mxu1 %v323_v62 }
  0x4b   :  { %1050 = vmatprep.mubr.bf16.mxu0 %v310_v29  ;;  %1078 = vmatprep.mubr.bf16.mxu1 %v324_v3 }
  0x52   :  { %1051 = vmatmul.mubr.bf16.gmra.mrb[24].mxu0 %v311_v55  ;;  %1079 = vmatmul.mubr.bf16.gmra.mrb[20].mxu1 %v325_v47 }
  0x53   :  { %1054 = vmatprep.mubr.bf16.mxu0 %v312_v39  ;;  %1082 = vmatprep.mubr.bf16.mxu1 %v326_v63 }
  0x5a   :  { %1055 = vmatmul.mubr.bf16.gmra.mrb[28].mxu0 %v313_v26  ;;  %1083 = vmatmul.mubr.bf16.gmra.mrb[24].mxu1 %v327_v34 }
  0x5b   :  { %1086 = vmatprep.mubr.bf16.mxu1 %v328_v50 }
  0x62   :  { %1087 = vmatmul.mubr.bf16.gmra.mrb[28].mxu1 %v329_v19 }
  0xf5   :  { %v1028_v40 = vpop.f32.mrb[0].mxu0 }
  0xf6   :  { %685 = vst [vmem:[%s2117_s5 + $0x10] sm:$0xff] %v1028_v40  ;;  %v428_v17 = vpop.f32.mrb[1].mxu0  ;;  %v818_v51 = vmul.f32 %v1028_v40, %v1028_v40 }
  0xf7   :  { %683 = vst [vmem:[%s2117_s5] sm:$0xff] %v428_v17  ;;  %v1029_v41 = vpop.f32.mrb[2].mxu0  ;;  %v816_v14 = vmul.f32 %v428_v17, %v428_v17 }
  0xf8   :  { %686 = vst [vmem:[%s2117_s5 + $0x18] sm:$0xff] %v1029_v41  ;;  %v431_v9 = vpop.f32.mrb[3].mxu0  ;;  %v819_v49 = vmul.f32 %v1029_v41, %v1029_v41 }
  0xf9   :  { %684 = vst [vmem:[%s2117_s5 + $0x8] sm:$0xff] %v431_v9  ;;  %v747_v26 = vadd.f32 %v431_v9, %v428_v17  ;;  %v817_v28 = vmul.f32 %v431_v9, %v431_v9 }
  0xfa   :  { %v1749_v11 = vpop.f32.mrb[0].mxu1 }
  0xfb   :  { %v748_v59 = vadd.f32 %v1028_v40, %v747_v26  ;;  %v880_v32 = vadd.f32 %v817_v28, %v816_v14  ;;  %717 = vst [vmem:[%s2117_s5 + $0x110] sm:$0xff] %v1749_v11  ;;  %v1755_v12 = vpop.f32.mrb[1].mxu1 }
  0xfc   :  { %715 = vst [vmem:[%s2117_s5 + $0x100] sm:$0xff] %v1755_v12  ;;  %v1761_v23 = vpop.f32.mrb[2].mxu1 }
  0xfd   :  { %v881_v60 = vadd.f32 %v880_v32, %v818_v51  ;;  %v1032_v2 = vpop.f32.mrb[4].mxu0  ;;  %v749_v13 = vadd.f32 %v1029_v41, %v748_v59  ;;  %718 = vst [vmem:[%s2117_s5 + $0x118] sm:$0xff] %v1761_v23  ;;  %v1770_v24 = vpop.f32.mrb[3].mxu1 }
  0xfe   :  { %689 = vst [vmem:[%s2117_s5 + $0x30] sm:$0xff] %v1032_v2  ;;  %v444_v42 = vpop.f32.mrb[5].mxu0  ;;  %v822_v0 = vmul.f32 %v1032_v2, %v1032_v2  ;;  %716 = vst [vmem:[%s2117_s5 + $0x108] sm:$0xff] %v1770_v24 }
  0xff   :  { %687 = vst [vmem:[%s2117_s5 + $0x20] sm:$0xff] %v444_v42  ;;  %v750_v43 = vadd.f32 %v749_v13, %v444_v42  ;;  %v820_v46 = vmul.f32 %v444_v42, %v444_v42  ;;  %v882_v47 = vadd.f32 %v881_v60, %v819_v49  ;;  %v1033_v44 = vpop.f32.mrb[6].mxu0 }
 0x100   :  { %690 = vst [vmem:[%s2117_s5 + $0x38] sm:$0xff] %v1033_v44  ;;  %v447_v53 = vpop.f32.mrb[7].mxu0  ;;  %v823_v20 = vmul.f32 %v1033_v44, %v1033_v44 }
 0x101   :  { %v883_v54 = vadd.f32 %v882_v47, %v820_v46  ;;  %688 = vst [vmem:[%s2117_s5 + $0x28] sm:$0xff] %v447_v53  ;;  %v751_v7 = vadd.f32 %v750_v43, %v447_v53  ;;  %v821_v63 = vmul.f32 %v447_v53, %v447_v53 }
 0x103   :  { %v752_v4 = vadd.f32 %v1032_v2, %v751_v7  ;;  %v884_v5 = vadd.f32 %v883_v54, %v821_v63 }
 0x105   :  { %v885_v21 = vadd.f32 %v884_v5, %v822_v0  ;;  %v1036_v15 = vpop.f32.mrb[8].mxu0  ;;  %v753_v22 = vadd.f32 %v1033_v44, %v752_v4  ;;  %v1785_v48 = vpop.f32.mrb[4].mxu1 }
 0x106   :  { %693 = vst [vmem:[%s2117_s5 + $0x50] sm:$0xff] %v1036_v15  ;;  %v460_v57 = vpop.f32.mrb[9].mxu0  ;;  %v826_v36 = vmul.f32 %v1036_v15, %v1036_v15  ;;  %721 = vst [vmem:[%s2117_s5 + $0x130] sm:$0xff] %v1785_v48  ;;  %v1791_v6 = vpop.f32.mrb[5].mxu1 }
 0x107   :  { %691 = vst [vmem:[%s2117_s5 + $0x40] sm:$0xff] %v460_v57  ;;  %v754_v25 = vadd.f32 %v753_v22, %v460_v57  ;;  %v824_v34 = vmul.f32 %v460_v57, %v460_v57  ;;  %v886_v56 = vadd.f32 %v885_v21, %v823_v20  ;;  %v1037_v1 = vpop.f32.mrb[10].mxu0  ;;  %719 = vst [vmem:[%s2117_s5 + $0x120] sm:$0xff] %v1791_v6  ;;  %v1797_v52 = vpop.f32.mrb[6].mxu1 }
 0x108   :  { %694 = vst [vmem:[%s2117_s5 + $0x58] sm:$0xff] %v1037_v1  ;;  %v463_v27 = vpop.f32.mrb[11].mxu0  ;;  %v827_v19 = vmul.f32 %v1037_v1, %v1037_v1  ;;  %722 = vst [vmem:[%s2117_s5 + $0x138] sm:$0xff] %v1797_v52  ;;  %v1806_v45 = vpop.f32.mrb[7].mxu1 }
 0x109   :  { %v887_v50 = vadd.f32 %v886_v56, %v824_v34  ;;  %692 = vst [vmem:[%s2117_s5 + $0x48] sm:$0xff] %v463_v27  ;;  %v755_v30 = vadd.f32 %v754_v25, %v463_v27  ;;  %v825_v38 = vmul.f32 %v463_v27, %v463_v27  ;;  %720 = vst [vmem:[%s2117_s5 + $0x128] sm:$0xff] %v1806_v45 }
 0x10b   :  { %v756_v10 = vadd.f32 %v1036_v15, %v755_v30  ;;  %v888_v37 = vadd.f32 %v887_v50, %v825_v38 }
 0x10d   :  { %v889_v29 = vadd.f32 %v888_v37, %v826_v36  ;;  %v1040_v33 = vpop.f32.mrb[12].mxu0  ;;  %v757_v35 = vadd.f32 %v1037_v1, %v756_v10  ;;  %v1821_v41 = vpop.f32.mrb[8].mxu1 }
 0x10e   :  { %697 = vst [vmem:[%s2117_s5 + $0x70] sm:$0xff] %v1040_v33  ;;  %v476_v18 = vpop.f32.mrb[13].mxu0  ;;  %v830_v39 = vmul.f32 %v1040_v33, %v1040_v33  ;;  %725 = vst [vmem:[%s2117_s5 + $0x150] sm:$0xff] %v1821_v41  ;;  %v1827_v9 = vpop.f32.mrb[9].mxu1 }
 0x10f   :  { %695 = vst [vmem:[%s2117_s5 + $0x60] sm:$0xff] %v476_v18  ;;  %v758_v8 = vadd.f32 %v757_v35, %v476_v18  ;;  %v828_v31 = vmul.f32 %v476_v18, %v476_v18  ;;  %v890_v58 = vadd.f32 %v889_v29, %v827_v19  ;;  %v1041_v61 = vpop.f32.mrb[14].mxu0  ;;  %723 = vst [vmem:[%s2117_s5 + $0x140] sm:$0xff] %v1827_v9  ;;  %v1833_v59 = vpop.f32.mrb[10].mxu1 }
 0x110   :  { %698 = vst [vmem:[%s2117_s5 + $0x78] sm:$0xff] %v1041_v61  ;;  %v479_v16 = vpop.f32.mrb[15].mxu0  ;;  %v831_v14 = vmul.f32 %v1041_v61, %v1041_v61  ;;  %726 = vst [vmem:[%s2117_s5 + $0x158] sm:$0xff] %v1833_v59  ;;  %v1842_v49 = vpop.f32.mrb[11].mxu1 }
 0x111   :  { %v891_v62 = vadd.f32 %v890_v58, %v828_v31  ;;  %696 = vst [vmem:[%s2117_s5 + $0x68] sm:$0xff] %v479_v16  ;;  %v759_v3 = vadd.f32 %v758_v8, %v479_v16  ;;  %v829_v55 = vmul.f32 %v479_v16, %v479_v16  ;;  %724 = vst [vmem:[%s2117_s5 + $0x148] sm:$0xff] %v1842_v49 }
 0x113   :  { %v760_v40 = vadd.f32 %v1040_v33, %v759_v3  ;;  %v892_v17 = vadd.f32 %v891_v62, %v829_v55 }
 0x115   :  { %v893_v26 = vadd.f32 %v892_v17, %v830_v39  ;;  %v1044_v28 = vpop.f32.mrb[16].mxu0  ;;  %v761_v51 = vadd.f32 %v1041_v61, %v760_v40  ;;  %v1857_v63 = vpop.f32.mrb[12].mxu1 }
 0x116   :  { %701 = vst [vmem:[%s2117_s5 + $0x90] sm:$0xff] %v1044_v28  ;;  %v492_v32 = vpop.f32.mrb[17].mxu0  ;;  %v834_v53 = vmul.f32 %v1044_v28, %v1044_v28  ;;  %729 = vst [vmem:[%s2117_s5 + $0x170] sm:$0xff] %v1857_v63  ;;  %v1863_v0 = vpop.f32.mrb[13].mxu1 }
 0x117   :  { %699 = vst [vmem:[%s2117_s5 + $0x80] sm:$0xff] %v492_v32  ;;  %v762_v60 = vadd.f32 %v761_v51, %v492_v32  ;;  %v832_v2 = vmul.f32 %v492_v32, %v492_v32  ;;  %v894_v13 = vadd.f32 %v893_v26, %v831_v14  ;;  %v1045_v42 = vpop.f32.mrb[18].mxu0  ;;  %727 = vst [vmem:[%s2117_s5 + $0x160] sm:$0xff] %v1863_v0  ;;  %v1869_v15 = vpop.f32.mrb[14].mxu1 }
 0x118   :  { %702 = vst [vmem:[%s2117_s5 + $0x98] sm:$0xff] %v1045_v42  ;;  %v495_v43 = vpop.f32.mrb[19].mxu0  ;;  %v835_v4 = vmul.f32 %v1045_v42, %v1045_v42  ;;  %730 = vst [vmem:[%s2117_s5 + $0x178] sm:$0xff] %v1869_v15  ;;  %v1878_v57 = vpop.f32.mrb[15].mxu1 }
 0x119   :  { %v895_v46 = vadd.f32 %v894_v13, %v832_v2  ;;  %700 = vst [vmem:[%s2117_s5 + $0x88] sm:$0xff] %v495_v43  ;;  %v763_v47 = vadd.f32 %v762_v60, %v495_v43  ;;  %v833_v44 = vmul.f32 %v495_v43, %v495_v43  ;;  %728 = vst [vmem:[%s2117_s5 + $0x168] sm:$0xff] %v1878_v57 }
 0x11b   :  { %v764_v54 = vadd.f32 %v1044_v28, %v763_v47  ;;  %v896_v7 = vadd.f32 %v895_v46, %v833_v44 }
 0x11d   :  { %v897_v5 = vadd.f32 %v896_v7, %v834_v53  ;;  %v1048_v20 = vpop.f32.mrb[20].mxu0  ;;  %v765_v21 = vadd.f32 %v1045_v42, %v764_v54  ;;  %v1893_v19 = vpop.f32.mrb[16].mxu1 }
 0x11e   :  { %705 = vst [vmem:[%s2117_s5 + $0xb0] sm:$0xff] %v1048_v20  ;;  %v508_v22 = vpop.f32.mrb[21].mxu0  ;;  %v838_v36 = vmul.f32 %v1048_v20, %v1048_v20  ;;  %733 = vst [vmem:[%s2117_s5 + $0x190] sm:$0xff] %v1893_v19  ;;  %v1899_v29 = vpop.f32.mrb[17].mxu1 }
 0x11f   :  { %703 = vst [vmem:[%s2117_s5 + $0xa0] sm:$0xff] %v508_v22  ;;  %v766_v25 = vadd.f32 %v765_v21, %v508_v22  ;;  %v836_v34 = vmul.f32 %v508_v22, %v508_v22  ;;  %v898_v56 = vadd.f32 %v897_v5, %v835_v4  ;;  %v1049_v1 = vpop.f32.mrb[22].mxu0  ;;  %731 = vst [vmem:[%s2117_s5 + $0x180] sm:$0xff] %v1899_v29  ;;  %v1905_v31 = vpop.f32.mrb[18].mxu1 }
 0x120   :  { %706 = vst [vmem:[%s2117_s5 + $0xb8] sm:$0xff] %v1049_v1  ;;  %v511_v27 = vpop.f32.mrb[23].mxu0  ;;  %v839_v33 = vmul.f32 %v1049_v1, %v1049_v1  ;;  %734 = vst [vmem:[%s2117_s5 + $0x198] sm:$0xff] %v1905_v31  ;;  %v1914_v61 = vpop.f32.mrb[19].mxu1 }
 0x121   :  { %v899_v50 = vadd.f32 %v898_v56, %v836_v34  ;;  %704 = vst [vmem:[%s2117_s5 + $0xa8] sm:$0xff] %v511_v27  ;;  %v767_v30 = vadd.f32 %v766_v25, %v511_v27  ;;  %v837_v38 = vmul.f32 %v511_v27, %v511_v27  ;;  %732 = vst [vmem:[%s2117_s5 + $0x188] sm:$0xff] %v1914_v61 }
 0x123   :  { %v768_v10 = vadd.f32 %v1048_v20, %v767_v30  ;;  %v900_v37 = vadd.f32 %v899_v50, %v837_v38 }
 0x125   :  { %v901_v35 = vadd.f32 %v900_v37, %v838_v36  ;;  %v1052_v18 = vpop.f32.mrb[24].mxu0  ;;  %v769_v8 = vadd.f32 %v1049_v1, %v768_v10  ;;  %v1929_v32 = vpop.f32.mrb[20].mxu1  ;;  %v848_v36 = vmul.f32 %v1755_v12, %v1755_v12 }
 0x126   :  { %709 = vst [vmem:[%s2117_s5 + $0xd0] sm:$0xff] %v1052_v18  ;;  %v524_v58 = vpop.f32.mrb[25].mxu0  ;;  %v842_v26 = vmul.f32 %v1052_v18, %v1052_v18  ;;  %737 = vst [vmem:[%s2117_s5 + $0x1b0] sm:$0xff] %v1929_v32  ;;  %v1935_v60 = vpop.f32.mrb[21].mxu1 }
 0x127   :  { %707 = vst [vmem:[%s2117_s5 + $0xc0] sm:$0xff] %v524_v58  ;;  %v770_v16 = vadd.f32 %v769_v8, %v524_v58  ;;  %v840_v62 = vmul.f32 %v524_v58, %v524_v58  ;;  %v902_v3 = vadd.f32 %v901_v35, %v839_v33  ;;  %v1053_v55 = vpop.f32.mrb[26].mxu0  ;;  %735 = vst [vmem:[%s2117_s5 + $0x1a0] sm:$0xff] %v1935_v60  ;;  %v1941_v46 = vpop.f32.mrb[22].mxu1 }
 0x128   :  { %710 = vst [vmem:[%s2117_s5 + $0xd8] sm:$0xff] %v1053_v55  ;;  %v527_v39 = vpop.f32.mrb[27].mxu0  ;;  %v843_v2 = vmul.f32 %v1053_v55, %v1053_v55  ;;  %738 = vst [vmem:[%s2117_s5 + $0x1b8] sm:$0xff] %v1941_v46  ;;  %v1950_v44 = vpop.f32.mrb[23].mxu1  ;;  %v849_v58 = vmul.f32 %v1770_v24, %v1770_v24 }
 0x129   :  { %v903_v40 = vadd.f32 %v902_v3, %v840_v62  ;;  %708 = vst [vmem:[%s2117_s5 + $0xc8] sm:$0xff] %v527_v39  ;;  %v771_v17 = vadd.f32 %v770_v16, %v527_v39  ;;  %v841_v14 = vmul.f32 %v527_v39, %v527_v39  ;;  %736 = vst [vmem:[%s2117_s5 + $0x1a8] sm:$0xff] %v1950_v44 }
 0x12a   :  { %v850_v16 = vmul.f32 %v1749_v11, %v1749_v11  ;;  %v851_v39 = vmul.f32 %v1761_v23, %v1761_v23 }
 0x12b   :  { %v772_v28 = vadd.f32 %v1052_v18, %v771_v17  ;;  %v904_v51 = vadd.f32 %v903_v40, %v841_v14  ;;  %v852_v17 = vmul.f32 %v1791_v6, %v1791_v6 }
 0x12d   :  { %v905_v13 = vadd.f32 %v904_v51, %v842_v26  ;;  %v1056_v42 = vpop.f32.mrb[28].mxu0  ;;  %v773_v43 = vadd.f32 %v1053_v55, %v772_v28  ;;  %v1965_v1 = vpop.f32.mrb[24].mxu1 }
 0x12e   :  { %713 = vst [vmem:[%s2117_s5 + $0xf0] sm:$0xff] %v1056_v42  ;;  %v540_v47 = vpop.f32.mrb[29].mxu0  ;;  %v846_v25 = vmul.f32 %v1056_v42, %v1056_v42  ;;  %741 = vst [vmem:[%s2117_s5 + $0x1d0] sm:$0xff] %v1965_v1  ;;  %v1971_v27 = vpop.f32.mrb[25].mxu1 }
 0x12f   :  { %711 = vst [vmem:[%s2117_s5 + $0xe0] sm:$0xff] %v540_v47  ;;  %v774_v53 = vadd.f32 %v773_v43, %v540_v47  ;;  %v844_v54 = vmul.f32 %v540_v47, %v540_v47  ;;  %v906_v7 = vadd.f32 %v905_v13, %v843_v2  ;;  %v1057_v4 = vpop.f32.mrb[30].mxu0  ;;  %739 = vst [vmem:[%s2117_s5 + $0x1c0] sm:$0xff] %v1971_v27  ;;  %v1979_v10 = vpop.f32.mrb[26].mxu1 }
 0x130   :  { %714 = vst [vmem:[%s2117_s5 + $0xf8] sm:$0xff] %v1057_v4  ;;  %v543_v5 = vpop.f32.mrb[31].mxu0  ;;  %v847_v50 = vmul.f32 %v1057_v4, %v1057_v4  ;;  %742 = vst [vmem:[%s2117_s5 + $0x1d8] sm:$0xff] %v1979_v10  ;;  %v1985_v37 = vpop.f32.mrb[27].mxu1  ;;  %v853_v2 = vmul.f32 %v1806_v45, %v1806_v45  ;;  %v854_v13 = vmul.f32 %v1785_v48, %v1785_v48 }
 0x131   :  { %v907_v20 = vadd.f32 %v906_v7, %v844_v54  ;;  %712 = vst [vmem:[%s2117_s5 + $0xe8] sm:$0xff] %v543_v5  ;;  %v775_v21 = vadd.f32 %v774_v53, %v543_v5  ;;  %v845_v22 = vmul.f32 %v543_v5, %v543_v5  ;;  %740 = vst [vmem:[%s2117_s5 + $0x1c8] sm:$0xff] %v1985_v37 }
 0x132   :  { %v856_v54 = vmul.f32 %v1827_v9, %v1827_v9 }
 0x133   :  { %v776_v34 = vadd.f32 %v1056_v42, %v775_v21  ;;  %v908_v56 = vadd.f32 %v907_v20, %v845_v22  ;;  %v857_v20 = vmul.f32 %v1842_v49, %v1842_v49 }
 0x135   :  { %v909_v30 = vadd.f32 %v908_v56, %v846_v25  ;;  %v777_v38 = vadd.f32 %v1057_v4, %v776_v34  ;;  %v1998_v55 = vpop.f32.mrb[28].mxu1 }
 0x136   :  { %745 = vst [vmem:[%s2117_s5 + $0x1f0] sm:$0xff] %v1998_v55 }
 0x137   :  { %v778_v33 = vadd.f32 %v777_v38, %v1755_v12  ;;  %v910_v35 = vadd.f32 %v909_v30, %v847_v50  ;;  %v2004_v12 = vpop.f32.mrb[29].mxu1  ;;  %v861_v38 = vmul.f32 %v1878_v57, %v1878_v57 }
 0x138   :  { %743 = vst [vmem:[%s2117_s5 + $0x1e0] sm:$0xff] %v2004_v12 }
 0x139   :  { %v911_v18 = vadd.f32 %v910_v35, %v848_v36  ;;  %v779_v8 = vadd.f32 %v778_v33, %v1770_v24 }
 0x13b   :  { %v780_v62 = vadd.f32 %v1749_v11, %v779_v8  ;;  %v912_v3 = vadd.f32 %v911_v18, %v849_v58  ;;  %v2015_v11 = vpop.f32.mrb[30].mxu1 }
 0x13c   :  { %746 = vst [vmem:[%s2117_s5 + $0x1f8] sm:$0xff] %v2015_v11  ;;  %v2021_v14 = vpop.f32.mrb[31].mxu1 }
 0x13d   :  { %v913_v40 = vadd.f32 %v912_v3, %v850_v16  ;;  %v781_v24 = vadd.f32 %v1761_v23, %v780_v62  ;;  %744 = vst [vmem:[%s2117_s5 + $0x1e8] sm:$0xff] %v2021_v14  ;;  %v865_v62 = vmul.f32 %v1914_v61, %v1914_v61 }
 0x13f   :  { %v782_v26 = vadd.f32 %v781_v24, %v1791_v6  ;;  %v914_v23 = vadd.f32 %v913_v40, %v851_v39  ;;  %v855_v6 = vmul.f32 %v1797_v52, %v1797_v52 }
 0x141   :  { %v915_v28 = vadd.f32 %v914_v23, %v852_v17  ;;  %v783_v51 = vadd.f32 %v782_v26, %v1806_v45 }
 0x143   :  { %v784_v42 = vadd.f32 %v1785_v48, %v783_v51  ;;  %v916_v43 = vadd.f32 %v915_v28, %v853_v2  ;;  %v858_v48 = vmul.f32 %v1821_v41, %v1821_v41  ;;  %v869_v28 = vmul.f32 %v1950_v44, %v1950_v44 }
 0x145   :  { %v917_v47 = vadd.f32 %v916_v43, %v854_v13  ;;  %v785_v53 = vadd.f32 %v1797_v52, %v784_v42  ;;  %v859_v52 = vmul.f32 %v1833_v59, %v1833_v59 }
 0x147   :  { %v786_v7 = vadd.f32 %v785_v53, %v1827_v9  ;;  %v918_v4 = vadd.f32 %v917_v47, %v855_v6  ;;  %v860_v9 = vmul.f32 %v1863_v0, %v1863_v0  ;;  %v873_v53 = vmul.f32 %v1985_v37, %v1985_v37 }
 0x149   :  { %v919_v5 = vadd.f32 %v918_v4, %v856_v54  ;;  %v787_v45 = vadd.f32 %v786_v7, %v1842_v49 }
 0x14b   :  { %v788_v21 = vadd.f32 %v1821_v41, %v787_v45  ;;  %v920_v22 = vadd.f32 %v919_v5, %v857_v20  ;;  %v862_v41 = vmul.f32 %v1857_v63, %v1857_v63 }
 0x14d   :  { %v921_v25 = vadd.f32 %v920_v22, %v858_v48  ;;  %v789_v34 = vadd.f32 %v1833_v59, %v788_v21  ;;  %v863_v59 = vmul.f32 %v1869_v15, %v1869_v15  ;;  %v877_v21 = vmul.f32 %v2021_v14, %v2021_v14 }
 0x14f   :  { %v790_v56 = vadd.f32 %v789_v34, %v1863_v0  ;;  %v922_v50 = vadd.f32 %v921_v25, %v859_v52  ;;  %v864_v0 = vmul.f32 %v1899_v29, %v1899_v29 }
 0x151   :  { %v923_v30 = vadd.f32 %v922_v50, %v860_v9  ;;  %v791_v49 = vadd.f32 %v790_v56, %v1878_v57 }
 0x153   :  { %v792_v36 = vadd.f32 %v1857_v63, %v791_v49  ;;  %v924_v33 = vadd.f32 %v923_v30, %v861_v38  ;;  %v866_v63 = vmul.f32 %v1893_v19, %v1893_v19 }
 0x155   :  { %v925_v35 = vadd.f32 %v924_v33, %v862_v41  ;;  %v793_v18 = vadd.f32 %v1869_v15, %v792_v36  ;;  %v867_v15 = vmul.f32 %v1905_v31, %v1905_v31 }
 0x157   :  { %v794_v8 = vadd.f32 %v793_v18, %v1899_v29  ;;  %v926_v58 = vadd.f32 %v925_v35, %v863_v59  ;;  %v868_v29 = vmul.f32 %v1935_v60, %v1935_v60 }
 0x159   :  { %v927_v16 = vadd.f32 %v926_v58, %v864_v0  ;;  %v795_v57 = vadd.f32 %v794_v8, %v1914_v61 }
 0x15b   :  { %v796_v3 = vadd.f32 %v1893_v19, %v795_v57  ;;  %v928_v39 = vadd.f32 %v927_v16, %v865_v62  ;;  %v870_v19 = vmul.f32 %v1929_v32, %v1929_v32 }
 0x15d   :  { %v929_v40 = vadd.f32 %v928_v39, %v866_v63  ;;  %v797_v24 = vadd.f32 %v1905_v31, %v796_v3  ;;  %v871_v31 = vmul.f32 %v1941_v46, %v1941_v46 }
 0x15f   :  { %v798_v17 = vadd.f32 %v797_v24, %v1935_v60  ;;  %v930_v26 = vadd.f32 %v929_v40, %v867_v15  ;;  %v872_v60 = vmul.f32 %v1971_v27, %v1971_v27 }
 0x161   :  { %v931_v23 = vadd.f32 %v930_v26, %v868_v29  ;;  %v799_v61 = vadd.f32 %v798_v17, %v1950_v44 }
 0x163   :  { %v800_v51 = vadd.f32 %v1929_v32, %v799_v61  ;;  %v932_v2 = vadd.f32 %v931_v23, %v869_v28  ;;  %v874_v32 = vmul.f32 %v1965_v1, %v1965_v1 }
 0x165   :  { %v933_v13 = vadd.f32 %v932_v2, %v870_v19  ;;  %v801_v42 = vadd.f32 %v1941_v46, %v800_v51  ;;  %v875_v46 = vmul.f32 %v1979_v10, %v1979_v10 }
 0x167   :  { %v802_v43 = vadd.f32 %v801_v42, %v1971_v27  ;;  %v934_v6 = vadd.f32 %v933_v13, %v871_v31  ;;  %v876_v27 = vmul.f32 %v2004_v12, %v2004_v12 }
 0x169   :  { %v935_v47 = vadd.f32 %v934_v6, %v872_v60  ;;  %v803_v44 = vadd.f32 %v802_v43, %v1985_v37 }
 0x16b   :  { %v804_v54 = vadd.f32 %v1965_v1, %v803_v44  ;;  %v936_v7 = vadd.f32 %v935_v47, %v873_v53  ;;  %v878_v1 = vmul.f32 %v1998_v55, %v1998_v55 }
 0x16d   :  { %v937_v4 = vadd.f32 %v936_v7, %v874_v32  ;;  %v805_v5 = vadd.f32 %v1979_v10, %v804_v54  ;;  %v879_v10 = vmul.f32 %v2015_v11, %v2015_v11 }
 0x16f   :  { %v806_v45 = vadd.f32 %v805_v5, %v2004_v12  ;;  %v938_v20 = vadd.f32 %v937_v4, %v875_v46 }
 0x171   :  { %v939_v48 = vadd.f32 %v938_v20, %v876_v27  ;;  %v807_v37 = vadd.f32 %v806_v45, %v2021_v14 }
 0x173   :  { %v808_v22 = vadd.f32 %v1998_v55, %v807_v37  ;;  %v940_v52 = vadd.f32 %v939_v48, %v877_v21 }
 0x175   :  { %v809_v25 = vadd.f32 %v2015_v11, %v808_v22  ;;  %v941_v34 = vadd.f32 %v940_v52, %v878_v1 }
 0x177   :  { %v810_v12 = vrot.slane %v809_v25, 4  ;;  %v942_v9 = vadd.f32 %v941_v34, %v879_v10 }
 0x179   :  { %v811_v56 = vadd.f32 %v810_v12, %v809_v25  ;;  %v943_v50 = vrot.slane %v942_v9, 4 }
 0x17b   :  { %v812_v30 = vrot.slane %v811_v56, 2  ;;  %v944_v49 = vadd.f32 %v943_v50, %v942_v9 }
 0x17d   :  { %v813_v38 = vadd.f32 %v812_v30, %v811_v56  ;;  %v945_v14 = vrot.slane %v944_v49, 2 }
 0x17f   :  { %v814_v41 = vrot.slane %v813_v38, 1  ;;  %v946_v36 = vadd.f32 %v945_v14, %v944_v49 }
 0x181   :  { %v947_v33 = vrot.slane %v946_v36, 1  ;;  %v815_v55 = vadd.f32 %v814_v41, %v813_v38 }
 0x183   :  { %v948_v59 = vadd.f32 %v947_v33, %v946_v36 }
 0x185   :  { %v950_v35 = vsel %vm949_vm0, %v815_v55, %v948_v59 }
 0x186   :  { %951 = vst [vmem:[%s2118_s6] sm:$0x3] %v950_v35 }

// kernel: bottleneck_se_forward.8
= control target key start
LH: loop header
LB: loop body
LE: loop exit
PB: predicated region body
PF: predicated region fallthrough
CT: control target
= control target key end

     0   :  { %v63_v1 = vlaneseq  ;;  %vm365_vm0 = vcmask 1040384   ;;  %s685_s1 = inlined_call_operand.vmem [shape: bf16[128,128], index: 1, kind: input, shape index: {}]   ;;  %s686_s0 = inlined_call_operand.vmem [shape: f32[128,128], index: 0, kind: input, shape index: {}]   ;;  %s687_s2 = inlined_call_operand.vmem [shape: f32[2,128], index: 2, kind: input, shape index: {}]   ;;  %s688_s3 = inlined_call_operand.vmem [shape: f32[1,128], index: 3, kind: input, shape index: {}]   ;;  %s689_s4 = inlined_call_operand.vmem [shape: f32[1,128], index: 4, kind: input, shape index: {}]   ;;  %s690_s5 = inlined_call_operand.vmem [shape: f32[128,128], index: 5, kind: output, shape index: {0}]   ;;  %s691_s6 = inlined_call_operand.vmem [shape: f32[1,2,128], index: 6, kind: output, shape index: {1}]  }
   0x1   :  { %v450_v0 = vld [vmem:[%s685_s1] sm:$0xff]   ;;  %v451_v2 = vld [vmem:[%s685_s1 + $0x8] sm:$0xff]   ;;  %v452_v3 = vld [vmem:[%s685_s1 + $0x10] sm:$0xff]  }
   0x2   :  { %402 = vmatprep.subr.bf16.mxu0 %v450_v0  ;;  %434 = vmatprep.subr.bf16.mxu1 %v450_v0  ;;  %v64_v4 = vshrl.u32 %v63_v1, 7  ;;  %v453_v5 = vld [vmem:[%s685_s1 + $0x18] sm:$0xff]   ;;  %v23_v6 = vld [vmem:[%s686_s0] sm:$0xff]  ;;  %v24_v7 = vld [vmem:[%s686_s0 + $0x8] sm:$0xff] }
   0x3   :  { %403 = vmatpush3.bf16.msra.mxu0 %v450_v0  ;;  %442 = vmatpush3.bf16.msra.mxu1 %v450_v0  ;;  %v514_v8 = vld [vmem:[%s687_s2] ss:$0 sm:$0xff]  ;;  %v60_v10 = vld [vmem:[%s687_s2 + $0x1] sm:$0x1]  ;;  %v25_v15 = vld [vmem:[%s686_s0 + $0x10] sm:$0xff] }
   0x4   :  { %404 = vmatprep.subr.bf16.mxu0 %v451_v2  ;;  %435 = vmatprep.subr.bf16.mxu1 %v451_v2  ;;  %v65_v9 = vsub.s32 0, %v64_v4  ;;  %v61_v11 = vld [vmem:[%s688_s3] sm:$0x1]  ;;  %v44_v12 = vsub.f32 %v23_v6, %v514_v8  ;;  %v45_v13 = vsub.f32 %v24_v7, %v514_v8  ;;  %v26_v16 = vld [vmem:[%s686_s0 + $0x18] sm:$0xff]  ;;  %v46_v18 = vsub.f32 %v25_v15, %v514_v8  ;;  %v28_v20 = vld [vmem:[%s686_s0 + $0x28] sm:$0xff] }
   0x5   :  { %v62_v14 = vmul.f32 %v61_v11, %v60_v10  ;;  %v27_v17 = vld [vmem:[%s686_s0 + $0x20] sm:$0xff]  ;;  %v47_v19 = vsub.f32 %v26_v16, %v514_v8  ;;  %v29_v22 = vld [vmem:[%s686_s0 + $0x30] sm:$0xff]  ;;  %v49_v27 = vsub.f32 %v28_v20, %v514_v8  ;;  %v32_v28 = vld [vmem:[%s686_s0 + $0x48] sm:$0xff] }
   0x6   :  { %v48_v21 = vsub.f32 %v27_v17, %v514_v8  ;;  %v454_v23 = vld [vmem:[%s685_s1 + $0x20] sm:$0xff]   ;;  %v30_v32 = vld [vmem:[%s686_s0 + $0x38] sm:$0xff]  ;;  %v50_v33 = vsub.f32 %v29_v22, %v514_v8  ;;  %v33_v37 = vld [vmem:[%s686_s0 + $0x50] sm:$0xff]  ;;  %v53_v41 = vsub.f32 %v32_v28, %v514_v8 }
   0x7   :  { %405 = vmatpush3.bf16.msra.mxu0 %v451_v2  ;;  %443 = vmatpush3.bf16.msra.mxu1 %v451_v2  ;;  %v545_v24 = vrot.slane %v62_v14, %v65_v9  ;;  %v31_v25 = vld [vmem:[%s686_s0 + $0x40] sm:$0xff]  ;;  %v455_v38 = vld [vmem:[%s685_s1 + $0x28] sm:$0xff]   ;;  %v51_v44 = vsub.f32 %v30_v32, %v514_v8  ;;  %v34_v47 = vld [vmem:[%s686_s0 + $0x58] sm:$0xff]  ;;  %v54_v48 = vsub.f32 %v33_v37, %v514_v8 }
   0x8   :  { %406 = vmatprep.subr.bf16.mxu0 %v452_v3  ;;  %436 = vmatprep.subr.bf16.mxu1 %v452_v3  ;;  %v553_v26 = vld [vmem:[%s689_s4] ss:$0 sm:$0xff]  ;;  %v52_v36 = vsub.f32 %v31_v25, %v514_v8  ;;  %v456_v53 = vld [vmem:[%s685_s1 + $0x30] sm:$0xff]   ;;  %v36_v57 = vld [vmem:[%s686_s0 + $0x68] sm:$0xff]  ;;  %v55_v61 = vsub.f32 %v34_v47, %v514_v8 }
   0x9   :  { %v67_v29 = vmul.f32 %v545_v24, %v44_v12  ;;  %v68_v30 = vmul.f32 %v545_v24, %v45_v13  ;;  %v69_v31 = vmul.f32 %v545_v24, %v46_v18  ;;  %v70_v34 = vmul.f32 %v545_v24, %v47_v19  ;;  %v35_v52 = vld [vmem:[%s686_s0 + $0x60] sm:$0xff]  ;;  %v37_v2 = vld [vmem:[%s686_s0 + $0x70] sm:$0xff]  ;;  %v457_v9 = vld [vmem:[%s685_s1 + $0x38] sm:$0xff]  }
   0xa   :  { %v71_v35 = vmul.f32 %v545_v24, %v48_v21  ;;  %v72_v43 = vmul.f32 %v545_v24, %v49_v27  ;;  %v73_v51 = vmul.f32 %v545_v24, %v50_v33  ;;  %v75_v55 = vmul.f32 %v545_v24, %v52_v36 }
   0xb   :  { %407 = vmatpush3.bf16.msra.mxu0 %v452_v3  ;;  %444 = vmatpush3.bf16.msra.mxu1 %v452_v3  ;;  %v90_v39 = vadd.f32 %v553_v26, %v67_v29  ;;  %v91_v40 = vadd.f32 %v553_v26, %v68_v30  ;;  %v579_v42 = vadd.f32 %v553_v26, %v69_v31  ;;  %v38_v3 = vld [vmem:[%s686_s0 + $0x78] sm:$0xff] }
   0xc   :  { %408 = vmatprep.subr.bf16.mxu0 %v453_v5  ;;  %437 = vmatprep.subr.bf16.mxu1 %v453_v5  ;;  %v93_v49 = vadd.f32 %v553_v26, %v70_v34  ;;  %v94_v50 = vadd.f32 %v553_v26, %v71_v35  ;;  %v76_v56 = vmul.f32 %v545_v24, %v53_v41 }
   0xd   :  { %v106_v45 = vmax.f32 %v90_v39, 0.0  ;;  %v107_v46 = vmax.f32 %v91_v40, 0.0  ;;  %v108_v58 = vmax.f32 %v579_v42, 0.0  ;;  %v95_v59 = vadd.f32 %v553_v26, %v72_v43 }
   0xe   :  { %v74_v60 = vmul.f32 %v545_v24, %v51_v44  ;;  %v98_v62 = vadd.f32 %v553_v26, %v75_v55  ;;  %v99_v63 = vadd.f32 %v553_v26, %v76_v56  ;;  %v77_v0 = vmul.f32 %v545_v24, %v54_v48 }
   0xf   :  { %409 = vmatpush3.bf16.msra.mxu0 %v453_v5  ;;  %445 = vmatpush3.bf16.msra.mxu1 %v453_v5  ;;  %v122_v54 = vpack.c.bf16 %v107_v46, %v106_v45  ;;  %v56_v1 = vsub.f32 %v35_v52, %v514_v8  ;;  %v109_v4 = vmax.f32 %v93_v49, 0.0  ;;  %v110_v5 = vmax.f32 %v94_v50, 0.0 }
  0x10   :  { %410 = vmatprep.subr.bf16.mxu0 %v454_v23  ;;  %438 = vmatprep.subr.bf16.mxu1 %v454_v23  ;;  %v78_v6 = vmul.f32 %v545_v24, %v55_v61  ;;  %v57_v7 = vsub.f32 %v36_v57, %v514_v8  ;;  %v114_v10 = vmax.f32 %v98_v62, 0.0  ;;  %v115_v11 = vmax.f32 %v99_v63, 0.0 }
  0x11   :  { %418 = vmatprep.mubr.bf16.mxu0 %v122_v54  ;;  %v100_v12 = vadd.f32 %v553_v26, %v77_v0  ;;  %v79_v13 = vmul.f32 %v545_v24, %v56_v1  ;;  %v58_v16 = vsub.f32 %v37_v2, %v514_v8  ;;  %v59_v17 = vsub.f32 %v38_v3, %v514_v8 }
  0x12   :  { %v101_v14 = vadd.f32 %v553_v26, %v78_v6  ;;  %v80_v15 = vmul.f32 %v545_v24, %v57_v7  ;;  %v111_v18 = vmax.f32 %v95_v59, 0.0  ;;  %v126_v19 = vpack.c.bf16 %v115_v11, %v114_v10 }
  0x13   :  { %411 = vmatpush3.bf16.msra.mxu0 %v454_v23  ;;  %446 = vmatpush3.bf16.msra.mxu1 %v454_v23  ;;  %v116_v20 = vmax.f32 %v100_v12, 0.0  ;;  %v102_v21 = vadd.f32 %v553_v26, %v79_v13  ;;  %v81_v25 = vmul.f32 %v545_v24, %v58_v16  ;;  %v82_v27 = vmul.f32 %v545_v24, %v59_v17 }
  0x14   :  { %412 = vmatprep.subr.bf16.mxu0 %v455_v38  ;;  %439 = vmatprep.subr.bf16.mxu1 %v455_v38  ;;  %v117_v22 = vmax.f32 %v101_v14, 0.0  ;;  %v103_v23 = vadd.f32 %v553_v26, %v80_v15  ;;  %v96_v29 = vadd.f32 %v553_v26, %v73_v51  ;;  %v97_v8 = vadd.f32 %v553_v26, %v74_v60 }
  0x15   :  { %v118_v28 = vmax.f32 %v102_v21, 0.0  ;;  %426 = vmatprep.mubr.bf16.mxu1 %v126_v19  ;;  %v123_v31 = vpack.c.bf16 %v109_v4, %v108_v58  ;;  %v104_v33 = vadd.f32 %v553_v26, %v81_v25  ;;  %v105_v34 = vadd.f32 %v553_v26, %v82_v27 }
  0x16   :  { %v119_v30 = vmax.f32 %v103_v23, 0.0  ;;  %v127_v32 = vpack.c.bf16 %v117_v22, %v116_v20  ;;  %v124_v35 = vpack.c.bf16 %v111_v18, %v110_v5  ;;  %v112_v24 = vmax.f32 %v96_v29, 0.0 }
  0x17   :  { %413 = vmatpush3.bf16.msra.mxu0 %v455_v38  ;;  %447 = vmatpush3.bf16.msra.mxu1 %v455_v38  ;;  %v113_v37 = vmax.f32 %v97_v8, 0.0  ;;  %v120_v38 = vmax.f32 %v104_v33, 0.0  ;;  %v121_v39 = vmax.f32 %v105_v34, 0.0 }
  0x18   :  { %414 = vmatprep.subr.bf16.mxu0 %v456_v53  ;;  %440 = vmatprep.subr.bf16.mxu1 %v456_v53  ;;  %v128_v36 = vpack.c.bf16 %v119_v30, %v118_v28 }
  0x19   :  { %v125_v40 = vpack.c.bf16 %v113_v37, %v112_v24  ;;  %v129_v41 = vpack.c.bf16 %v121_v39, %v120_v38 }
  0x1b   :  { %415 = vmatpush3.bf16.msra.mxu0 %v456_v53  ;;  %448 = vmatpush3.bf16.msra.mxu1 %v456_v53 }
  0x1c   :  { %416 = vmatprep.subr.bf16.mxu0 %v457_v9  ;;  %441 = vmatprep.subr.bf16.mxu1 %v457_v9 }
  0x1f   :  { %417 = vmatpush3.bf16.msra.mxu0 %v457_v9  ;;  %449 = vmatpush3.bf16.msra.mxu1 %v457_v9 }
  0x22   :  { %419 = vmatmul.mubr.bf16.vlgmr.msra.gmra.mrb[0].mxu0 %v123_v31  ;;  %427 = vmatmul.mubr.bf16.vlgmr.msra.gmra.mrb[0].mxu1 %v127_v32 }
  0x23   :  { %422 = vmatprep.mubr.bf16.mxu0 %v124_v35  ;;  %430 = vmatprep.mubr.bf16.mxu1 %v128_v36 }
  0x2a   :  { %423 = vmatmul.mubr.bf16.gmra.mrb[4].mxu0 %v125_v40  ;;  %431 = vmatmul.mubr.bf16.gmra.mrb[4].mxu1 %v129_v41 }
  0xf5   :  { %v420_v42 = vpop.f32.mrb[0].mxu0  ;;  %v428_v43 = vpop.f32.mrb[0].mxu1 }
  0xf6   :  { %293 = vst [vmem:[%s690_s5 + $0x10] sm:$0xff] %v420_v42  ;;  %v228_v26 = vpop.f32.mrb[1].mxu0  ;;  %301 = vst [vmem:[%s690_s5 + $0x50] sm:$0xff] %v428_v43  ;;  %v260_v44 = vpop.f32.mrb[1].mxu1  ;;  %v330_v52 = vmul.f32 %v420_v42, %v420_v42  ;;  %v338_v21 = vmul.f32 %v428_v43, %v428_v43 }
  0xf7   :  { %291 = vst [vmem:[%s690_s5] sm:$0xff] %v228_v26  ;;  %v421_v45 = vpop.f32.mrb[2].mxu0  ;;  %299 = vst [vmem:[%s690_s5 + $0x40] sm:$0xff] %v260_v44  ;;  %v429_v46 = vpop.f32.mrb[2].mxu1  ;;  %v328_v49 = vmul.f32 %v228_v26, %v228_v26  ;;  %v336_v15 = vmul.f32 %v260_v44, %v260_v44 }
  0xf8   :  { %294 = vst [vmem:[%s690_s5 + $0x18] sm:$0xff] %v421_v45  ;;  %v231_v47 = vpop.f32.mrb[3].mxu0  ;;  %302 = vst [vmem:[%s690_s5 + $0x58] sm:$0xff] %v429_v46  ;;  %v263_v48 = vpop.f32.mrb[3].mxu1  ;;  %v331_v55 = vmul.f32 %v421_v45, %v421_v45  ;;  %v339_v25 = vmul.f32 %v429_v46, %v429_v46 }
  0xf9   :  { %292 = vst [vmem:[%s690_s5 + $0x8] sm:$0xff] %v231_v47  ;;  %v307_v50 = vadd.f32 %v231_v47, %v228_v26  ;;  %v329_v51 = vmul.f32 %v231_v47, %v231_v47  ;;  %300 = vst [vmem:[%s690_s5 + $0x48] sm:$0xff] %v263_v48  ;;  %v337_v20 = vmul.f32 %v263_v48, %v263_v48 }
  0xfb   :  { %v308_v53 = vadd.f32 %v420_v42, %v307_v50  ;;  %v344_v54 = vadd.f32 %v329_v51, %v328_v49 }
  0xfd   :  { %v345_v56 = vadd.f32 %v344_v54, %v330_v52  ;;  %v424_v57 = vpop.f32.mrb[4].mxu0  ;;  %v309_v58 = vadd.f32 %v421_v45, %v308_v53  ;;  %v432_v59 = vpop.f32.mrb[4].mxu1 }
  0xfe   :  { %297 = vst [vmem:[%s690_s5 + $0x30] sm:$0xff] %v424_v57  ;;  %v244_v60 = vpop.f32.mrb[5].mxu0  ;;  %305 = vst [vmem:[%s690_s5 + $0x70] sm:$0xff] %v432_v59  ;;  %v276_v61 = vpop.f32.mrb[5].mxu1  ;;  %v334_v9 = vmul.f32 %v424_v57, %v424_v57  ;;  %v342_v34 = vmul.f32 %v432_v59, %v432_v59 }
  0xff   :  { %295 = vst [vmem:[%s690_s5 + $0x20] sm:$0xff] %v244_v60  ;;  %v310_v62 = vadd.f32 %v309_v58, %v244_v60  ;;  %v332_v63 = vmul.f32 %v244_v60, %v244_v60  ;;  %v346_v0 = vadd.f32 %v345_v56, %v331_v55  ;;  %v425_v1 = vpop.f32.mrb[6].mxu0  ;;  %303 = vst [vmem:[%s690_s5 + $0x60] sm:$0xff] %v276_v61  ;;  %v433_v2 = vpop.f32.mrb[6].mxu1 }
 0x100   :  { %298 = vst [vmem:[%s690_s5 + $0x38] sm:$0xff] %v425_v1  ;;  %v247_v3 = vpop.f32.mrb[7].mxu0  ;;  %306 = vst [vmem:[%s690_s5 + $0x78] sm:$0xff] %v433_v2  ;;  %v279_v4 = vpop.f32.mrb[7].mxu1  ;;  %v335_v12 = vmul.f32 %v425_v1, %v425_v1  ;;  %v340_v29 = vmul.f32 %v276_v61, %v276_v61  ;;  %v343_v24 = vmul.f32 %v433_v2, %v433_v2 }
 0x101   :  { %v347_v5 = vadd.f32 %v346_v0, %v332_v63  ;;  %296 = vst [vmem:[%s690_s5 + $0x28] sm:$0xff] %v247_v3  ;;  %v311_v6 = vadd.f32 %v310_v62, %v247_v3  ;;  %v333_v7 = vmul.f32 %v247_v3, %v247_v3  ;;  %304 = vst [vmem:[%s690_s5 + $0x68] sm:$0xff] %v279_v4 }
 0x102   :  { %v341_v33 = vmul.f32 %v279_v4, %v279_v4 }
 0x103   :  { %v312_v10 = vadd.f32 %v424_v57, %v311_v6  ;;  %v348_v11 = vadd.f32 %v347_v5, %v333_v7 }
 0x105   :  { %v349_v13 = vadd.f32 %v348_v11, %v334_v9  ;;  %v313_v14 = vadd.f32 %v425_v1, %v312_v10 }
 0x107   :  { %v314_v16 = vadd.f32 %v313_v14, %v260_v44  ;;  %v350_v17 = vadd.f32 %v349_v13, %v335_v12 }
 0x109   :  { %v351_v18 = vadd.f32 %v350_v17, %v336_v15  ;;  %v315_v19 = vadd.f32 %v314_v16, %v263_v48 }
 0x10b   :  { %v316_v22 = vadd.f32 %v428_v43, %v315_v19  ;;  %v352_v23 = vadd.f32 %v351_v18, %v337_v20 }
 0x10d   :  { %v353_v27 = vadd.f32 %v352_v23, %v338_v21  ;;  %v317_v28 = vadd.f32 %v429_v46, %v316_v22 }
 0x10f   :  { %v318_v8 = vadd.f32 %v317_v28, %v276_v61  ;;  %v354_v30 = vadd.f32 %v353_v27, %v339_v25 }
 0x111   :  { %v355_v31 = vadd.f32 %v354_v30, %v340_v29  ;;  %v319_v32 = vadd.f32 %v318_v8, %v279_v4 }
 0x113   :  { %v320_v35 = vadd.f32 %v432_v59, %v319_v32  ;;  %v356_v36 = vadd.f32 %v355_v31, %v341_v33 }
 0x115   :  { %v321_v37 = vadd.f32 %v433_v2, %v320_v35  ;;  %v357_v38 = vadd.f32 %v356_v36, %v342_v34 }
 0x117   :  { %v322_v39 = vrot.slane %v321_v37, 4  ;;  %v358_v40 = vadd.f32 %v357_v38, %v343_v24 }
 0x119   :  { %v323_v41 = vadd.f32 %v322_v39, %v321_v37  ;;  %v359_v42 = vrot.slane %v358_v40, 4 }
 0x11b   :  { %v324_v43 = vrot.slane %v323_v41, 2  ;;  %v360_v26 = vadd.f32 %v359_v42, %v358_v40 }
 0x11d   :  { %v325_v44 = vadd.f32 %v324_v43, %v323_v41  ;;  %v361_v45 = vrot.slane %v360_v26, 2 }
 0x11f   :  { %v326_v46 = vrot.slane %v325_v44, 1  ;;  %v362_v47 = vadd.f32 %v361_v45, %v360_v26 }
 0x121   :  { %v363_v48 = vrot.slane %v362_v47, 1  ;;  %v327_v49 = vadd.f32 %v326_v46, %v325_v44 }
 0x123   :  { %v364_v50 = vadd.f32 %v363_v48, %v362_v47 }
 0x125   :  { %v366_v51 = vsel %vm365_vm0, %v327_v49, %v364_v50 }
 0x126   :  { %367 = vst [vmem:[%s691_s6] sm:$0x3] %v366_v51 }

// kernel: bottleneck_se_forward.7
= control target key start
LH: loop header
LB: loop body
LE: loop exit
PB: predicated region body
PF: predicated region fallthrough
CT: control target
= control target key end

     0   :  { %s2999_s21 = smov 0   ;;  %s3406_s0 = inlined_call_operand.vmem [shape: f32[2,16,16,128], index: 0, kind: input, shape index: {}]   ;;  %s3407_s1 = inlined_call_operand.vmem [shape: f32[2,128], index: 1, kind: input, shape index: {}]   ;;  %s3408_s2 = inlined_call_operand.vmem [shape: f32[1,128], index: 2, kind: input, shape index: {}]   ;;  %s3409_s3 = inlined_call_operand.vmem [shape: f32[1,128], index: 3, kind: input, shape index: {}]   ;;  %s3410_s4 = inlined_call_operand.vmem [shape: bf16[9,128,128], index: 4, kind: input, shape index: {}]   ;;  %s3411_s5 = inlined_call_operand.vmem [shape: f32[2,8,8,128], index: 5, kind: output, shape index: {0}]   ;;  %s3412_s6 = inlined_call_operand.vmem [shape: f32[2,2,128], index: 6, kind: output, shape index: {1}]  }
   0x1 LB: > { %s2254_s22 = sadd.s32 4294967295, %s2961_s21   ;;  %p2258_p0 = scmp.ge.s32.totalorder %s2961_s21, 1  ;;  %s2961_s21 = sphi %s2999_s21, %s17_s21  }
   0x2   : > { %p215_p1 = scmp.lt.s32.totalorder %s2961_s21, 3 }
   0x4   : > { %p216_p2 = pnand %p2258_p0, %p215_p1 }
   0x5   : > { %v2883_v0 = vld [vmem:[%s3410_s4] sm:$0xff] (!%p216_p2)   ;;  %v2885_v2 = vld [vmem:[%s3410_s4 + $0x8] sm:$0xff] (!%p216_p2)   ;;  %p3018_p3 = scmp.lt.s32.totalorder (!%p216_p2), %s2254_s22, 1  ;;  %v2963_v3 = vmov (!%p216_p2), 0.0   ;;  %v2887_v5 = vld [vmem:[%s3410_s4 + $0x10] sm:$0xff] (!%p216_p2)   ;;  %v336_v8 = vlaneseq (!%p216_p2)  ;;  %vm2117_vm0 = vcmask (!%p216_p2), 1040384  }
   0x6   : > { %219 = sbr.rel (%p216_p2) target bundleno = 423 (0x1a7), region = 40  ;;  %v2884_v1 = vld [vmem:[%s3410_s4 + $0x100] sm:$0xff] (!%p216_p2)   ;;  %2578 = vmatprep.subr.bf16.mxu1 (!%p216_p2), %v2883_v0  ;;  %443 = vst [vmem:[#allocation2] sm:$0xff] (!%p216_p2), %v2963_v3  ;;  %444 = vst [vmem:[#allocation2 + $0x8] sm:$0xff] (!%p216_p2), %v2963_v3  ;;  %v2886_v4 = vld [vmem:[%s3410_s4 + $0x108] sm:$0xff] (!%p216_p2)  }
   0x7   : > { %445 = vst [vmem:[#allocation2 + $0x10] sm:$0xff] (!%p216_p2), %v2963_v3  ;;  %454 = vst [vmem:[#allocation2 + $0x47] sm:$0x1] (!%p216_p2), %v2963_v3  ;;  %2674 = vmatprep.subr.bf16.mxu0 (!%p216_p2), %v2884_v1  ;;  %2579 = vmatpush3.bf16.msra.mxu1 (!%p216_p2), %v2883_v0  ;;  %v2888_v6 = vld [vmem:[%s3410_s4 + $0x110] sm:$0xff] (!%p216_p2)   ;;  %v2889_v7 = vld [vmem:[%s3410_s4 + $0x18] sm:$0xff] (!%p216_p2)   ;;  %v337_v11 = vshrl.u32 (!%p216_p2), %v336_v8, 7 }
   0x8   : > { %453 = vst [vmem:[#allocation2 + $0x27] sm:$0x1] (!%p216_p2), %v2963_v3  ;;  %455 = vst [vmem:[#allocation2 + $0x67] sm:$0x1] (!%p216_p2), %v2963_v3  ;;  %2675 = vmatpush3.bf16.msra.mxu0 (!%p216_p2), %v2884_v1  ;;  %2580 = vmatprep.subr.bf16.mxu1 (!%p216_p2), %v2885_v2  ;;  %v2890_v9 = vld [vmem:[%s3410_s4 + $0x118] sm:$0xff] (!%p216_p2)   ;;  %v2891_v10 = vld [vmem:[%s3410_s4 + $0x20] sm:$0xff] (!%p216_p2)  }
   0x9   : > { %456 = vst [vmem:[#allocation2 + $0x87] sm:$0x1] (!%p216_p2), %v2963_v3  ;;  %457 = vst [vmem:[#allocation2 + $0xa7] sm:$0x1] (!%p216_p2), %v2963_v3  ;;  %2676 = vmatprep.subr.bf16.mxu0 (!%p216_p2), %v2886_v4  ;;  %v2892_v12 = vld [vmem:[%s3410_s4 + $0x120] sm:$0xff] (!%p216_p2)   ;;  %v2893_v13 = vld [vmem:[%s3410_s4 + $0x28] sm:$0xff] (!%p216_p2)  }
   0xa   : > { %458 = vst [vmem:[#allocation2 + $0xc7] sm:$0x1] (!%p216_p2), %v2963_v3  ;;  %459 = vst [vmem:[#allocation2 + $0xe7] sm:$0x1] (!%p216_p2), %v2963_v3  ;;  %v3063_v16 = vld [vmem:[%s3407_s1] ss:$0 sm:$0xff] (!%p216_p2) }
   0xb   : > { %460 = vst [vmem:[#allocation2 + $0x107] sm:$0x1] (!%p216_p2), %v2963_v3  ;;  %461 = vst [vmem:[#allocation2 + $0x127] sm:$0x1] (!%p216_p2), %v2963_v3  ;;  %2581 = vmatpush3.bf16.msra.mxu1 (!%p216_p2), %v2885_v2  ;;  %v338_v17 = vsub.s32 (!%p216_p2), 0, %v337_v11  ;;  %v2894_v18 = vld [vmem:[%s3410_s4 + $0x128] sm:$0xff] (!%p216_p2)  }
   0xc   : > { %462 = vst [vmem:[#allocation2 + $0x147] sm:$0x1] (!%p216_p2), %v2963_v3  ;;  %463 = vst [vmem:[#allocation2 + $0x167] sm:$0x1] (!%p216_p2), %v2963_v3  ;;  %2677 = vmatpush3.bf16.msra.mxu0 (!%p216_p2), %v2886_v4  ;;  %2582 = vmatprep.subr.bf16.mxu1 (!%p216_p2), %v2887_v5  ;;  %v333_v19 = vld [vmem:[%s3407_s1 + $0x1] sm:$0x1] (!%p216_p2) }
   0xd   : > { %464 = vst [vmem:[#allocation2 + $0x187] sm:$0x1] %v2963_v3  ;;  %465 = vst [vmem:[#allocation2 + $0x1a7] sm:$0x1] %v2963_v3  ;;  %s3415_s22 = smov (!%p3018_p3, %s2254_s22), 1  ;;  %2678 = vmatprep.subr.bf16.mxu0 %v2888_v6  ;;  %v2895_v21 = vld [vmem:[%s3410_s4 + $0x30] sm:$0xff]  }
   0xe   : > { %466 = vst [vmem:[#allocation2 + $0x1c7] sm:$0x1] %v2963_v3  ;;  %467 = vst [vmem:[#allocation2 + $0x1e7] sm:$0x1] %v2963_v3  ;;  %s2468_s16 = sshll.u32 %s3415_s22, 8  ;;  %v2896_v25 = vld [vmem:[%s3410_s4 + $0x130] sm:$0xff]  }
   0xf   : > { %468 = vst [vmem:[#allocation2 + $0x207] sm:$0x1] %v2963_v3  ;;  %2583 = vmatpush3.bf16.msra.mxu1 %v2887_v5  ;;  %s3053_s25 = scalar_lea.vmem %s3406_s0, %s2468_s16  ;;  %v334_v20 = vld [vmem:[%s3408_s2] sm:$0x1]  ;;  %v2897_v43 = vld [vmem:[%s3410_s4 + $0x38] sm:$0xff]   ;;  %s2469_s29 = sshll.u32 %s3415_s22, 6 }
  0x10   : > { %2679 = vmatpush3.bf16.msra.mxu0 %v2888_v6  ;;  %2584 = vmatprep.subr.bf16.mxu1 %v2889_v7  ;;  %v266_v14 = vld [vmem:[%s3053_s25 + $0x10] sm:$0xff]  ;;  %v267_v15 = vld [vmem:[%s3053_s25 + $0x18] sm:$0xff]  ;;  %v335_v24 = vmul.f32 %v334_v20, %v333_v19  ;;  %v264_v26 = vld [vmem:[%s3053_s25] sm:$0xff]  ;;  %s258_s8 = scalar_lea.vmem %s3411_s5, %s2469_s29  ;;  %s2263_s9 = sshll.u32 %s3415_s22, 1 }
  0x11   : > { %2680 = vmatprep.subr.bf16.mxu0 %v2890_v9  ;;  %v303_v22 = vsub.f32 %v266_v14, %v3063_v16  ;;  %v304_v23 = vsub.f32 %v267_v15, %v3063_v16  ;;  %v265_v27 = vld [vmem:[%s3053_s25 + $0x8] sm:$0xff]  ;;  %v268_v29 = vld [vmem:[%s3053_s25 + $0x20] sm:$0xff]  ;;  %v301_v31 = vsub.f32 %v264_v26, %v3063_v16  ;;  %v270_v36 = vld [vmem:[%s3053_s25 + $0x30] sm:$0xff]  ;;  %s262_s12 = scalar_lea.vmem %s3412_s6, %s2263_s9 }
  0x12   : > { %v3084_v28 = vrot.slane %v335_v24, %v338_v17  ;;  %v269_v30 = vld [vmem:[%s3053_s25 + $0x28] sm:$0xff]  ;;  %v302_v32 = vsub.f32 %v265_v27, %v3063_v16  ;;  %v3093_v33 = vld [vmem:[%s3409_s3] ss:$0 sm:$0xff]  ;;  %v305_v34 = vsub.f32 %v268_v29, %v3063_v16  ;;  %v271_v41 = vld [vmem:[%s3053_s25 + $0x38] sm:$0xff]  ;;  %v307_v48 = vsub.f32 %v270_v36, %v3063_v16 }
  0x13   : > { %2585 = vmatpush3.bf16.msra.mxu1 %v2889_v7  ;;  %v306_v35 = vsub.f32 %v269_v30, %v3063_v16  ;;  %v274_v42 = vld [vmem:[%s3053_s25 + $0x50] sm:$0xff]  ;;  %v2898_v44 = vld [vmem:[%s3410_s4 + $0x138] sm:$0xff]   ;;  %v308_v49 = vsub.f32 %v271_v41, %v3063_v16  ;;  %v272_v53 = vld [vmem:[%s3053_s25 + $0x40] sm:$0xff] }
  0x14   : > { %2681 = vmatpush3.bf16.msra.mxu0 %v2890_v9  ;;  %2586 = vmatprep.subr.bf16.mxu1 %v2891_v10  ;;  %v342_v37 = vmul.f32 %v3084_v28, %v303_v22  ;;  %v343_v38 = vmul.f32 %v3084_v28, %v304_v23  ;;  %v340_v39 = vmul.f32 %v3084_v28, %v301_v31  ;;  %v275_v47 = vld [vmem:[%s3053_s25 + $0x58] sm:$0xff]  ;;  %v273_v58 = vld [vmem:[%s3053_s25 + $0x48] sm:$0xff]  ;;  %v276_v63 = vld [vmem:[%s3053_s25 + $0x60] sm:$0xff] }
  0x15   : > { %2682 = vmatprep.subr.bf16.mxu0 %v2892_v12  ;;  %v341_v40 = vmul.f32 %v3084_v28, %v302_v32  ;;  %v344_v45 = vmul.f32 %v3084_v28, %v305_v34  ;;  %v345_v46 = vmul.f32 %v3084_v28, %v306_v35  ;;  %v311_v57 = vsub.f32 %v274_v42, %v3063_v16  ;;  %v277_v4 = vld [vmem:[%s3053_s25 + $0x68] sm:$0xff]  ;;  %v3131_v5 = vld [vmem:[%s3410_s4 + $0x40] sm:$0xff]   ;;  %v278_v42 = vld [vmem:[%s3053_s25 + $0x70] sm:$0xff] }
  0x16   : > { %v381_v50 = vadd.f32 %v3093_v33, %v342_v37  ;;  %v382_v51 = vadd.f32 %v3093_v33, %v343_v38  ;;  %v379_v52 = vadd.f32 %v3093_v33, %v340_v39  ;;  %v312_v62 = vsub.f32 %v275_v47, %v3063_v16  ;;  %v3139_v9 = vld [vmem:[%s3410_s4 + $0x140] sm:$0xff]  }
  0x17   : > { %2587 = vmatpush3.bf16.msra.mxu1 %v2891_v10  ;;  %v380_v54 = vadd.f32 %v3093_v33, %v341_v40  ;;  %v383_v55 = vadd.f32 %v3093_v33, %v344_v45  ;;  %v384_v56 = vadd.f32 %v3093_v33, %v345_v46  ;;  %v346_v3 = vmul.f32 %v3084_v28, %v307_v48  ;;  %v518_v19 = vld [vmem:[#allocation2 + $0x7] ss:$2 sm:$0xff]  ;;  %v283_v46 = vld [vmem:[%s3053_s25 + $0x98] sm:$0xff] }
  0x18   : > { %2683 = vmatpush3.bf16.msra.mxu0 %v2892_v12  ;;  %2588 = vmatprep.subr.bf16.mxu1 %v2893_v13  ;;  %v413_v59 = vmax.f32 %v381_v50, 0.0  ;;  %v414_v60 = vmax.f32 %v382_v51, 0.0  ;;  %v411_v61 = vmax.f32 %v379_v52, 0.0  ;;  %v347_v6 = vmul.f32 %v3084_v28, %v308_v49  ;;  %v282_v45 = vld [vmem:[%s3053_s25 + $0x90] sm:$0xff]  ;;  %v280_v52 = vld [vmem:[%s3053_s25 + $0x80] sm:$0xff] }
  0x19   : > { %2684 = vmatprep.subr.bf16.mxu0 %v2894_v18  ;;  %v412_v0 = vmax.f32 %v380_v54, 0.0  ;;  %v415_v1 = vmax.f32 %v383_v55, 0.0  ;;  %v416_v2 = vmax.f32 %v384_v56, 0.0  ;;  %v350_v7 = vmul.f32 %v3084_v28, %v311_v57  ;;  %v284_v54 = vld [vmem:[%s3053_s25 + $0xa0] sm:$0xff] }
  0x1a   : > { %487 = vst [vmem:[#allocation2 + $0x48] sm:$0xff] %v413_v59  ;;  %488 = vst [vmem:[#allocation2 + $0x50] sm:$0xff] %v414_v60  ;;  %v351_v8 = vmul.f32 %v3084_v28, %v312_v62  ;;  %v385_v10 = vadd.f32 %v3093_v33, %v346_v3  ;;  %v309_v11 = vsub.f32 %v272_v53, %v3063_v16  ;;  %v281_v53 = vld [vmem:[%s3053_s25 + $0x88] sm:$0xff] }
  0x1b   : > { %2589 = vmatpush3.bf16.msra.mxu1 %v2893_v13  ;;  %485 = vst [vmem:[#allocation2 + $0x28] sm:$0xff] %v411_v61  ;;  %486 = vst [vmem:[#allocation2 + $0x30] sm:$0xff] %v412_v0  ;;  %v310_v12 = vsub.f32 %v273_v58, %v3063_v16  ;;  %v313_v13 = vsub.f32 %v276_v63, %v3063_v16  ;;  %v386_v14 = vadd.f32 %v3093_v33, %v347_v6  ;;  %v285_v58 = vld [vmem:[%s3053_s25 + $0xa8] sm:$0xff] }
  0x1c   : > { %2685 = vmatpush3.bf16.msra.mxu0 %v2894_v18  ;;  %2590 = vmatprep.subr.bf16.mxu1 %v2895_v21  ;;  %489 = vst [vmem:[#allocation2 + $0x68] sm:$0xff] %v415_v1  ;;  %490 = vst [vmem:[#allocation2 + $0x70] sm:$0xff] %v416_v2  ;;  %v389_v15 = vadd.f32 %v3093_v33, %v350_v7  ;;  %v390_v17 = vadd.f32 %v3093_v33, %v351_v8  ;;  %v417_v20 = vmax.f32 %v385_v10, 0.0  ;;  %v2901_v3 = vld [vmem:[%s3410_s4 + $0x48] sm:$0xff]   ;;  %v286_v8 = vld [vmem:[%s3053_s25 + $0xb0] sm:$0xff] }
  0x1d   : > { %2686 = vmatprep.subr.bf16.mxu0 %v2896_v25  ;;  %v314_v18 = vsub.f32 %v277_v4, %v3063_v16  ;;  %v349_v22 = vmul.f32 %v3084_v28, %v310_v12  ;;  %v352_v23 = vmul.f32 %v3084_v28, %v313_v13  ;;  %v418_v24 = vmax.f32 %v386_v14, 0.0  ;;  %v287_v14 = vld [vmem:[%s3053_s25 + $0xb8] sm:$0xff] }
  0x1e   : > { %v422_v26 = vmax.f32 %v390_v17, 0.0  ;;  %491 = vst [vmem:[#allocation2 + $0x88] sm:$0xff] %v417_v20  ;;  %v315_v47 = vsub.f32 %v278_v42, %v3063_v16  ;;  %v319_v49 = vsub.f32 %v282_v45, %v3063_v16  ;;  %v320_v50 = vsub.f32 %v283_v46, %v3063_v16  ;;  %v292_v45 = vld [vmem:[%s3053_s25 + $0xe0] sm:$0xff]  ;;  %v293_v46 = vld [vmem:[%s3053_s25 + $0xe8] sm:$0xff] }
  0x1f   : > { %2591 = vmatpush3.bf16.msra.mxu1 %v2895_v21  ;;  %v348_v21 = vmul.f32 %v3084_v28, %v309_v11  ;;  %v353_v27 = vmul.f32 %v3084_v28, %v314_v18  ;;  %v388_v30 = vadd.f32 %v3093_v33, %v349_v22  ;;  %v391_v31 = vadd.f32 %v3093_v33, %v352_v23  ;;  %v2902_v18 = vld [vmem:[%s3410_s4 + $0x148] sm:$0xff]  }
  0x20   : > { %2687 = vmatpush3.bf16.msra.mxu0 %v2896_v25  ;;  %2592 = vmatprep.subr.bf16.mxu1 %v2897_v43  ;;  %v421_v25 = vmax.f32 %v389_v15, 0.0  ;;  %492 = vst [vmem:[#allocation2 + $0x90] sm:$0xff] %v418_v24  ;;  %496 = vst [vmem:[#allocation2 + $0xd0] sm:$0xff] %v422_v26  ;;  %v354_v51 = vmul.f32 %v3084_v28, %v315_v47  ;;  %v358_v56 = vmul.f32 %v3084_v28, %v319_v49  ;;  %v290_v15 = vld [vmem:[%s3053_s25 + $0xd0] sm:$0xff]  ;;  %v291_v24 = vld [vmem:[%s3053_s25 + $0xd8] sm:$0xff] }
  0x21   : > { %2688 = vmatprep.subr.bf16.mxu0 %v2898_v44  ;;  %v387_v29 = vadd.f32 %v3093_v33, %v348_v21  ;;  %v392_v32 = vadd.f32 %v3093_v33, %v353_v27  ;;  %v520_v34 = vld [vmem:[#allocation2 + $0x47] ss:$2 sm:$0xff]  ;;  %v420_v36 = vmax.f32 %v388_v30, 0.0  ;;  %v423_v37 = vmax.f32 %v391_v31, 0.0 }
  0x22   : > { %495 = vst [vmem:[#allocation2 + $0xc8] sm:$0xff] %v421_v25  ;;  %v533_v38 = vpack.c.bf16 %v520_v34, %v518_v19  ;;  %v1197_v39 = vld [vmem:[#allocation2 + $0x28] ss:$2 sm:$0xff]  ;;  %v359_v57 = vmul.f32 %v3084_v28, %v320_v50  ;;  %v317_v59 = vsub.f32 %v280_v52, %v3063_v16  ;;  %v393_v62 = vadd.f32 %v3093_v33, %v354_v51  ;;  %v288_v31 = vld [vmem:[%s3053_s25 + $0xc0] sm:$0xff] }
  0x23   : > { %2593 = vmatpush3.bf16.msra.mxu1 %v2897_v43  ;;  %v419_v35 = vmax.f32 %v387_v29, 0.0  ;;  %v1199_v40 = vld [vmem:[#allocation2 + $0x68] ss:$2 sm:$0xff]  ;;  %v424_v41 = vmax.f32 %v392_v32, 0.0  ;;  %494 = vst [vmem:[#allocation2 + $0xb0] sm:$0xff] %v420_v36  ;;  %497 = vst [vmem:[#allocation2 + $0xe8] sm:$0xff] %v423_v37  ;;  %v318_v63 = vsub.f32 %v281_v53, %v3063_v16  ;;  %v321_v0 = vsub.f32 %v284_v54, %v3063_v16 }
  0x24   : > { %2689 = vmatpush3.bf16.msra.mxu0 %v2898_v44  ;;  %2602 = vmatprep.subr.bf16.mxu1 %v3131_v5  ;;  %v1212_v43 = vpack.c.bf16 %v1199_v40, %v1197_v39  ;;  %v279_v44 = vld [vmem:[%s3053_s25 + $0x78] sm:$0xff]  ;;  %v322_v1 = vsub.f32 %v285_v58, %v3063_v16  ;;  %v397_v6 = vadd.f32 %v3093_v33, %v358_v56  ;;  %v425_v10 = vmax.f32 %v393_v62, 0.0  ;;  %v2903_v19 = vld [vmem:[%s3410_s4 + $0x50] sm:$0xff]   ;;  %v289_v36 = vld [vmem:[%s3053_s25 + $0xc8] sm:$0xff] }
  0x25   : > { %2698 = vmatprep.subr.bf16.mxu0 %v3139_v9  ;;  %493 = vst [vmem:[#allocation2 + $0xa8] sm:$0xff] %v419_v35  ;;  %2594 = vmatprep.mubr.bf16.mxu1 %v533_v38  ;;  %498 = vst [vmem:[#allocation2 + $0xf0] sm:$0xff] %v424_v41  ;;  %v316_v48 = vsub.f32 %v279_v44, %v3063_v16  ;;  %v398_v7 = vadd.f32 %v3093_v33, %v359_v57  ;;  %v2904_v47 = vld [vmem:[%s3410_s4 + $0x150] sm:$0xff]   ;;  %v2906_v62 = vld [vmem:[%s3410_s4 + $0x158] sm:$0xff]  }
  0x26   : > { %2690 = vmatprep.mubr.bf16.mxu0 %v1212_v43  ;;  %v356_v11 = vmul.f32 %v3084_v28, %v317_v59  ;;  %v357_v12 = vmul.f32 %v3084_v28, %v318_v63  ;;  %v360_v13 = vmul.f32 %v3084_v28, %v321_v0  ;;  %v429_v21 = vmax.f32 %v397_v6, 0.0  ;;  %499 = vst [vmem:[#allocation2 + $0x108] sm:$0xff] %v425_v10  ;;  %v2907_v6 = vld [vmem:[%s3410_s4 + $0x60] sm:$0xff]  }
  0x27   : > { %v355_v55 = vmul.f32 %v3084_v28, %v316_v48  ;;  %v522_v60 = vld [vmem:[#allocation2 + $0x87] ss:$2 sm:$0xff]  ;;  %v430_v22 = vmax.f32 %v398_v7, 0.0  ;;  %v361_v23 = vmul.f32 %v3084_v28, %v322_v1  ;;  %v323_v30 = vsub.f32 %v286_v8, %v3063_v16 }
  0x28   : > { %v395_v26 = vadd.f32 %v3093_v33, %v356_v11  ;;  %v396_v27 = vadd.f32 %v3093_v33, %v357_v12  ;;  %v399_v29 = vadd.f32 %v3093_v33, %v360_v13  ;;  %503 = vst [vmem:[#allocation2 + $0x148] sm:$0xff] %v429_v21  ;;  %v324_v34 = vsub.f32 %v287_v14, %v3063_v16  ;;  %v2908_v13 = vld [vmem:[%s3410_s4 + $0x160] sm:$0xff]   ;;  %v2909_v14 = vld [vmem:[%s3410_s4 + $0x68] sm:$0xff]  }
  0x29   : > { %v524_v61 = vld [vmem:[#allocation2 + $0xc7] ss:$2 sm:$0xff]  ;;  %v394_v4 = vadd.f32 %v3093_v33, %v355_v55  ;;  %504 = vst [vmem:[#allocation2 + $0x150] sm:$0xff] %v430_v22  ;;  %v327_v35 = vsub.f32 %v290_v15, %v3063_v16  ;;  %v328_v40 = vsub.f32 %v291_v24, %v3063_v16  ;;  %v362_v42 = vmul.f32 %v3084_v28, %v323_v30  ;;  %v675_v24 = vld [vmem:[#allocation2 + $0x8] ss:$2 sm:$0xff] }
  0x2a   : > { %v534_v2 = vpack.c.bf16 %v524_v61, %v522_v60  ;;  %v427_v37 = vmax.f32 %v395_v26, 0.0  ;;  %v428_v38 = vmax.f32 %v396_v27, 0.0  ;;  %v431_v39 = vmax.f32 %v399_v29, 0.0  ;;  %v2910_v22 = vld [vmem:[%s3410_s4 + $0x168] sm:$0xff]  }
  0x2b   : > { %v426_v20 = vmax.f32 %v394_v4, 0.0  ;;  %v363_v43 = vmul.f32 %v3084_v28, %v324_v34  ;;  %v366_v44 = vmul.f32 %v3084_v28, %v327_v35  ;;  %v367_v48 = vmul.f32 %v3084_v28, %v328_v40  ;;  %v677_v26 = vld [vmem:[#allocation2 + $0x48] ss:$2 sm:$0xff]  ;;  %v1371_v30 = vld [vmem:[#allocation2 + $0x29] ss:$2 sm:$0xff] }
  0x2c   : > { %2595 = vmatmul.mubr.bf16.vlgmr.msra.gmra.mrb[0].mxu1 %v534_v2  ;;  %v1201_v17 = vld [vmem:[#allocation2 + $0xa8] ss:$2 sm:$0xff]  ;;  %501 = vst [vmem:[#allocation2 + $0x128] sm:$0xff] %v427_v37  ;;  %502 = vst [vmem:[#allocation2 + $0x130] sm:$0xff] %v428_v38  ;;  %v325_v49 = vsub.f32 %v288_v31, %v3063_v16  ;;  %v326_v50 = vsub.f32 %v289_v36, %v3063_v16  ;;  %v401_v51 = vadd.f32 %v3093_v33, %v362_v42  ;;  %v2913_v37 = vld [vmem:[%s3410_s4 + $0x78] sm:$0xff]  }
  0x2d   : > { %2603 = vmatpush3.bf16.msra.mxu1 %v3131_v5  ;;  %v1203_v25 = vld [vmem:[#allocation2 + $0xe8] ss:$2 sm:$0xff]  ;;  %500 = vst [vmem:[#allocation2 + $0x110] sm:$0xff] %v426_v20  ;;  %v400_v5 = vadd.f32 %v3093_v33, %v361_v23  ;;  %505 = vst [vmem:[#allocation2 + $0x168] sm:$0xff] %v431_v39  ;;  %v402_v52 = vadd.f32 %v3093_v33, %v363_v43  ;;  %v405_v53 = vadd.f32 %v3093_v33, %v366_v44  ;;  %v2915_v42 = vld [vmem:[%s3410_s4 + $0x80] sm:$0xff]  }
  0x2e   : > { %v1213_v32 = vpack.c.bf16 %v1203_v25, %v1201_v17  ;;  %2604 = vmatprep.subr.bf16.mxu1 %v2901_v3  ;;  %v406_v54 = vadd.f32 %v3093_v33, %v367_v48  ;;  %v329_v55 = vsub.f32 %v292_v45, %v3063_v16  ;;  %v330_v56 = vsub.f32 %v293_v46, %v3063_v16  ;;  %v2911_v23 = vld [vmem:[%s3410_s4 + $0x70] sm:$0xff]   ;;  %v2916_v48 = vld [vmem:[%s3410_s4 + $0x180] sm:$0xff]  }
  0x2f   : > { %v432_v41 = vmax.f32 %v400_v5, 0.0  ;;  %v364_v57 = vmul.f32 %v3084_v28, %v325_v49  ;;  %v433_v58 = vmax.f32 %v401_v51, 0.0  ;;  %v434_v59 = vmax.f32 %v402_v52, 0.0  ;;  %v2912_v34 = vld [vmem:[%s3410_s4 + $0x170] sm:$0xff]   ;;  %v2917_v49 = vld [vmem:[%s3410_s4 + $0x88] sm:$0xff]  }
  0x30   : > { %2691 = vmatmul.mubr.bf16.vlgmr.msra.gmra.mrb[0].mxu0 %v1213_v32  ;;  %v437_v60 = vmax.f32 %v405_v53, 0.0  ;;  %v365_v61 = vmul.f32 %v3084_v28, %v326_v50  ;;  %v528_v0 = vld [vmem:[#allocation2 + $0x147] ss:$2 sm:$0xff]  ;;  %v438_v1 = vmax.f32 %v406_v54, 0.0  ;;  %v368_v2 = vmul.f32 %v3084_v28, %v329_v55  ;;  %v679_v39 = vld [vmem:[#allocation2 + $0x88] ss:$2 sm:$0xff] }
  0x31   : > { %2699 = vmatpush3.bf16.msra.mxu0 %v3139_v9  ;;  %2605 = vmatpush3.bf16.msra.mxu1 %v2901_v3  ;;  %v2905_v9 = vld [vmem:[%s3410_s4 + $0x58] sm:$0xff]   ;;  %506 = vst [vmem:[#allocation2 + $0x170] sm:$0xff] %v432_v41  ;;  %v369_v3 = vmul.f32 %v3084_v28, %v330_v56  ;;  %v403_v4 = vadd.f32 %v3093_v33, %v364_v57  ;;  %507 = vst [vmem:[#allocation2 + $0x188] sm:$0xff] %v433_v58  ;;  %v1373_v32 = vld [vmem:[#allocation2 + $0x69] ss:$2 sm:$0xff] }
  0x32   : > { %2700 = vmatprep.subr.bf16.mxu0 %v2902_v18  ;;  %2606 = vmatprep.subr.bf16.mxu1 %v2903_v19  ;;  %508 = vst [vmem:[#allocation2 + $0x190] sm:$0xff] %v434_v59  ;;  %511 = vst [vmem:[#allocation2 + $0x1c8] sm:$0xff] %v437_v60  ;;  %v404_v8 = vadd.f32 %v3093_v33, %v365_v61  ;;  %v407_v10 = vadd.f32 %v3093_v33, %v368_v2  ;;  %v681_v40 = vld [vmem:[#allocation2 + $0xc8] ss:$2 sm:$0xff]  ;;  %v2914_v41 = vld [vmem:[%s3410_s4 + $0x178] sm:$0xff]  }
  0x33   : > { %512 = vst [vmem:[#allocation2 + $0x1d0] sm:$0xff] %v438_v1  ;;  %v408_v11 = vadd.f32 %v3093_v33, %v369_v3  ;;  %v435_v12 = vmax.f32 %v403_v4, 0.0  ;;  %v1205_v15 = vld [vmem:[#allocation2 + $0x128] ss:$2 sm:$0xff]  ;;  %v690_v31 = vpack.c.bf16 %v677_v26, %v675_v24  ;;  %v1386_v38 = vpack.c.bf16 %v1373_v32, %v1371_v30  ;;  %v1375_v43 = vld [vmem:[#allocation2 + $0xa9] ss:$2 sm:$0xff] }
  0x34   : > { %v526_v63 = vld [vmem:[#allocation2 + $0x107] ss:$2 sm:$0xff]  ;;  %v436_v17 = vmax.f32 %v404_v8, 0.0  ;;  %v691_v44 = vpack.c.bf16 %v681_v40, %v679_v39  ;;  %v683_v45 = vld [vmem:[#allocation2 + $0x108] ss:$2 sm:$0xff]  ;;  %v2929_v24 = vld [vmem:[%s3410_s4 + $0xb8] sm:$0xff]  }
  0x35   : > { %2701 = vmatpush3.bf16.msra.mxu0 %v2902_v18  ;;  %2607 = vmatpush3.bf16.msra.mxu1 %v2903_v19  ;;  %v535_v7 = vpack.c.bf16 %v528_v0, %v526_v63  ;;  %v439_v19 = vmax.f32 %v407_v10, 0.0  ;;  %v440_v20 = vmax.f32 %v408_v11, 0.0  ;;  %509 = vst [vmem:[#allocation2 + $0x1a8] sm:$0xff] %v435_v12  ;;  %v685_v46 = vld [vmem:[#allocation2 + $0x148] ss:$2 sm:$0xff]  ;;  %v2921_v0 = vld [vmem:[%s3410_s4 + $0x98] sm:$0xff]  }
  0x36   : > { %2702 = vmatprep.subr.bf16.mxu0 %v2904_v47  ;;  %2608 = vmatprep.subr.bf16.mxu1 %v2905_v9  ;;  %510 = vst [vmem:[#allocation2 + $0x1b0] sm:$0xff] %v436_v17  ;;  %v692_v50 = vpack.c.bf16 %v685_v46, %v683_v45  ;;  %v2918_v51 = vld [vmem:[%s3410_s4 + $0x188] sm:$0xff]   ;;  %v2919_v56 = vld [vmem:[%s3410_s4 + $0x90] sm:$0xff]   ;;  %v2924_v10 = vld [vmem:[%s3410_s4 + $0x1a0] sm:$0xff]  }
  0x37   : > { %2598 = vmatprep.mubr.bf16.mxu1 %v535_v7  ;;  %513 = vst [vmem:[#allocation2 + $0x1e8] sm:$0xff] %v439_v19  ;;  %514 = vst [vmem:[#allocation2 + $0x1f0] sm:$0xff] %v440_v20  ;;  %v1379_v52 = vld [vmem:[#allocation2 + $0x129] ss:$2 sm:$0xff]  ;;  %v2923_v7 = vld [vmem:[%s3410_s4 + $0xa0] sm:$0xff]  }
  0x38   : > { %v1207_v18 = vld [vmem:[#allocation2 + $0x168] ss:$2 sm:$0xff]  ;;  %v1381_v53 = vld [vmem:[#allocation2 + $0x169] ss:$2 sm:$0xff] }
  0x39   : > { %2703 = vmatpush3.bf16.msra.mxu0 %v2904_v47  ;;  %2609 = vmatpush3.bf16.msra.mxu1 %v2905_v9  ;;  %v1214_v21 = vpack.c.bf16 %v1207_v18, %v1205_v15  ;;  %v530_v25 = vld [vmem:[#allocation2 + $0x187] ss:$2 sm:$0xff]  ;;  %v687_v54 = vld [vmem:[#allocation2 + $0x188] ss:$2 sm:$0xff]  ;;  %v1388_v57 = vpack.c.bf16 %v1381_v53, %v1379_v52 }
  0x3a   : > { %2704 = vmatprep.subr.bf16.mxu0 %v2906_v62  ;;  %2610 = vmatprep.subr.bf16.mxu1 %v2907_v6  ;;  %v532_v27 = vld [vmem:[#allocation2 + $0x1c7] ss:$2 sm:$0xff]  ;;  %v689_v55 = vld [vmem:[#allocation2 + $0x1c8] ss:$2 sm:$0xff] }
  0x3b   : > { %2694 = vmatprep.mubr.bf16.mxu0 %v1214_v21  ;;  %v536_v29 = vpack.c.bf16 %v532_v27, %v530_v25  ;;  %v1377_v47 = vld [vmem:[#allocation2 + $0xe9] ss:$2 sm:$0xff]  ;;  %v693_v61 = vpack.c.bf16 %v689_v55, %v687_v54  ;;  %v2931_v27 = vld [vmem:[%s3410_s4 + $0xc0] sm:$0xff]   ;;  %v1720_v53 = vld [vmem:[#allocation2 + $0x48] ss:$2 sm:$0xff] }
  0x3c   : > { %v1387_v9 = vpack.c.bf16 %v1377_v47, %v1375_v43  ;;  %v849_v59 = vld [vmem:[#allocation2 + $0x9] ss:$2 sm:$0xff]  ;;  %v1722_v54 = vld [vmem:[#allocation2 + $0x88] ss:$2 sm:$0xff]  ;;  %v2938_v55 = vld [vmem:[%s3410_s4 + $0x1d8] sm:$0xff]  }
  0x3d   : > { %2705 = vmatpush3.bf16.msra.mxu0 %v2906_v62  ;;  %2611 = vmatpush3.bf16.msra.mxu1 %v2907_v6  ;;  %v1209_v5 = vld [vmem:[#allocation2 + $0x1a8] ss:$2 sm:$0xff]  ;;  %v1383_v58 = vld [vmem:[#allocation2 + $0x1a9] ss:$2 sm:$0xff]  ;;  %v2922_v6 = vld [vmem:[%s3410_s4 + $0x198] sm:$0xff]  }
  0x3e   : > { %2706 = vmatprep.subr.bf16.mxu0 %v2908_v13  ;;  %2612 = vmatprep.subr.bf16.mxu1 %v2909_v14  ;;  %v1211_v35 = vld [vmem:[#allocation2 + $0x1e8] ss:$2 sm:$0xff]  ;;  %v851_v62 = vld [vmem:[#allocation2 + $0x49] ss:$2 sm:$0xff] }
  0x3f   : > { %2599 = vmatmul.mubr.bf16.gmra.mrb[4].mxu1 %v536_v29  ;;  %v1215_v36 = vpack.c.bf16 %v1211_v35, %v1209_v5  ;;  %v2920_v60 = vld [vmem:[%s3410_s4 + $0x190] sm:$0xff]   ;;  %v864_v1 = vpack.c.bf16 %v851_v62, %v849_v59  ;;  %v2925_v11 = vld [vmem:[%s3410_s4 + $0xa8] sm:$0xff]  }
  0x40   : > { %2618 = vmatprep.mubr.bf16.mxu1 %v690_v31  ;;  %v1385_v63 = vld [vmem:[#allocation2 + $0x1e9] ss:$2 sm:$0xff] }
  0x41   : > { %2707 = vmatpush3.bf16.msra.mxu0 %v2908_v13  ;;  %2613 = vmatpush3.bf16.msra.mxu1 %v2909_v14  ;;  %v1546_v2 = vld [vmem:[#allocation2 + $0x47] ss:$2 sm:$0xff]  ;;  %v1389_v3 = vpack.c.bf16 %v1385_v63, %v1383_v58  ;;  %v295_v13 = vld [vmem:[%s3053_s25 + $0xf8] sm:$0xff] }
  0x42   : > { %2708 = vmatprep.subr.bf16.mxu0 %v2910_v22  ;;  %2614 = vmatprep.subr.bf16.mxu1 %v2911_v23  ;;  %v1548_v4 = vld [vmem:[#allocation2 + $0x87] ss:$2 sm:$0xff]  ;;  %v332_v15 = vsub.f32 %v295_v13, %v3063_v16  ;;  %v2945_v63 = vld [vmem:[%s3410_s4 + $0xf8] sm:$0xff]   ;;  %v1728_v13 = vld [vmem:[#allocation2 + $0x148] ss:$2 sm:$0xff] }
  0x43   : > { %2695 = vmatmul.mubr.bf16.gmra.mrb[4].mxu0 %v1215_v36  ;;  %v1561_v8 = vpack.c.bf16 %v1548_v4, %v1546_v2  ;;  %v294_v12 = vld [vmem:[%s3053_s25 + $0xf0] sm:$0xff]  ;;  %v2926_v19 = vld [vmem:[%s3410_s4 + $0x1a8] sm:$0xff]   ;;  %v2940_v58 = vld [vmem:[%s3410_s4 + $0x1e0] sm:$0xff]  }
  0x44   : > { %2714 = vmatprep.mubr.bf16.mxu0 %v1386_v38  ;;  %v331_v14 = vsub.f32 %v294_v12, %v3063_v16  ;;  %v371_v18 = vmul.f32 %v3084_v28, %v332_v15  ;;  %v2927_v20 = vld [vmem:[%s3410_s4 + $0xb0] sm:$0xff]   ;;  %v2933_v35 = vld [vmem:[%s3410_s4 + $0xc8] sm:$0xff]   ;;  %v2946_v2 = vld [vmem:[%s3410_s4 + $0x1f8] sm:$0xff]  }
  0x45   : > { %2709 = vmatpush3.bf16.msra.mxu0 %v2910_v22  ;;  %2615 = vmatpush3.bf16.msra.mxu1 %v2911_v23  ;;  %v2928_v22 = vld [vmem:[%s3410_s4 + $0x1b0] sm:$0xff]   ;;  %v2941_v59 = vld [vmem:[%s3410_s4 + $0xe8] sm:$0xff]  }
  0x46   : > { %2710 = vmatprep.subr.bf16.mxu0 %v2912_v34  ;;  %2616 = vmatprep.subr.bf16.mxu1 %v2913_v37  ;;  %v370_v17 = vmul.f32 %v3084_v28, %v331_v14  ;;  %v410_v16 = vadd.f32 %v3093_v33, %v371_v18  ;;  %v853_v25 = vld [vmem:[#allocation2 + $0x89] ss:$2 sm:$0xff]  ;;  %v1730_v14 = vld [vmem:[#allocation2 + $0x188] ss:$2 sm:$0xff] }
  0x47   : > { %v855_v26 = vld [vmem:[#allocation2 + $0xc9] ss:$2 sm:$0xff] }
  0x48   : > { %v409_v21 = vadd.f32 %v3093_v33, %v370_v17  ;;  %v442_v23 = vmax.f32 %v410_v16, 0.0  ;;  %v2930_v33 = vld [vmem:[%s3410_s4 + $0x1b8] sm:$0xff]   ;;  %v1550_v29 = vld [vmem:[#allocation2 + $0xc7] ss:$2 sm:$0xff]  ;;  %v865_v31 = vpack.c.bf16 %v855_v26, %v853_v25 }
  0x49   : > { %2711 = vmatpush3.bf16.msra.mxu0 %v2912_v34  ;;  %2617 = vmatpush3.bf16.msra.mxu1 %v2913_v37  ;;  %v857_v30 = vld [vmem:[#allocation2 + $0x109] ss:$2 sm:$0xff]  ;;  %v2932_v34 = vld [vmem:[%s3410_s4 + $0x1c0] sm:$0xff]  }
  0x4a   : > { %2712 = vmatprep.subr.bf16.mxu0 %v2914_v41  ;;  %2626 = vmatprep.subr.bf16.mxu1 %v2915_v42  ;;  %v441_v28 = vmax.f32 %v409_v21, 0.0  ;;  %516 = vst [vmem:[#allocation2 + $0x210] sm:$0xff] %v442_v23  ;;  %v859_v32 = vld [vmem:[#allocation2 + $0x149] ss:$2 sm:$0xff] }
  0x4b   : > { %v1552_v5 = vld [vmem:[#allocation2 + $0x107] ss:$2 sm:$0xff]  ;;  %v866_v36 = vpack.c.bf16 %v859_v32, %v857_v30 }
  0x4c   : > { %2619 = vmatmul.mubr.bf16.vlgmr.msra.gmra.mrb[0].mxu1 %v691_v44  ;;  %515 = vst [vmem:[#allocation2 + $0x208] sm:$0xff] %v441_v28  ;;  %v1562_v37 = vpack.c.bf16 %v1552_v5, %v1550_v29  ;;  %v1554_v38 = vld [vmem:[#allocation2 + $0x147] ss:$2 sm:$0xff]  ;;  %v1732_v28 = vld [vmem:[#allocation2 + $0x1c8] ss:$2 sm:$0xff]  ;;  %v2954_v5 = vld [vmem:[%s3410_s4 + $0x238] sm:$0xff]  }
  0x4d   : > { %2713 = vmatpush3.bf16.msra.mxu0 %v2914_v41  ;;  %2627 = vmatpush3.bf16.msra.mxu1 %v2915_v42  ;;  %v1556_v39 = vld [vmem:[#allocation2 + $0x187] ss:$2 sm:$0xff] }
  0x4e   : > { %2722 = vmatprep.subr.bf16.mxu0 %v2916_v48  ;;  %2628 = vmatprep.subr.bf16.mxu1 %v2917_v49  ;;  %v861_v40 = vld [vmem:[#allocation2 + $0x189] ss:$2 sm:$0xff]  ;;  %v1563_v44 = vpack.c.bf16 %v1556_v39, %v1554_v38  ;;  %v2951_v29 = vld [vmem:[%s3410_s4 + $0x220] sm:$0xff]  }
  0x4f   : > { %2622 = vmatprep.mubr.bf16.mxu1 %v692_v50  ;;  %v863_v41 = vld [vmem:[#allocation2 + $0x1c9] ss:$2 sm:$0xff] }
  0x50   : > { %2715 = vmatmul.mubr.bf16.vlgmr.msra.gmra.mrb[0].mxu0 %v1387_v9  ;;  %v2934_v42 = vld [vmem:[%s3410_s4 + $0x1c8] sm:$0xff]   ;;  %v2935_v43 = vld [vmem:[%s3410_s4 + $0xd0] sm:$0xff]   ;;  %v867_v45 = vpack.c.bf16 %v863_v41, %v861_v40  ;;  %v2937_v9 = vld [vmem:[%s3410_s4 + $0xd8] sm:$0xff]  }
  0x51   : > { %2723 = vmatpush3.bf16.msra.mxu0 %v2916_v48  ;;  %2629 = vmatpush3.bf16.msra.mxu1 %v2917_v49  ;;  %v1023_v46 = vld [vmem:[#allocation2 + $0x27] ss:$2 sm:$0xff] }
  0x52   : > { %2724 = vmatprep.subr.bf16.mxu0 %v2918_v51  ;;  %2630 = vmatprep.subr.bf16.mxu1 %v2919_v56  ;;  %v1025_v47 = vld [vmem:[#allocation2 + $0x67] ss:$2 sm:$0xff] }
  0x53   : > { %2718 = vmatprep.mubr.bf16.mxu0 %v1388_v57  ;;  %v1558_v48 = vld [vmem:[#allocation2 + $0x1c7] ss:$2 sm:$0xff]  ;;  %v1735_v57 = vpack.c.bf16 %v1722_v54, %v1720_v53  ;;  %v1734_v23 = vld [vmem:[#allocation2 + $0x208] ss:$2 sm:$0xff] }
  0x54   : > { %2623 = vmatmul.mubr.bf16.gmra.mrb[4].mxu1 %v693_v61  ;;  %v1560_v49 = vld [vmem:[#allocation2 + $0x207] ss:$2 sm:$0xff]  ;;  %v1738_v25 = vpack.c.bf16 %v1734_v23, %v1732_v28 }
  0x55   : > { %2725 = vmatpush3.bf16.msra.mxu0 %v2918_v51  ;;  %2631 = vmatpush3.bf16.msra.mxu1 %v2919_v56  ;;  %v2936_v50 = vld [vmem:[%s3410_s4 + $0x1d0] sm:$0xff]   ;;  %v1038_v51 = vpack.c.bf16 %v1025_v47, %v1023_v46  ;;  %v1564_v52 = vpack.c.bf16 %v1560_v49, %v1558_v48  ;;  %v2939_v56 = vld [vmem:[%s3410_s4 + $0xe0] sm:$0xff]  }
  0x56   : > { %2726 = vmatprep.subr.bf16.mxu0 %v2920_v60  ;;  %2632 = vmatprep.subr.bf16.mxu1 %v2921_v0  ;;  %v2943_v61 = vld [vmem:[%s3410_s4 + $0xf0] sm:$0xff]  }
  0x57   : > { %2642 = vmatprep.mubr.bf16.mxu1 %v864_v1  ;;  %v2944_v62 = vld [vmem:[%s3410_s4 + $0x1f0] sm:$0xff]  }
  0x58   : > { %2719 = vmatmul.mubr.bf16.gmra.mrb[4].mxu0 %v1389_v3  ;;  %v1029_v1 = vld [vmem:[#allocation2 + $0xe7] ss:$2 sm:$0xff] }
  0x59   : > { %2727 = vmatpush3.bf16.msra.mxu0 %v2920_v60  ;;  %2633 = vmatpush3.bf16.msra.mxu1 %v2921_v0  ;;  %v2942_v60 = vld [vmem:[%s3410_s4 + $0x1e8] sm:$0xff]   ;;  %v2947_v3 = vld [vmem:[%s3410_s4 + $0x200] sm:$0xff]   ;;  %v2953_v32 = vld [vmem:[%s3410_s4 + $0x230] sm:$0xff]  }
  0x5a   : > { %2728 = vmatprep.subr.bf16.mxu0 %v2922_v6  ;;  %2634 = vmatprep.subr.bf16.mxu1 %v2923_v7  ;;  %v1027_v0 = vld [vmem:[#allocation2 + $0xa7] ss:$2 sm:$0xff] }
  0x5b   : > { %2738 = vmatprep.mubr.bf16.mxu0 %v1561_v8  ;;  %v1039_v4 = vpack.c.bf16 %v1029_v1, %v1027_v0  ;;  %v1724_v8 = vld [vmem:[#allocation2 + $0xc8] ss:$2 sm:$0xff]  ;;  %v1035_v17 = vld [vmem:[#allocation2 + $0x1a7] ss:$2 sm:$0xff] }
  0x5c   : > { %v1037_v18 = vld [vmem:[#allocation2 + $0x1e7] ss:$2 sm:$0xff] }
  0x5d   : > { %2729 = vmatpush3.bf16.msra.mxu0 %v2922_v6  ;;  %2635 = vmatpush3.bf16.msra.mxu1 %v2923_v7  ;;  %v1031_v6 = vld [vmem:[#allocation2 + $0x127] ss:$2 sm:$0xff]  ;;  %v1041_v21 = vpack.c.bf16 %v1037_v18, %v1035_v17 }
  0x5e   : > { %2730 = vmatprep.subr.bf16.mxu0 %v2924_v10  ;;  %2636 = vmatprep.subr.bf16.mxu1 %v2925_v11  ;;  %v1033_v7 = vld [vmem:[#allocation2 + $0x167] ss:$2 sm:$0xff] }
  0x5f   : > { %v1040_v12 = vpack.c.bf16 %v1033_v7, %v1031_v6  ;;  %v1902_v16 = vld [vmem:[#allocation2 + $0x149] ss:$2 sm:$0xff] }
  0x60   : > { %v1894_v26 = vld [vmem:[#allocation2 + $0x49] ss:$2 sm:$0xff] }
  0x61   : > { %2731 = vmatpush3.bf16.msra.mxu0 %v2924_v10  ;;  %2637 = vmatpush3.bf16.msra.mxu1 %v2925_v11  ;;  %v1726_v10 = vld [vmem:[#allocation2 + $0x108] ss:$2 sm:$0xff]  ;;  %v1900_v38 = vld [vmem:[#allocation2 + $0x109] ss:$2 sm:$0xff] }
  0x62   : > { %2732 = vmatprep.subr.bf16.mxu0 %v2926_v19  ;;  %2638 = vmatprep.subr.bf16.mxu1 %v2927_v20  ;;  %v2948_v11 = vld [vmem:[%s3410_s4 + $0x208] sm:$0xff]   ;;  %v1736_v15 = vpack.c.bf16 %v1726_v10, %v1724_v8 }
  0x65   : > { %2733 = vmatpush3.bf16.msra.mxu0 %v2926_v19  ;;  %2639 = vmatpush3.bf16.msra.mxu1 %v2927_v20  ;;  %v1737_v19 = vpack.c.bf16 %v1730_v14, %v1728_v13  ;;  %v2949_v20 = vld [vmem:[%s3410_s4 + $0x210] sm:$0xff]  }
  0x66   : > { %2734 = vmatprep.subr.bf16.mxu0 %v2928_v22  ;;  %2640 = vmatprep.subr.bf16.mxu1 %v2929_v24 }
  0x69   : > { %2735 = vmatpush3.bf16.msra.mxu0 %v2928_v22  ;;  %2641 = vmatpush3.bf16.msra.mxu1 %v2929_v24  ;;  %v1904_v22 = vld [vmem:[#allocation2 + $0x189] ss:$2 sm:$0xff]  ;;  %v2950_v24 = vld [vmem:[%s3410_s4 + $0x218] sm:$0xff]  }
  0x6a   : > { %2736 = vmatprep.subr.bf16.mxu0 %v2930_v33  ;;  %2650 = vmatprep.subr.bf16.mxu1 %v2931_v27 }
  0x6c   : > { %2643 = vmatmul.mubr.bf16.vlgmr.msra.gmra.mrb[0].mxu1 %v865_v31  ;;  %v2952_v31 = vld [vmem:[%s3410_s4 + $0x228] sm:$0xff]  }
  0x6d   : > { %2737 = vmatpush3.bf16.msra.mxu0 %v2930_v33  ;;  %2651 = vmatpush3.bf16.msra.mxu1 %v2931_v27  ;;  %v1911_v33 = vpack.c.bf16 %v1904_v22, %v1902_v16  ;;  %v1896_v27 = vld [vmem:[#allocation2 + $0x89] ss:$2 sm:$0xff] }
  0x6e   : > { %2746 = vmatprep.subr.bf16.mxu0 %v2932_v34  ;;  %2652 = vmatprep.subr.bf16.mxu1 %v2933_v35  ;;  %v1909_v30 = vpack.c.bf16 %v1896_v27, %v1894_v26 }
  0x6f   : > { %2646 = vmatprep.mubr.bf16.mxu1 %v866_v36 }
  0x70   : > { %2739 = vmatmul.mubr.bf16.vlgmr.msra.gmra.mrb[0].mxu0 %v1562_v37  ;;  %v1898_v37 = vld [vmem:[#allocation2 + $0xc9] ss:$2 sm:$0xff] }
  0x71   : > { %2747 = vmatpush3.bf16.msra.mxu0 %v2932_v34  ;;  %2653 = vmatpush3.bf16.msra.mxu1 %v2933_v35  ;;  %v1906_v34 = vld [vmem:[#allocation2 + $0x1c9] ss:$2 sm:$0xff]  ;;  %v1910_v39 = vpack.c.bf16 %v1900_v38, %v1898_v37 }
  0x72   : > { %2748 = vmatprep.subr.bf16.mxu0 %v2934_v42  ;;  %2654 = vmatprep.subr.bf16.mxu1 %v2935_v43  ;;  %v1908_v35 = vld [vmem:[#allocation2 + $0x209] ss:$2 sm:$0xff] }
  0x73   : > { %2742 = vmatprep.mubr.bf16.mxu0 %v1563_v44  ;;  %v1912_v36 = vpack.c.bf16 %v1908_v35, %v1906_v34 }
  0x74   : > { %2647 = vmatmul.mubr.bf16.gmra.mrb[4].mxu1 %v867_v45 }
  0x75   : > { %2749 = vmatpush3.bf16.msra.mxu0 %v2934_v42  ;;  %2655 = vmatpush3.bf16.msra.mxu1 %v2935_v43 }
  0x76   : > { %2750 = vmatprep.subr.bf16.mxu0 %v2936_v50  ;;  %2656 = vmatprep.subr.bf16.mxu1 %v2937_v9 }
  0x77   : > { %2666 = vmatprep.mubr.bf16.mxu1 %v1038_v51 }
  0x78   : > { %2743 = vmatmul.mubr.bf16.gmra.mrb[4].mxu0 %v1564_v52 }
  0x79   : > { %2751 = vmatpush3.bf16.msra.mxu0 %v2936_v50  ;;  %2657 = vmatpush3.bf16.msra.mxu1 %v2937_v9 }
  0x7a   : > { %2752 = vmatprep.subr.bf16.mxu0 %v2938_v55  ;;  %2658 = vmatprep.subr.bf16.mxu1 %v2939_v56 }
  0x7b   : > { %2762 = vmatprep.mubr.bf16.mxu0 %v1735_v57 }
  0x7d   : > { %2753 = vmatpush3.bf16.msra.mxu0 %v2938_v55  ;;  %2659 = vmatpush3.bf16.msra.mxu1 %v2939_v56 }
  0x7e   : > { %2754 = vmatprep.subr.bf16.mxu0 %v2940_v58  ;;  %2660 = vmatprep.subr.bf16.mxu1 %v2941_v59 }
  0x81   : > { %2755 = vmatpush3.bf16.msra.mxu0 %v2940_v58  ;;  %2661 = vmatpush3.bf16.msra.mxu1 %v2941_v59 }
  0x82   : > { %2756 = vmatprep.subr.bf16.mxu0 %v2942_v60  ;;  %2662 = vmatprep.subr.bf16.mxu1 %v2943_v61 }
  0x85   : > { %2757 = vmatpush3.bf16.msra.mxu0 %v2942_v60  ;;  %2663 = vmatpush3.bf16.msra.mxu1 %v2943_v61 }
  0x86   : > { %2758 = vmatprep.subr.bf16.mxu0 %v2944_v62  ;;  %2664 = vmatprep.subr.bf16.mxu1 %v2945_v63 }
  0x89   : > { %2759 = vmatpush3.bf16.msra.mxu0 %v2944_v62  ;;  %2665 = vmatpush3.bf16.msra.mxu1 %v2945_v63 }
  0x8a   : > { %2760 = vmatprep.subr.bf16.mxu0 %v2946_v2  ;;  %2794 = vmatprep.subr.bf16.mxu1 %v2947_v3 }
  0x8c   : > { %2667 = vmatmul.mubr.bf16.vlgmr.msra.gmra.mrb[0].mxu1 %v1039_v4 }
  0x8d   : > { %2761 = vmatpush3.bf16.msra.mxu0 %v2946_v2  ;;  %2802 = vmatpush3.bf16.msra.mxu1 %v2947_v3 }
  0x8e   : > { %2770 = vmatprep.subr.bf16.mxu0 %v2947_v3  ;;  %2795 = vmatprep.subr.bf16.mxu1 %v2948_v11 }
  0x8f   : > { %2670 = vmatprep.mubr.bf16.mxu1 %v1040_v12 }
  0x90   : > { %2763 = vmatmul.mubr.bf16.vlgmr.msra.gmra.mrb[0].mxu0 %v1736_v15 }
  0x91   : > { %2771 = vmatpush3.bf16.msra.mxu0 %v2947_v3  ;;  %2803 = vmatpush3.bf16.msra.mxu1 %v2948_v11 }
  0x92   : > { %2772 = vmatprep.subr.bf16.mxu0 %v2948_v11  ;;  %2766 = vmatprep.mubr.bf16.mxu0 %v1737_v19 }
  0x93   : > { %2796 = vmatprep.subr.bf16.mxu1 %v2949_v20 }
  0x94   : > { %2671 = vmatmul.mubr.bf16.gmra.mrb[4].mxu1 %v1041_v21 }
  0x95   : > { %2773 = vmatpush3.bf16.msra.mxu0 %v2948_v11  ;;  %2804 = vmatpush3.bf16.msra.mxu1 %v2949_v20 }
  0x96   : > { %2774 = vmatprep.subr.bf16.mxu0 %v2949_v20  ;;  %2797 = vmatprep.subr.bf16.mxu1 %v2950_v24 }
  0x97   : > { %2790 = vmatprep.mubr.bf16.mxu1 %v1911_v33 }
  0x98   : > { %2767 = vmatmul.mubr.bf16.gmra.mrb[4].mxu0 %v1738_v25 }
  0x99   : > { %2775 = vmatpush3.bf16.msra.mxu0 %v2949_v20  ;;  %2805 = vmatpush3.bf16.msra.mxu1 %v2950_v24 }
  0x9a   : > { %2776 = vmatprep.subr.bf16.mxu0 %v2950_v24  ;;  %2798 = vmatprep.subr.bf16.mxu1 %v2951_v29 }
  0x9b   : > { %2786 = vmatprep.mubr.bf16.mxu0 %v1909_v30 }
  0x9d   : > { %2777 = vmatpush3.bf16.msra.mxu0 %v2950_v24  ;;  %2806 = vmatpush3.bf16.msra.mxu1 %v2951_v29 }
  0x9e   : > { %2778 = vmatprep.subr.bf16.mxu0 %v2951_v29  ;;  %2799 = vmatprep.subr.bf16.mxu1 %v2952_v31 }
  0xa1   : > { %2779 = vmatpush3.bf16.msra.mxu0 %v2951_v29  ;;  %2807 = vmatpush3.bf16.msra.mxu1 %v2952_v31 }
  0xa2   : > { %2780 = vmatprep.subr.bf16.mxu0 %v2952_v31  ;;  %2800 = vmatprep.subr.bf16.mxu1 %v2953_v32 }
  0xa5   : > { %2781 = vmatpush3.bf16.msra.mxu0 %v2952_v31  ;;  %2808 = vmatpush3.bf16.msra.mxu1 %v2953_v32 }
  0xa6   : > { %2782 = vmatprep.subr.bf16.mxu0 %v2953_v32  ;;  %2801 = vmatprep.subr.bf16.mxu1 %v2954_v5 }
  0xa9   : > { %2783 = vmatpush3.bf16.msra.mxu0 %v2953_v32  ;;  %2809 = vmatpush3.bf16.msra.mxu1 %v2954_v5 }
  0xaa   : > { %2784 = vmatprep.subr.bf16.mxu0 %v2954_v5 }
  0xac   : > { %2791 = vmatmul.mubr.bf16.vlgmr.msra.gmra.mrb[8].mxu1 %v1912_v36 }
  0xad   : > { %2785 = vmatpush3.bf16.msra.mxu0 %v2954_v5 }
  0xb0   : > { %2787 = vmatmul.mubr.bf16.vlgmr.msra.gmra.mrb[0].mxu0 %v1910_v39 }
 0x15f   : > { %v2668_v40 = vpop.f32.mrb[0].mxu1 }
 0x160   : > { %v1141_v41 = vpop.f32.mrb[1].mxu1 }
 0x161   : > { %v2669_v42 = vpop.f32.mrb[2].mxu1 }
 0x162   : > { %v1144_v43 = vpop.f32.mrb[3].mxu1 }
 0x167   : > { %v2672_v44 = vpop.f32.mrb[4].mxu1 }
 0x168   : > { %v1157_v45 = vpop.f32.mrb[5].mxu1 }
 0x169   : > { %v2673_v46 = vpop.f32.mrb[6].mxu1 }
 0x16a   : > { %v1160_v47 = vpop.f32.mrb[7].mxu1 }
 0x16b   : > { %v2768_v48 = vpop.f32.mrb[4].mxu0 }
 0x16c   : > { %v2814_v49 = vadd.f32 %v2768_v48, %v2672_v44  ;;  %v1854_v50 = vpop.f32.mrb[5].mxu0 }
 0x16d   : > { %v2816_v9 = vadd.f32 %v1854_v50, %v1157_v45  ;;  %v2769_v51 = vpop.f32.mrb[6].mxu0 }
 0x16e   : > { %v2818_v52 = vadd.f32 %v2769_v51, %v2673_v46  ;;  %v1857_v53 = vpop.f32.mrb[7].mxu0 }
 0x16f   : > { %v2820_v54 = vadd.f32 %v1857_v53, %v1160_v47 }
 0x17f   : > { %v2792_v55 = vpop.f32.mrb[8].mxu1 }
 0x180   : > { %v2815_v56 = vadd.f32 %v2814_v49, %v2792_v55  ;;  %v2028_v57 = vpop.f32.mrb[9].mxu1 }
 0x181   : > { %v2817_v58 = vadd.f32 %v2816_v9, %v2028_v57  ;;  %v2793_v59 = vpop.f32.mrb[10].mxu1 }
 0x182   : > { %2081 = vst [vmem:[%s258_s8 + $0x30] sm:$0xff] %v2815_v56  ;;  %v2819_v60 = vadd.f32 %v2818_v52, %v2793_v59  ;;  %v2031_v61 = vpop.f32.mrb[11].mxu1  ;;  %v2102_v23 = vmul.f32 %v2815_v56, %v2815_v56 }
 0x183   : > { %v2788_v62 = vpop.f32.mrb[0].mxu0  ;;  %2079 = vst [vmem:[%s258_s8 + $0x20] sm:$0xff] %v2817_v58  ;;  %v2821_v63 = vadd.f32 %v2820_v54, %v2031_v61  ;;  %v2100_v19 = vmul.f32 %v2817_v58, %v2817_v58 }
 0x184   : > { %v2810_v0 = vadd.f32 %v2788_v62, %v2668_v40  ;;  %v2012_v1 = vpop.f32.mrb[1].mxu0  ;;  %2082 = vst [vmem:[%s258_s8 + $0x38] sm:$0xff] %v2819_v60  ;;  %v2103_v25 = vmul.f32 %v2819_v60, %v2819_v60 }
 0x185   : > { %v2811_v2 = vadd.f32 %v2012_v1, %v1141_v41  ;;  %v2789_v3 = vpop.f32.mrb[2].mxu0  ;;  %2080 = vst [vmem:[%s258_s8 + $0x28] sm:$0xff] %v2821_v63  ;;  %v2101_v22 = vmul.f32 %v2821_v63, %v2821_v63 }
 0x186   : > { %2077 = vst [vmem:[%s258_s8 + $0x10] sm:$0xff] %v2810_v0  ;;  %v2812_v4 = vadd.f32 %v2789_v3, %v2669_v42  ;;  %v2015_v6 = vpop.f32.mrb[3].mxu0  ;;  %v2098_v12 = vmul.f32 %v2810_v0, %v2810_v0 }
 0x187   : > { %2075 = vst [vmem:[%s258_s8] sm:$0xff] %v2811_v2  ;;  %v2813_v7 = vadd.f32 %v2015_v6, %v1144_v43  ;;  %v2096_v8 = vmul.f32 %v2811_v2, %v2811_v2 }
 0x188   : > { %2078 = vst [vmem:[%s258_s8 + $0x18] sm:$0xff] %v2812_v4  ;;  %v2099_v15 = vmul.f32 %v2812_v4, %v2812_v4 }
 0x189   : > { %2076 = vst [vmem:[%s258_s8 + $0x8] sm:$0xff] %v2813_v7  ;;  %v2083_v10 = vadd.f32 %v2813_v7, %v2811_v2  ;;  %v2097_v11 = vmul.f32 %v2813_v7, %v2813_v7 }
 0x18b   : > { %v2084_v13 = vadd.f32 %v2810_v0, %v2083_v10  ;;  %v2104_v14 = vadd.f32 %v2097_v11, %v2096_v8 }
 0x18d   : > { %v2105_v17 = vadd.f32 %v2104_v14, %v2098_v12  ;;  %v2085_v18 = vadd.f32 %v2812_v4, %v2084_v13 }
 0x18f   : > { %v2086_v20 = vadd.f32 %v2817_v58, %v2085_v18  ;;  %v2106_v21 = vadd.f32 %v2105_v17, %v2099_v15 }
 0x191   : > { %v2087_v16 = vadd.f32 %v2821_v63, %v2086_v20  ;;  %v2107_v28 = vadd.f32 %v2106_v21, %v2100_v19 }
 0x193   : > { %v2088_v24 = vadd.f32 %v2815_v56, %v2087_v16  ;;  %v2108_v33 = vadd.f32 %v2107_v28, %v2101_v22 }
 0x195   : > { %v2089_v26 = vadd.f32 %v2819_v60, %v2088_v24  ;;  %v2109_v27 = vadd.f32 %v2108_v33, %v2102_v23 }
 0x197   : > { %v2090_v29 = vrot.slane %v2089_v26, 4  ;;  %v2110_v30 = vadd.f32 %v2109_v27, %v2103_v25 }
 0x199   : > { %v2091_v31 = vadd.f32 %v2090_v29, %v2089_v26  ;;  %v2111_v32 = vrot.slane %v2110_v30, 4 }
 0x19b   : > { %v2092_v5 = vrot.slane %v2091_v31, 2  ;;  %v2112_v34 = vadd.f32 %v2111_v32, %v2110_v30 }
 0x19d   : > { %v2093_v35 = vadd.f32 %v2092_v5, %v2091_v31  ;;  %v2113_v36 = vrot.slane %v2112_v34, 2 }
 0x19f   : > { %v2094_v37 = vrot.slane %v2093_v35, 1  ;;  %v2114_v38 = vadd.f32 %v2113_v36, %v2112_v34 }
 0x1a1   : > { %v2115_v39 = vrot.slane %v2114_v38, 1  ;;  %v2095_v40 = vadd.f32 %v2094_v37, %v2093_v35 }
 0x1a3   : > { %v2116_v41 = vadd.f32 %v2115_v39, %v2114_v38 }
 0x1a5   : > { %v2118_v42 = vsel %vm2117_vm0, %v2095_v40, %v2116_v41 }
 0x1a6   : > { %2119 = vst [vmem:[%s262_s12] sm:$0x3] %v2118_v42 }
 0x1a7 PF: > { %s17_s21 = sadd.s32 1, %s2961_s21  }
 0x1a8   : > { %p14_p4 = scmp.ge.s32.totalorder %s17_s21, 4  }
 0x1aa   :  { %16 = sbr.rel (!%p14_p4) target bundleno = 1 (0x1), region = 165 }

// kernel: bottleneck_se_forward.9
= control target key start
LH: loop header
LB: loop body
LE: loop exit
PB: predicated region body
PF: predicated region fallthrough
CT: control target
= control target key end

     0   :  { %v63_v1 = vlaneseq  ;;  %vm349_vm0 = vcmask 1040384   ;;  %s666_s1 = inlined_call_operand.vmem [shape: bf16[128,128], index: 1, kind: input, shape index: {}]   ;;  %s667_s0 = inlined_call_operand.vmem [shape: f32[128,128], index: 0, kind: input, shape index: {}]   ;;  %s668_s2 = inlined_call_operand.vmem [shape: f32[2,128], index: 2, kind: input, shape index: {}]   ;;  %s669_s3 = inlined_call_operand.vmem [shape: f32[1,128], index: 3, kind: input, shape index: {}]   ;;  %s670_s4 = inlined_call_operand.vmem [shape: f32[1,128], index: 4, kind: input, shape index: {}]   ;;  %s671_s5 = inlined_call_operand.vmem [shape: f32[128,128], index: 5, kind: output, shape index: {0}]   ;;  %s672_s6 = inlined_call_operand.vmem [shape: f32[1,2,128], index: 6, kind: output, shape index: {1}]  }
   0x1   :  { %v434_v0 = vld [vmem:[%s666_s1] sm:$0xff]   ;;  %v435_v2 = vld [vmem:[%s666_s1 + $0x8] sm:$0xff]   ;;  %v436_v3 = vld [vmem:[%s666_s1 + $0x10] sm:$0xff]  }
   0x2   :  { %386 = vmatprep.subr.bf16.mxu0 %v434_v0  ;;  %418 = vmatprep.subr.bf16.mxu1 %v434_v0  ;;  %v64_v4 = vshrl.u32 %v63_v1, 7  ;;  %v437_v5 = vld [vmem:[%s666_s1 + $0x18] sm:$0xff]   ;;  %v23_v6 = vld [vmem:[%s667_s0] sm:$0xff]  ;;  %v24_v7 = vld [vmem:[%s667_s0 + $0x8] sm:$0xff] }
   0x3   :  { %387 = vmatpush3.bf16.msra.mxu0 %v434_v0  ;;  %426 = vmatpush3.bf16.msra.mxu1 %v434_v0  ;;  %v498_v8 = vld [vmem:[%s668_s2] ss:$0 sm:$0xff]  ;;  %v60_v10 = vld [vmem:[%s668_s2 + $0x1] sm:$0x1]  ;;  %v25_v17 = vld [vmem:[%s667_s0 + $0x10] sm:$0xff] }
   0x4   :  { %388 = vmatprep.subr.bf16.mxu0 %v435_v2  ;;  %419 = vmatprep.subr.bf16.mxu1 %v435_v2  ;;  %v65_v9 = vsub.s32 0, %v64_v4  ;;  %v61_v11 = vld [vmem:[%s669_s3] sm:$0x1]  ;;  %v44_v12 = vsub.f32 %v23_v6, %v498_v8  ;;  %v45_v13 = vsub.f32 %v24_v7, %v498_v8  ;;  %v32_v19 = vld [vmem:[%s667_s0 + $0x48] sm:$0xff]  ;;  %v26_v23 = vld [vmem:[%s667_s0 + $0x18] sm:$0xff]  ;;  %v46_v27 = vsub.f32 %v25_v17, %v498_v8 }
   0x5   :  { %v62_v14 = vmul.f32 %v61_v11, %v60_v10  ;;  %v438_v15 = vld [vmem:[%s666_s1 + $0x20] sm:$0xff]   ;;  %v53_v26 = vsub.f32 %v32_v19, %v498_v8  ;;  %v33_v28 = vld [vmem:[%s667_s0 + $0x50] sm:$0xff]  ;;  %v439_v29 = vld [vmem:[%s666_s1 + $0x28] sm:$0xff]   ;;  %v47_v33 = vsub.f32 %v26_v23, %v498_v8 }
   0x6   :  { %v31_v18 = vld [vmem:[%s667_s0 + $0x40] sm:$0xff]  ;;  %v28_v32 = vld [vmem:[%s667_s0 + $0x28] sm:$0xff]  ;;  %v34_v35 = vld [vmem:[%s667_s0 + $0x58] sm:$0xff]  ;;  %v54_v39 = vsub.f32 %v33_v28, %v498_v8 }
   0x7   :  { %389 = vmatpush3.bf16.msra.mxu0 %v435_v2  ;;  %427 = vmatpush3.bf16.msra.mxu1 %v435_v2  ;;  %v511_v16 = vrot.slane %v62_v14, %v65_v9  ;;  %v525_v20 = vld [vmem:[%s670_s4] ss:$0 sm:$0xff]  ;;  %v52_v25 = vsub.f32 %v31_v18, %v498_v8  ;;  %v36_v41 = vld [vmem:[%s667_s0 + $0x68] sm:$0xff]  ;;  %v49_v43 = vsub.f32 %v28_v32, %v498_v8  ;;  %v440_v44 = vld [vmem:[%s666_s1 + $0x30] sm:$0xff]  }
   0x8   :  { %390 = vmatprep.subr.bf16.mxu0 %v436_v3  ;;  %420 = vmatprep.subr.bf16.mxu1 %v436_v3  ;;  %v27_v24 = vld [vmem:[%s667_s0 + $0x20] sm:$0xff]  ;;  %v55_v47 = vsub.f32 %v34_v35, %v498_v8  ;;  %v29_v50 = vld [vmem:[%s667_s0 + $0x30] sm:$0xff]  ;;  %v57_v52 = vsub.f32 %v36_v41, %v498_v8  ;;  %v30_v53 = vld [vmem:[%s667_s0 + $0x38] sm:$0xff] }
   0x9   :  { %v67_v21 = vmul.f32 %v511_v16, %v44_v12  ;;  %v68_v22 = vmul.f32 %v511_v16, %v45_v13  ;;  %v48_v34 = vsub.f32 %v27_v24, %v498_v8  ;;  %v75_v37 = vmul.f32 %v511_v16, %v52_v25  ;;  %v35_v40 = vld [vmem:[%s667_s0 + $0x60] sm:$0xff]  ;;  %v37_v60 = vld [vmem:[%s667_s0 + $0x70] sm:$0xff]  ;;  %v38_v61 = vld [vmem:[%s667_s0 + $0x78] sm:$0xff] }
   0xa   :  { %v76_v38 = vmul.f32 %v511_v16, %v53_v26  ;;  %v69_v42 = vmul.f32 %v511_v16, %v46_v27  ;;  %v70_v48 = vmul.f32 %v511_v16, %v47_v33  ;;  %v56_v51 = vsub.f32 %v35_v40, %v498_v8  ;;  %v441_v62 = vld [vmem:[%s666_s1 + $0x38] sm:$0xff]  }
   0xb   :  { %391 = vmatpush3.bf16.msra.mxu0 %v436_v3  ;;  %428 = vmatpush3.bf16.msra.mxu1 %v436_v3  ;;  %v90_v30 = vadd.f32 %v525_v20, %v67_v21  ;;  %v91_v31 = vadd.f32 %v525_v20, %v68_v22  ;;  %v98_v45 = vadd.f32 %v525_v20, %v75_v37 }
   0xc   :  { %392 = vmatprep.subr.bf16.mxu0 %v437_v5  ;;  %421 = vmatprep.subr.bf16.mxu1 %v437_v5  ;;  %v99_v46 = vadd.f32 %v525_v20, %v76_v38  ;;  %v71_v49 = vmul.f32 %v511_v16, %v48_v34  ;;  %v77_v55 = vmul.f32 %v511_v16, %v54_v39 }
   0xd   :  { %v106_v36 = vpack.c.bf16 %v91_v31, %v90_v30  ;;  %v78_v56 = vmul.f32 %v511_v16, %v55_v47  ;;  %v72_v57 = vmul.f32 %v511_v16, %v49_v43  ;;  %v79_v58 = vmul.f32 %v511_v16, %v56_v51 }
   0xe   :  { %v110_v54 = vpack.c.bf16 %v99_v46, %v98_v45  ;;  %v80_v59 = vmul.f32 %v511_v16, %v57_v52  ;;  %v50_v63 = vsub.f32 %v29_v50, %v498_v8  ;;  %v92_v0 = vadd.f32 %v525_v20, %v69_v42 }
   0xf   :  { %393 = vmatpush3.bf16.msra.mxu0 %v437_v5  ;;  %429 = vmatpush3.bf16.msra.mxu1 %v437_v5  ;;  %v93_v1 = vadd.f32 %v525_v20, %v70_v48  ;;  %v94_v2 = vadd.f32 %v525_v20, %v71_v49  ;;  %v51_v3 = vsub.f32 %v30_v53, %v498_v8 }
  0x10   :  { %394 = vmatprep.subr.bf16.mxu0 %v438_v15  ;;  %422 = vmatprep.subr.bf16.mxu1 %v438_v15  ;;  %v100_v4 = vadd.f32 %v525_v20, %v77_v55  ;;  %v101_v5 = vadd.f32 %v525_v20, %v78_v56  ;;  %v58_v6 = vsub.f32 %v37_v60, %v498_v8 }
  0x11   :  { %402 = vmatprep.mubr.bf16.mxu0 %v106_v36  ;;  %410 = vmatprep.mubr.bf16.mxu1 %v110_v54  ;;  %v59_v7 = vsub.f32 %v38_v61, %v498_v8  ;;  %v95_v9 = vadd.f32 %v525_v20, %v72_v57  ;;  %v102_v10 = vadd.f32 %v525_v20, %v79_v58 }
  0x12   :  { %v103_v11 = vadd.f32 %v525_v20, %v80_v59  ;;  %v73_v12 = vmul.f32 %v511_v16, %v50_v63  ;;  %v74_v13 = vmul.f32 %v511_v16, %v51_v3  ;;  %v107_v14 = vpack.c.bf16 %v93_v1, %v92_v0 }
  0x13   :  { %395 = vmatpush3.bf16.msra.mxu0 %v438_v15  ;;  %430 = vmatpush3.bf16.msra.mxu1 %v438_v15  ;;  %v111_v15 = vpack.c.bf16 %v101_v5, %v100_v4  ;;  %v81_v17 = vmul.f32 %v511_v16, %v58_v6  ;;  %v82_v8 = vmul.f32 %v511_v16, %v59_v7 }
  0x14   :  { %396 = vmatprep.subr.bf16.mxu0 %v439_v29  ;;  %423 = vmatprep.subr.bf16.mxu1 %v439_v29  ;;  %v108_v18 = vpack.c.bf16 %v95_v9, %v94_v2  ;;  %v112_v19 = vpack.c.bf16 %v103_v11, %v102_v10  ;;  %v96_v21 = vadd.f32 %v525_v20, %v73_v12 }
  0x15   :  { %v97_v22 = vadd.f32 %v525_v20, %v74_v13  ;;  %v104_v23 = vadd.f32 %v525_v20, %v81_v17  ;;  %v105_v24 = vadd.f32 %v525_v20, %v82_v8 }
  0x17   :  { %397 = vmatpush3.bf16.msra.mxu0 %v439_v29  ;;  %431 = vmatpush3.bf16.msra.mxu1 %v439_v29  ;;  %v109_v25 = vpack.c.bf16 %v97_v22, %v96_v21  ;;  %v113_v26 = vpack.c.bf16 %v105_v24, %v104_v23 }
  0x18   :  { %398 = vmatprep.subr.bf16.mxu0 %v440_v44  ;;  %424 = vmatprep.subr.bf16.mxu1 %v440_v44 }
  0x1b   :  { %399 = vmatpush3.bf16.msra.mxu0 %v440_v44  ;;  %432 = vmatpush3.bf16.msra.mxu1 %v440_v44 }
  0x1c   :  { %400 = vmatprep.subr.bf16.mxu0 %v441_v62  ;;  %425 = vmatprep.subr.bf16.mxu1 %v441_v62 }
  0x1f   :  { %401 = vmatpush3.bf16.msra.mxu0 %v441_v62  ;;  %433 = vmatpush3.bf16.msra.mxu1 %v441_v62 }
  0x22   :  { %403 = vmatmul.mubr.bf16.vlgmr.msra.gmra.mrb[0].mxu0 %v107_v14  ;;  %411 = vmatmul.mubr.bf16.vlgmr.msra.gmra.mrb[0].mxu1 %v111_v15 }
  0x23   :  { %406 = vmatprep.mubr.bf16.mxu0 %v108_v18  ;;  %414 = vmatprep.mubr.bf16.mxu1 %v112_v19 }
  0x2a   :  { %407 = vmatmul.mubr.bf16.gmra.mrb[4].mxu0 %v109_v25  ;;  %415 = vmatmul.mubr.bf16.gmra.mrb[4].mxu1 %v113_v26 }
  0xf5   :  { %v404_v16 = vpop.f32.mrb[0].mxu0  ;;  %v412_v27 = vpop.f32.mrb[0].mxu1 }
  0xf6   :  { %277 = vst [vmem:[%s671_s5 + $0x10] sm:$0xff] %v404_v16  ;;  %v212_v28 = vpop.f32.mrb[1].mxu0  ;;  %285 = vst [vmem:[%s671_s5 + $0x50] sm:$0xff] %v412_v27  ;;  %v244_v29 = vpop.f32.mrb[1].mxu1  ;;  %v314_v36 = vmul.f32 %v404_v16, %v404_v16  ;;  %v322_v4 = vmul.f32 %v412_v27, %v412_v27 }
  0xf7   :  { %275 = vst [vmem:[%s671_s5] sm:$0xff] %v212_v28  ;;  %v405_v20 = vpop.f32.mrb[2].mxu0  ;;  %283 = vst [vmem:[%s671_s5 + $0x40] sm:$0xff] %v244_v29  ;;  %v413_v30 = vpop.f32.mrb[2].mxu1  ;;  %v312_v33 = vmul.f32 %v212_v28, %v212_v28  ;;  %v320_v62 = vmul.f32 %v244_v29, %v244_v29 }
  0xf8   :  { %278 = vst [vmem:[%s671_s5 + $0x18] sm:$0xff] %v405_v20  ;;  %v215_v31 = vpop.f32.mrb[3].mxu0  ;;  %286 = vst [vmem:[%s671_s5 + $0x58] sm:$0xff] %v413_v30  ;;  %v247_v32 = vpop.f32.mrb[3].mxu1  ;;  %v315_v39 = vmul.f32 %v405_v20, %v405_v20  ;;  %v323_v7 = vmul.f32 %v413_v30, %v413_v30 }
  0xf9   :  { %276 = vst [vmem:[%s671_s5 + $0x8] sm:$0xff] %v215_v31  ;;  %v291_v34 = vadd.f32 %v215_v31, %v212_v28  ;;  %v313_v35 = vmul.f32 %v215_v31, %v215_v31  ;;  %284 = vst [vmem:[%s671_s5 + $0x48] sm:$0xff] %v247_v32  ;;  %v321_v3 = vmul.f32 %v247_v32, %v247_v32 }
  0xfb   :  { %v292_v37 = vadd.f32 %v404_v16, %v291_v34  ;;  %v328_v38 = vadd.f32 %v313_v35, %v312_v33 }
  0xfd   :  { %v329_v40 = vadd.f32 %v328_v38, %v314_v36  ;;  %v408_v41 = vpop.f32.mrb[4].mxu0  ;;  %v293_v42 = vadd.f32 %v405_v20, %v292_v37  ;;  %v416_v43 = vpop.f32.mrb[4].mxu1 }
  0xfe   :  { %281 = vst [vmem:[%s671_s5 + $0x30] sm:$0xff] %v408_v41  ;;  %v228_v44 = vpop.f32.mrb[5].mxu0  ;;  %289 = vst [vmem:[%s671_s5 + $0x70] sm:$0xff] %v416_v43  ;;  %v260_v45 = vpop.f32.mrb[5].mxu1  ;;  %v318_v56 = vmul.f32 %v408_v41, %v408_v41  ;;  %v326_v8 = vmul.f32 %v416_v43, %v416_v43 }
  0xff   :  { %279 = vst [vmem:[%s671_s5 + $0x20] sm:$0xff] %v228_v44  ;;  %v294_v46 = vadd.f32 %v293_v42, %v228_v44  ;;  %v316_v47 = vmul.f32 %v228_v44, %v228_v44  ;;  %v330_v48 = vadd.f32 %v329_v40, %v315_v39  ;;  %v409_v49 = vpop.f32.mrb[6].mxu0  ;;  %287 = vst [vmem:[%s671_s5 + $0x60] sm:$0xff] %v260_v45  ;;  %v417_v50 = vpop.f32.mrb[6].mxu1 }
 0x100   :  { %282 = vst [vmem:[%s671_s5 + $0x38] sm:$0xff] %v409_v49  ;;  %v231_v51 = vpop.f32.mrb[7].mxu0  ;;  %290 = vst [vmem:[%s671_s5 + $0x78] sm:$0xff] %v417_v50  ;;  %v263_v52 = vpop.f32.mrb[7].mxu1  ;;  %v319_v59 = vmul.f32 %v409_v49, %v409_v49  ;;  %v324_v11 = vmul.f32 %v260_v45, %v260_v45  ;;  %v327_v21 = vmul.f32 %v417_v50, %v417_v50 }
 0x101   :  { %v331_v53 = vadd.f32 %v330_v48, %v316_v47  ;;  %280 = vst [vmem:[%s671_s5 + $0x28] sm:$0xff] %v231_v51  ;;  %v295_v54 = vadd.f32 %v294_v46, %v231_v51  ;;  %v317_v55 = vmul.f32 %v231_v51, %v231_v51  ;;  %288 = vst [vmem:[%s671_s5 + $0x68] sm:$0xff] %v263_v52 }
 0x102   :  { %v325_v17 = vmul.f32 %v263_v52, %v263_v52 }
 0x103   :  { %v296_v57 = vadd.f32 %v408_v41, %v295_v54  ;;  %v332_v58 = vadd.f32 %v331_v53, %v317_v55 }
 0x105   :  { %v333_v60 = vadd.f32 %v332_v58, %v318_v56  ;;  %v297_v61 = vadd.f32 %v409_v49, %v296_v57 }
 0x107   :  { %v298_v63 = vadd.f32 %v297_v61, %v244_v29  ;;  %v334_v0 = vadd.f32 %v333_v60, %v319_v59 }
 0x109   :  { %v335_v1 = vadd.f32 %v334_v0, %v320_v62  ;;  %v299_v2 = vadd.f32 %v298_v63, %v247_v32 }
 0x10b   :  { %v300_v5 = vadd.f32 %v412_v27, %v299_v2  ;;  %v336_v6 = vadd.f32 %v335_v1, %v321_v3 }
 0x10d   :  { %v337_v9 = vadd.f32 %v336_v6, %v322_v4  ;;  %v301_v10 = vadd.f32 %v413_v30, %v300_v5 }
 0x10f   :  { %v302_v12 = vadd.f32 %v301_v10, %v260_v45  ;;  %v338_v13 = vadd.f32 %v337_v9, %v323_v7 }
 0x111   :  { %v339_v14 = vadd.f32 %v338_v13, %v324_v11  ;;  %v303_v15 = vadd.f32 %v302_v12, %v263_v52 }
 0x113   :  { %v304_v18 = vadd.f32 %v416_v43, %v303_v15  ;;  %v340_v19 = vadd.f32 %v339_v14, %v325_v17 }
 0x115   :  { %v305_v22 = vadd.f32 %v417_v50, %v304_v18  ;;  %v341_v23 = vadd.f32 %v340_v19, %v326_v8 }
 0x117   :  { %v306_v24 = vrot.slane %v305_v22, 4  ;;  %v342_v25 = vadd.f32 %v341_v23, %v327_v21 }
 0x119   :  { %v307_v26 = vadd.f32 %v306_v24, %v305_v22  ;;  %v343_v16 = vrot.slane %v342_v25, 4 }
 0x11b   :  { %v308_v27 = vrot.slane %v307_v26, 2  ;;  %v344_v28 = vadd.f32 %v343_v16, %v342_v25 }
 0x11d   :  { %v309_v29 = vadd.f32 %v308_v27, %v307_v26  ;;  %v345_v20 = vrot.slane %v344_v28, 2 }
 0x11f   :  { %v310_v30 = vrot.slane %v309_v29, 1  ;;  %v346_v31 = vadd.f32 %v345_v20, %v344_v28 }
 0x121   :  { %v347_v32 = vrot.slane %v346_v31, 1  ;;  %v311_v33 = vadd.f32 %v310_v30, %v309_v29 }
 0x123   :  { %v348_v34 = vadd.f32 %v347_v32, %v346_v31 }
 0x125   :  { %v350_v35 = vsel %vm349_vm0, %v311_v33, %v348_v34 }
 0x126   :  { %351 = vst [vmem:[%s672_s6] sm:$0x3] %v350_v35 }

// kernel: bottleneck_se_forward.10
= control target key start
LH: loop header
LB: loop body
LE: loop exit
PB: predicated region body
PF: predicated region fallthrough
CT: control target
= control target key end

     0   :  { %s459_s15 = smov 0   ;;  %s461_s16 = smov 0   ;;  %s508_s0 = inlined_call_operand.vmem [shape: f32[2,64,128], index: 0, kind: input, shape index: {}]   ;;  %s509_s1 = inlined_call_operand.vmem [shape: f32[2,128], index: 1, kind: input, shape index: {}]   ;;  %s510_s2 = inlined_call_operand.vmem [shape: f32[1,128], index: 2, kind: input, shape index: {}]   ;;  %s511_s3 = inlined_call_operand.vmem [shape: f32[1,128], index: 3, kind: input, shape index: {}]   ;;  %s512_s4 = inlined_call_operand.vmem [shape: f32[2,1,1,128], index: 4, kind: output, shape index: {}]  }
   0x1   :  { %s463_s17 = smov 0  }
   0x2 LB: > { %s26_s18 = sadd.s32 1, %s428_s16  ;;  %p378_p0 = scmp.ge.s32.totalorder %s432_s17, 1  ;;  %s432_s17 = sphi %s463_s17, %s14_s17   ;;  %s428_s16 = sphi %s461_s16, %s514_s16   ;;  %s424_s15 = sphi %s459_s15, %s513_s15  }
   0x3   : > { %p28_p1 = scmp.ge.s32.totalorder %s26_s18, 2  ;;  %p183_p2 = scmp.lt.s32.totalorder %s432_s17, 3 }
   0x5   : > { %s516_s18 = smov (%p28_p1, %s26_s18), 0  ;;  %p184_p3 = pnand %p378_p0, %p183_p2 }
   0x6   : > { %p215_p4 = scmp.lt.s32.totalorder (!%p184_p3), %s424_s15, 1  ;;  %v251_v0 = vld [vmem:[%s509_s1 + $0x1] sm:$0x1] (!%p184_p3)  ;;  %v254_v1 = vlaneseq (!%p184_p3)  ;;  %v252_v2 = vld [vmem:[%s510_s2] sm:$0x1] (!%p184_p3) }
   0x7   : > { %187 = sbr.rel (%p184_p3) target bundleno = 53 (0x35), region = 36  ;;  %v253_v3 = vmul.f32 (!%p184_p3), %v252_v2, %v251_v0  ;;  %v381_v5 = vld [vmem:[%s509_s1] ss:$0 sm:$0xff] (!%p184_p3) }
   0x8   : > { %v255_v4 = vshrl.u32 (!%p184_p3), %v254_v1, 7  ;;  %v382_v22 = vld [vmem:[%s511_s3] ss:$0 sm:$0xff] (!%p184_p3) }
   0xa   : > { %v256_v6 = vsub.s32 (!%p184_p3), 0, %v255_v4 }
   0xc   : > { %v257_v10 = vrot.slane (!%p184_p3), %v253_v3, %v256_v6 }
   0xe   : > { %s518_s15 = smov (!%p215_p4, %s424_s15), 1 }
   0xf   : > { %s385_s23 = sshll.u32 %s518_s15, 6  ;;  %s229_s7 = scalar_lea.vmem %s512_s4, %s518_s15 }
  0x10   : > { %s222_s28 = scalar_lea.vmem %s508_s0, %s385_s23 }
  0x11   : > { %v230_v7 = vld [vmem:[%s222_s28] sm:$0xff]  ;;  %v231_v8 = vld [vmem:[%s222_s28 + $0x8] sm:$0xff]  ;;  %v232_v9 = vld [vmem:[%s222_s28 + $0x10] sm:$0xff] }
  0x12   : > { %v233_v11 = vld [vmem:[%s222_s28 + $0x18] sm:$0xff]  ;;  %v234_v12 = vld [vmem:[%s222_s28 + $0x20] sm:$0xff]  ;;  %v235_v13 = vld [vmem:[%s222_s28 + $0x28] sm:$0xff]  ;;  %v243_v14 = vsub.f32 %v230_v7, %v381_v5  ;;  %v244_v15 = vsub.f32 %v231_v8, %v381_v5  ;;  %v245_v16 = vsub.f32 %v232_v9, %v381_v5 }
  0x13   : > { %v236_v17 = vld [vmem:[%s222_s28 + $0x30] sm:$0xff]  ;;  %v237_v18 = vld [vmem:[%s222_s28 + $0x38] sm:$0xff]  ;;  %v246_v19 = vsub.f32 %v233_v11, %v381_v5  ;;  %v247_v20 = vsub.f32 %v234_v12, %v381_v5  ;;  %v248_v21 = vsub.f32 %v235_v13, %v381_v5 }
  0x14   : > { %v249_v23 = vsub.f32 %v236_v17, %v381_v5  ;;  %v258_v24 = vmul.f32 %v257_v10, %v243_v14  ;;  %v259_v25 = vmul.f32 %v257_v10, %v244_v15  ;;  %v260_v26 = vmul.f32 %v257_v10, %v245_v16 }
  0x15   : > { %v261_v27 = vmul.f32 %v257_v10, %v246_v19  ;;  %v262_v28 = vmul.f32 %v257_v10, %v247_v20  ;;  %v250_v29 = vsub.f32 %v237_v18, %v381_v5  ;;  %v263_v30 = vmul.f32 %v257_v10, %v248_v21 }
  0x16   : > { %v273_v31 = vadd.f32 %v382_v22, %v258_v24  ;;  %v274_v32 = vadd.f32 %v382_v22, %v259_v25  ;;  %v275_v33 = vadd.f32 %v382_v22, %v260_v26  ;;  %v264_v35 = vmul.f32 %v257_v10, %v249_v23 }
  0x17   : > { %v276_v34 = vadd.f32 %v382_v22, %v261_v27  ;;  %v277_v36 = vadd.f32 %v382_v22, %v262_v28  ;;  %v265_v40 = vmul.f32 %v257_v10, %v250_v29  ;;  %v278_v41 = vadd.f32 %v382_v22, %v263_v30 }
  0x18   : > { %v281_v37 = vmax.f32 %v273_v31, 0.0  ;;  %v282_v38 = vmax.f32 %v274_v32, 0.0  ;;  %v283_v39 = vmax.f32 %v275_v33, 0.0  ;;  %v279_v44 = vadd.f32 %v382_v22, %v264_v35 }
  0x19   : > { %v284_v42 = vmax.f32 %v276_v34, 0.0  ;;  %v285_v45 = vmax.f32 %v277_v36, 0.0  ;;  %v280_v47 = vadd.f32 %v382_v22, %v265_v40  ;;  %v286_v48 = vmax.f32 %v278_v41, 0.0 }
  0x1a   : > { %v289_v43 = vadd.f32 %v282_v38, %v281_v37  ;;  %v287_v50 = vmax.f32 %v279_v44, 0.0 }
  0x1b   : > { %v288_v52 = vmax.f32 %v280_v47, 0.0 }
  0x1c   : > { %v290_v46 = vadd.f32 %v289_v43, %v283_v39 }
  0x1e   : > { %v291_v49 = vadd.f32 %v290_v46, %v284_v42 }
  0x20   : > { %v292_v51 = vadd.f32 %v291_v49, %v285_v45 }
  0x22   : > { %v293_v53 = vadd.f32 %v292_v51, %v286_v48 }
  0x24   : > { %v294_v54 = vadd.f32 %v293_v53, %v287_v50 }
  0x26   : > { %v295_v55 = vadd.f32 %v294_v54, %v288_v52 }
  0x28   : > { %v296_v56 = vrot.slane %v295_v55, 4 }
  0x2a   : > { %v297_v57 = vadd.f32 %v296_v56, %v295_v55 }
  0x2c   : > { %v298_v58 = vrot.slane %v297_v57, 2 }
  0x2e   : > { %v299_v59 = vadd.f32 %v298_v58, %v297_v57 }
  0x30   : > { %v300_v60 = vrot.slane %v299_v59, 1 }
  0x32   : > { %v301_v61 = vadd.f32 %v300_v60, %v299_v59 }
  0x34   : > { %302 = vst [vmem:[%s229_s7] sm:$0x1] %v301_v61 }
  0x35 PF: > { %s14_s17 = sadd.s32 1, %s432_s17   ;;  %s513_s15 = smov %s428_s16 }
  0x36   : > { %p11_p5 = scmp.ge.s32.totalorder %s14_s17, 4   ;;  %s514_s16 = smov %s516_s18 }
  0x38   :  { %13 = sbr.rel (!%p11_p5) target bundleno = 2 (0x2), region = 66 }

// kernel: bottleneck_se_forward.11
= control target key start
LH: loop header
LB: loop body
LE: loop exit
PB: predicated region body
PF: predicated region fallthrough
CT: control target
= control target key end

     0   :  { %s804_s30 = smov 0   ;;  %s806_s10 = smov 0   ;;  %s886_s0 = inlined_call_operand.vmem [shape: f32[2,64,128], index: 0, kind: input, shape index: {}, may-alias: {0,9}]   ;;  %s887_s1 = inlined_call_operand.vmem [shape: f32[2,128], index: 1, kind: input, shape index: {}]   ;;  %s888_s2 = inlined_call_operand.vmem [shape: f32[1,128], index: 2, kind: input, shape index: {}]   ;;  %s889_s3 = inlined_call_operand.vmem [shape: f32[1,128], index: 3, kind: input, shape index: {}]   ;;  %s890_s4 = inlined_call_operand.vmem [shape: f32[2,64,128], index: 4, kind: input, shape index: {}]   ;;  %s891_s5 = inlined_call_operand.vmem [shape: f32[2,128], index: 5, kind: input, shape index: {}]   ;;  %s892_s6 = inlined_call_operand.vmem [shape: f32[1,128], index: 6, kind: input, shape index: {}]   ;;  %s893_s7 = inlined_call_operand.vmem [shape: f32[1,128], index: 7, kind: input, shape index: {}]   ;;  %s894_s8 = inlined_call_operand.vmem [shape: f32[2,1,128], index: 8, kind: input, shape index: {}]   ;;  %s895_s9 = inlined_call_operand.vmem [shape: f32[2,64,128], index: 9, kind: output, shape index: {}, may-alias: {0,9}]  }
   0x1   :  { %s808_s11 = smov 0  }
   0x2 LB: > { %s31_s12 = sadd.s32 1, %s748_s10  ;;  %p689_p0 = scmp.ge.s32.totalorder %s752_s11, 1  ;;  %s752_s11 = sphi %s808_s11, %s19_s11   ;;  %s748_s10 = sphi %s806_s10, %s897_s10   ;;  %s744_s30 = sphi %s804_s30, %s896_s30  }
   0x3   : > { %p33_p1 = scmp.ge.s32.totalorder %s31_s12, 2  ;;  %p333_p2 = scmp.lt.s32.totalorder %s752_s11, 3 }
   0x5   : > { %s899_s12 = smov (%p33_p1, %s31_s12), 0  ;;  %p334_p3 = pnand %p689_p0, %p333_p2 }
   0x6   : > { %p390_p4 = scmp.lt.s32.totalorder (!%p334_p3), %s744_s30, 1  ;;  %v443_v0 = vld [vmem:[%s887_s1 + $0x1] sm:$0x1] (!%p334_p3)  ;;  %v446_v1 = vlaneseq (!%p334_p3)  ;;  %v444_v2 = vld [vmem:[%s888_s2] sm:$0x1] (!%p334_p3) }
   0x7   : > { %337 = sbr.rel (%p334_p3) target bundleno = 42 (0x2a), region = 56  ;;  %v445_v3 = vmul.f32 (!%p334_p3), %v444_v2, %v443_v0  ;;  %v502_v5 = vld [vmem:[%s891_s5 + $0x1] sm:$0x1] (!%p334_p3)  ;;  %v503_v6 = vld [vmem:[%s892_s6] sm:$0x1] (!%p334_p3) }
   0x8   : > { %v447_v4 = vshrl.u32 (!%p334_p3), %v446_v1, 7  ;;  %v696_v7 = vld [vmem:[%s887_s1] ss:$0 sm:$0xff] (!%p334_p3)  ;;  %v504_v9 = vmul.f32 (!%p334_p3), %v503_v6, %v502_v5 }
   0x9   : > { %v697_v25 = vld [vmem:[%s889_s3] ss:$0 sm:$0xff] (!%p334_p3) }
   0xa   : > { %v448_v8 = vsub.s32 (!%p334_p3), 0, %v447_v4  ;;  %v698_v39 = vld [vmem:[%s891_s5] ss:$0 sm:$0xff] (!%p334_p3) }
   0xb   : > { %v699_v4 = vld [vmem:[%s893_s7] ss:$0 sm:$0xff] (!%p334_p3) }
   0xc   : > { %v449_v13 = vrot.slane (!%p334_p3), %v445_v3, %v448_v8  ;;  %v508_v26 = vrot.slane (!%p334_p3), %v504_v9, %v448_v8 }
   0xe   : > { %s901_s30 = smov (!%p390_p4, %s744_s30), 1 }
   0xf   : > { %s837_s21 = sshll.u32 %s901_s30, 6  ;;  %s411_s19 = scalar_lea.vmem %s894_s8, %s901_s30 }
  0x10   : > { %s397_s26 = scalar_lea.vmem %s886_s0, %s837_s21  ;;  %s853_s14 = scalar_lea.vmem %s890_s4, %s837_s21 }
  0x11   : > { %v422_v10 = vld [vmem:[%s397_s26] sm:$0xff]  ;;  %v423_v11 = vld [vmem:[%s397_s26 + $0x8] sm:$0xff]  ;;  %v424_v12 = vld [vmem:[%s397_s26 + $0x10] sm:$0xff]  ;;  %s420_s24 = scalar_lea.vmem %s895_s9, %s837_s21 }
  0x12   : > { %v425_v14 = vld [vmem:[%s397_s26 + $0x18] sm:$0xff]  ;;  %v426_v15 = vld [vmem:[%s397_s26 + $0x20] sm:$0xff]  ;;  %v427_v16 = vld [vmem:[%s397_s26 + $0x28] sm:$0xff]  ;;  %v435_v17 = vsub.f32 %v422_v10, %v696_v7  ;;  %v436_v18 = vsub.f32 %v423_v11, %v696_v7  ;;  %v437_v19 = vsub.f32 %v424_v12, %v696_v7 }
  0x13   : > { %v428_v20 = vld [vmem:[%s397_s26 + $0x30] sm:$0xff]  ;;  %v429_v21 = vld [vmem:[%s397_s26 + $0x38] sm:$0xff]  ;;  %v438_v22 = vsub.f32 %v425_v14, %v696_v7  ;;  %v439_v23 = vsub.f32 %v426_v15, %v696_v7  ;;  %v440_v24 = vsub.f32 %v427_v16, %v696_v7  ;;  %v481_v44 = vld [vmem:[%s853_s14] sm:$0xff] }
  0x14   : > { %v441_v27 = vsub.f32 %v428_v20, %v696_v7  ;;  %v442_v28 = vsub.f32 %v429_v21, %v696_v7  ;;  %v450_v29 = vmul.f32 %v449_v13, %v435_v17  ;;  %v451_v30 = vmul.f32 %v449_v13, %v436_v18  ;;  %v482_v45 = vld [vmem:[%s853_s14 + $0x8] sm:$0xff]  ;;  %v483_v46 = vld [vmem:[%s853_s14 + $0x10] sm:$0xff]  ;;  %v484_v51 = vld [vmem:[%s853_s14 + $0x18] sm:$0xff] }
  0x15   : > { %v452_v31 = vmul.f32 %v449_v13, %v437_v19  ;;  %v453_v32 = vmul.f32 %v449_v13, %v438_v22  ;;  %v454_v33 = vmul.f32 %v449_v13, %v439_v23  ;;  %v455_v34 = vmul.f32 %v449_v13, %v440_v24  ;;  %v485_v52 = vld [vmem:[%s853_s14 + $0x20] sm:$0xff]  ;;  %v486_v53 = vld [vmem:[%s853_s14 + $0x28] sm:$0xff]  ;;  %v487_v58 = vld [vmem:[%s853_s14 + $0x30] sm:$0xff] }
  0x16   : > { %v456_v35 = vmul.f32 %v449_v13, %v441_v27  ;;  %v457_v36 = vmul.f32 %v449_v13, %v442_v28  ;;  %v465_v37 = vadd.f32 %v697_v25, %v450_v29  ;;  %v466_v38 = vadd.f32 %v697_v25, %v451_v30  ;;  %v488_v59 = vld [vmem:[%s853_s14 + $0x38] sm:$0xff]  ;;  %v700_v13 = vld [vmem:[%s411_s19] ss:$0 sm:$0xff] }
  0x17   : > { %v467_v40 = vadd.f32 %v697_v25, %v452_v31  ;;  %v468_v41 = vadd.f32 %v697_v25, %v453_v32  ;;  %v469_v42 = vadd.f32 %v697_v25, %v454_v33  ;;  %v470_v43 = vadd.f32 %v697_v25, %v455_v34 }
  0x18   : > { %v471_v47 = vadd.f32 %v697_v25, %v456_v35  ;;  %v472_v48 = vadd.f32 %v697_v25, %v457_v36  ;;  %v473_v49 = vmax.f32 %v465_v37, 0.0  ;;  %v474_v50 = vmax.f32 %v466_v38, 0.0 }
  0x19   : > { %v475_v54 = vmax.f32 %v467_v40, 0.0  ;;  %v476_v55 = vmax.f32 %v468_v41, 0.0  ;;  %v477_v56 = vmax.f32 %v469_v42, 0.0  ;;  %v478_v57 = vmax.f32 %v470_v43, 0.0 }
  0x1a   : > { %v479_v60 = vmax.f32 %v471_v47, 0.0  ;;  %v480_v61 = vmax.f32 %v472_v48, 0.0  ;;  %v494_v62 = vsub.f32 %v481_v44, %v698_v39  ;;  %v495_v63 = vsub.f32 %v482_v45, %v698_v39 }
  0x1b   : > { %v496_v0 = vsub.f32 %v483_v46, %v698_v39  ;;  %v497_v1 = vsub.f32 %v484_v51, %v698_v39  ;;  %v498_v2 = vsub.f32 %v485_v52, %v698_v39  ;;  %v499_v3 = vsub.f32 %v486_v53, %v698_v39 }
  0x1c   : > { %v500_v5 = vsub.f32 %v487_v58, %v698_v39  ;;  %v501_v6 = vsub.f32 %v488_v59, %v698_v39  ;;  %v509_v7 = vmul.f32 %v508_v26, %v494_v62  ;;  %v510_v8 = vmul.f32 %v508_v26, %v495_v63 }
  0x1d   : > { %v511_v9 = vmul.f32 %v508_v26, %v496_v0  ;;  %v512_v10 = vmul.f32 %v508_v26, %v497_v1  ;;  %v513_v11 = vmul.f32 %v508_v26, %v498_v2  ;;  %v514_v12 = vmul.f32 %v508_v26, %v499_v3 }
  0x1e   : > { %v515_v14 = vmul.f32 %v508_v26, %v500_v5  ;;  %v516_v15 = vmul.f32 %v508_v26, %v501_v6  ;;  %v524_v16 = vadd.f32 %v699_v4, %v509_v7  ;;  %v525_v17 = vadd.f32 %v699_v4, %v510_v8 }
  0x1f   : > { %v526_v18 = vadd.f32 %v699_v4, %v511_v9  ;;  %v527_v19 = vadd.f32 %v699_v4, %v512_v10  ;;  %v528_v20 = vadd.f32 %v699_v4, %v513_v11  ;;  %v529_v21 = vadd.f32 %v699_v4, %v514_v12 }
  0x20   : > { %v530_v22 = vadd.f32 %v699_v4, %v515_v14  ;;  %v531_v23 = vadd.f32 %v699_v4, %v516_v15  ;;  %v539_v24 = vmul.f32 %v700_v13, %v473_v49  ;;  %v540_v25 = vmul.f32 %v700_v13, %v474_v50 }
  0x21   : > { %v541_v27 = vmul.f32 %v700_v13, %v475_v54  ;;  %v542_v28 = vmul.f32 %v700_v13, %v476_v55  ;;  %v543_v29 = vmul.f32 %v700_v13, %v477_v56  ;;  %v544_v30 = vmul.f32 %v700_v13, %v478_v57 }
  0x22   : > { %v545_v31 = vmul.f32 %v700_v13, %v479_v60  ;;  %v546_v32 = vmul.f32 %v700_v13, %v480_v61  ;;  %v547_v33 = vadd.f32 %v539_v24, %v524_v16  ;;  %v548_v34 = vadd.f32 %v540_v25, %v525_v17 }
  0x23   : > { %v549_v26 = vadd.f32 %v541_v27, %v526_v18  ;;  %v550_v35 = vadd.f32 %v542_v28, %v527_v19  ;;  %v551_v36 = vadd.f32 %v543_v29, %v528_v20  ;;  %v552_v37 = vadd.f32 %v544_v30, %v529_v21 }
  0x24   : > { %v553_v38 = vadd.f32 %v545_v31, %v530_v22  ;;  %v554_v39 = vadd.f32 %v546_v32, %v531_v23  ;;  %v555_v40 = vmax.f32 %v547_v33, 0.0  ;;  %v556_v41 = vmax.f32 %v548_v34, 0.0 }
  0x25   : > { %v557_v42 = vmax.f32 %v549_v26, 0.0  ;;  %v558_v43 = vmax.f32 %v550_v35, 0.0  ;;  %v559_v44 = vmax.f32 %v551_v36, 0.0  ;;  %v560_v45 = vmax.f32 %v552_v37, 0.0 }
  0x26   : > { %563 = vst [vmem:[%s420_s24] sm:$0xff] %v555_v40  ;;  %564 = vst [vmem:[%s420_s24 + $0x8] sm:$0xff] %v556_v41  ;;  %v561_v46 = vmax.f32 %v553_v38, 0.0  ;;  %v562_v47 = vmax.f32 %v554_v39, 0.0 }
  0x27   : > { %565 = vst [vmem:[%s420_s24 + $0x10] sm:$0xff] %v557_v42  ;;  %566 = vst [vmem:[%s420_s24 + $0x18] sm:$0xff] %v558_v43 }
  0x28   : > { %567 = vst [vmem:[%s420_s24 + $0x20] sm:$0xff] %v559_v44  ;;  %568 = vst [vmem:[%s420_s24 + $0x28] sm:$0xff] %v560_v45 }
  0x29   : > { %569 = vst [vmem:[%s420_s24 + $0x30] sm:$0xff] %v561_v46  ;;  %570 = vst [vmem:[%s420_s24 + $0x38] sm:$0xff] %v562_v47 }
  0x2a PF: > { %s19_s11 = sadd.s32 1, %s752_s11   ;;  %s896_s30 = smov %s748_s10 }
  0x2b   : > { %p16_p5 = scmp.ge.s32.totalorder %s19_s11, 4   ;;  %s897_s10 = smov %s899_s12 }
  0x2d   :  { %18 = sbr.rel (!%p16_p5) target bundleno = 2 (0x2), region = 92 }

</bundles_post_ra>
